<compile_context>
chip_gen: v7x
topology: tpu7x:2x2x1
jax: 0.10.0
libtpu: 0.0.40
codegen_flags: <defaults>
</compile_context>

<pallas_src>
import jax
import jax.numpy as jnp
from jax.experimental import pallas as pl
from jax.experimental.pallas import tpu as pltpu

N_LAYERS = 2
NF = 32
STATE_SIZE = 8
ACTION_SIZE = 2

LANES = 128                               # lane width of packed slabs / packed output
WBLOCK = 128                              # rows per packed weight block
BATCH = 256

N_WBLOCKS = 2 * N_LAYERS + 1              # 2 linears per block + fused head
HEAD_BIAS_ROW = 6 * N_LAYERS              # fused head bias row in the vector slab
N_VEC_ROWS = -(-(HEAD_BIAS_ROW + 1) // 8) * 8   # pad rows to a multiple of 8 sublanes
LN_EPS = 1e-5


def _num_tensorcores():
    """2-way batch split only pays off on 2-TC parts (v7x); v5e/v6e are single-TC."""
    try:
        kind = jax.devices()[0].device_kind.lower()
    except Exception:
        return 1
    return 2 if "v7" in kind else 1


def _batch_tile(batch, n_cores):
    """One batch tile per TensorCore (single grid step on 1-TC parts), capped at 512
    rows and rounded up to a sublane multiple."""
    per_core = -(-batch // n_cores)
    tb = min(512, per_core)
    return max(8, -(-tb // 8) * 8)


def _layer_norm(y, gamma, beta, n_features=NF, eps=LN_EPS):
    """LayerNorm whose mean comes from the packed row-sum lane (lane NF) of `y`,
    so only ONE cross-lane reduction (sum of squares) is needed per LN.  The
    row-sum lane's own contribution to that reduction is cancelled exactly by
    y_sum**2.  gamma/beta are zero in lane NF and all padding lanes, so those
    lanes come out exactly zero after the affine transform."""
    inv_n = 1.0 / n_features
    y_sum = y[:, NF:NF + 1]                       # (TB, 1): sum of the NF real lanes
    s2 = jnp.sum(y * y, axis=-1, keepdims=True)   # includes the row-sum lane
    mean = y_sum * inv_n
    var = (s2 - y_sum * y_sum) * inv_n - mean * mean
    return (y - mean) * jax.lax.rsqrt(var + eps) * gamma + beta


def a2c_kernel(x_ref, w_ref, vec_ref, out_ref):
    vecs = vec_ref[...]                           # (N_VEC_ROWS, 128) f32
    h = jnp.log(x_ref[...] + 1e-10)               # (TB, STATE_SIZE) f32

    for i in range(N_LAYERS):
        wrow = 2 * i * WBLOCK
        vrow = 6 * i
        in_rows = STATE_SIZE if i == 0 else WBLOCK          # layer 0 contracts over 8 rows
        w1 = w_ref[wrow:wrow + in_rows, :]                  # bf16
        y = jnp.dot(h.astype(jnp.bfloat16), w1,
                    preferred_element_type=jnp.float32) + vecs[vrow:vrow + 1, :]
        y = jnp.maximum(_layer_norm(y, vecs[vrow + 1:vrow + 2, :],
                                    vecs[vrow + 2:vrow + 3, :]), 0.0)
        w2 = w_ref[wrow + WBLOCK:wrow + 2 * WBLOCK, :]      # bf16
        y = jnp.dot(y.astype(jnp.bfloat16), w2,
                    preferred_element_type=jnp.float32) + vecs[vrow + 3:vrow + 4, :]
        y = jnp.maximum(_layer_norm(y, vecs[vrow + 4:vrow + 5, :],
                                    vecs[vrow + 5:vrow + 6, :]), 0.0)
        h = y if i == 0 else y + h                          # residual for layers > 0

    # Fused heads, raw pre-activation: cols 0:2 = mu, 2:4 = var, 4:5 = value,
    # 5:128 = zero padding.  tanh/softplus/avg applied on the sliced columns in
    # the wrapper (avoids 128-lane-wide EUP work here).
    hrow = 2 * N_LAYERS * WBLOCK
    wh = w_ref[hrow:hrow + WBLOCK, :]
    out_ref[...] = jnp.dot(h.astype(jnp.bfloat16), wh,
                           preferred_element_type=jnp.float32) \
        + vecs[HEAD_BIAS_ROW:HEAD_BIAS_ROW + 1, :]           # lane-dense (TB,128) store


def a2c_forward(x, w_slab, vec_slab, avg_action):
    B = x.shape[0]
    tb = _batch_tile(B, _num_tensorcores())
    Bp = -(-B // tb) * tb
    if Bp != B:
        x = jnp.pad(x, ((0, Bp - B), (0, 0)))

    packed = pl.pallas_call(
        a2c_kernel,
        out_shape=jax.ShapeDtypeStruct((Bp, LANES), jnp.float32),
        grid_spec=pltpu.PrefetchScalarGridSpec(
            num_scalar_prefetch=0,
            grid=(Bp // tb,),
            in_specs=[
                pl.BlockSpec((tb, STATE_SIZE), lambda i: (i, 0)),
                pl.BlockSpec((N_WBLOCKS * WBLOCK, LANES), lambda i: (0, 0)),
                pl.BlockSpec((N_VEC_ROWS, LANES), lambda i: (0, 0)),
            ],
            out_specs=pl.BlockSpec((tb, LANES), lambda i: (i, 0)),
        ),
        # Single grid step on single-TC v5e/v6e; 2-point "parallel" grid sharded
        # across both TensorCores on v7x.
        compiler_params=pltpu.CompilerParams(
            dimension_semantics=("parallel",)),
    )(x, w_slab, vec_slab)

    # Tiny head activations on the already-sliced columns (fused by XLA under jit).
    mu = jnp.tanh(packed[:B, 0:ACTION_SIZE]) + avg_action
    var = jnp.logaddexp(packed[:B, ACTION_SIZE:2 * ACTION_SIZE], 0.0)  # Softplus
    value = packed[:B, 2 * ACTION_SIZE:2 * ACTION_SIZE + 1]
    return mu, var, value


a2c_forward_jit = jax.jit(a2c_forward)


# ---------------- parameter construction / packing (host side, one-time) ----------------

def _xavier_uniform(key, in_dim, out_dim):
    limit = (6.0 / (in_dim + out_dim)) ** 0.5
    return jax.random.uniform(key, (in_dim, out_dim), jnp.float32, -limit, limit)


def init_params(key, jitter=0.0):
    """Unpacked params ((in, out) weights; same math as PyTorch x @ W.T), matching
    init_weights().  `jitter` adds small random values to biases / LN params so the
    packed-layout check in __main__ exercises every packed row and lane."""
    params = []

    def vec(k, n, base_val):
        base = jnp.full((1, n), base_val, jnp.float32)
        if jitter:
            base = base + jitter * jax.random.normal(k, (1, n), jnp.float32)
        return base

    for i in range(N_LAYERS):
        in_dim = STATE_SIZE if i == 0 else NF
        key, k1, k2, *kv = jax.random.split(key, 9)
        params += [
            _xavier_uniform(k1, in_dim, NF),
            vec(kv[0], NF, 0.0), vec(kv[1], NF, 1.0), vec(kv[2], NF, 0.0),
            _xavier_uniform(k2, NF, NF),
            vec(kv[3], NF, 0.0), vec(kv[4], NF, 1.0), vec(kv[5], NF, 0.0),
        ]
    key, kmu, kvar, kval, *kb = jax.random.split(key, 7)
    params += [
        _xavier_uniform(kmu, NF, ACTION_SIZE), vec(kb[0], ACTION_SIZE, 0.0),
        _xavier_uniform(kvar, NF, ACTION_SIZE), vec(kb[1], ACTION_SIZE, 0.0),
        _xavier_uniform(kval, NF, 1), vec(kb[2], 1, 0.0),
    ]
    return params


def pack_params(params):
    """Pack into one bf16 (N_WBLOCKS*128, 128) weight slab and one f32 (16, 128)
    vector slab.  Each layer weight block gets a row-sum column at free lane NF
    (sum of its NF real columns) and each layer bias row gets the matching summed
    bias at lane NF, so the in-kernel LayerNorm mean falls out of the matmul."""
    def pad2(a, rows, cols=LANES):
        return jnp.pad(a, ((0, rows - a.shape[0]), (0, cols - a.shape[1])))

    def with_rowsum(block):          # block: (rows, 128), real columns are 0..NF-1
        return block.at[:, NF].set(jnp.sum(block[:, :NF], axis=1))

    w_blocks, vec_rows = [], []
    p = 0
    for _ in range(N_LAYERS):
        w1, b1, g1, be1, w2, b2, g2, be2 = params[p:p + 8]
        p += 8
        w_blocks += [with_rowsum(pad2(w1, WBLOCK)), with_rowsum(pad2(w2, WBLOCK))]
        vec_rows += [with_rowsum(pad2(b1, 1)), pad2(g1, 1), pad2(be1, 1),
                     with_rowsum(pad2(b2, 1)), pad2(g2, 1), pad2(be2, 1)]
    wmu, bmu, wvar, bvar, wval, bval = params[p:p + 6]
    w_blocks.append(pad2(jnp.concatenate([wmu, wvar, wval], axis=1), WBLOCK))
    vec_rows.append(pad2(jnp.concatenate([bmu, bvar, bval], axis=1), 1))

    w_slab = jnp.concatenate(w_blocks, axis=0).astype(jnp.bfloat16)    # (640, 128) bf16
    vec_slab = jnp.concatenate(vec_rows, axis=0)                       # f32
    vec_slab = jnp.pad(vec_slab, ((0, N_VEC_ROWS - vec_slab.shape[0]), (0, 0)))
    return w_slab, vec_slab


# ---------------- pure-JAX f32 reference (for correctness check) ----------------

def _layer_norm_ref(y, gamma, beta, eps=LN_EPS):
    mean = jnp.mean(y, axis=-1, keepdims=True)
    var = jnp.mean((y - mean) ** 2, axis=-1, keepdims=True)
    return (y - mean) * jax.lax.rsqrt(var + eps) * gamma + beta


def a2c_reference(x, avg_action, params):
    h = jnp.log(x + 1e-10)
    p = 0
    for i in range(N_LAYERS):
        w1, b1, g1, be1, w2, b2, g2, be2 = params[p:p + 8]
        p += 8
        y = jnp.maximum(_layer_norm_ref(h @ w1 + b1, g1, be1), 0.0)
        y = jnp.maximum(_layer_norm_ref(y @ w2 + b2, g2, be2), 0.0)
        h = y if i == 0 else y + h
    wmu, bmu, wvar, bvar, wval, bval = params[p:p + 6]
    mu = jnp.tanh(h @ wmu + bmu) + avg_action
    var = jnp.logaddexp(h @ wvar + bvar, 0.0)     # == Softplus(beta=1, threshold=20)
    val = h @ wval + bval
    return mu, var, val


if __name__ == "__main__":
    key = jax.random.PRNGKey(0)
    key, kx, kp = jax.random.split(key, 3)

    # Positive inputs (the model takes log(x + 1e-10)).
    x = jax.random.uniform(kx, (BATCH, STATE_SIZE), jnp.float32, 0.1, 2.0)
    avg_action = jnp.array([[0.35, 0.15]], dtype=jnp.float32)
    params = init_params(kp, jitter=0.05)      # jitter exercises every packed row/lane
    w_slab, vec_slab = pack_params(params)

    mu, var, value = jax.block_until_ready(
        a2c_forward_jit(x, w_slab, vec_slab, avg_action))

    assert mu.shape == (BATCH, ACTION_SIZE)
    assert var.shape == (BATCH, ACTION_SIZE)
    assert value.shape == (BATCH, 1)
    assert bool(jnp.all(var >= 0.0))           # softplus output is non-negative

    mu_r, var_r, val_r = a2c_reference(x, avg_action, params)
    # bf16 MXU operands (and the bf16-rounded row-sum lane used for the LN mean)
    # widen the error vs. the pure-f32 reference; 3e-2 leaves margin over the
    # expected worst-case element error while still validating packing/layout math.
    for got, ref in ((mu, mu_r), (var, var_r), (value, val_r)):
        err = float(jnp.max(jnp.abs(got - ref)))
        assert bool(jnp.allclose(got, ref, atol=3e-2, rtol=3e-2)), err

    print("KERNEL_OK")
</pallas_src>

<mosaic_0001>
module attributes {stable_mosaic.version = 11 : i64} {
  func.func @a2c_kernel(%arg0: i32, %arg1: memref<256x8xf32, #tpu.memory_space<vmem>>, %arg2: memref<640x128xbf16, #tpu.memory_space<vmem>>, %arg3: memref<16x128xf32, #tpu.memory_space<vmem>>, %arg4: memref<256x128xf32, #tpu.memory_space<vmem>>) attributes {dimension_semantics = [#tpu.dimension_semantics<parallel>], iteration_bounds = array<i64: 1>, scalar_prefetch = 0 : i64, scratch_operands = 0 : i64, tpu.core_type = #tpu.core_type<tc>, window_params = [{transform_indices = @transform_0, window_bounds = array<i64: 256, 8>}, {pipeline_mode = #tpu.pipeline_mode<synchronous>, transform_indices = @transform_1, window_bounds = array<i64: 640, 128>}, {pipeline_mode = #tpu.pipeline_mode<synchronous>, transform_indices = @transform_2, window_bounds = array<i64: 16, 128>}, {transform_indices = @transform_3, window_bounds = array<i64: 256, 128>}]} {
    %c0 = arith.constant 0 : index
    %c0_0 = arith.constant 0 : index
    %0 = vector.load %arg3[%c0, %c0_0] : memref<16x128xf32, #tpu.memory_space<vmem>>, vector<16x128xf32>
    %c0_1 = arith.constant 0 : index
    %c0_2 = arith.constant 0 : index
    %1 = vector.load %arg1[%c0_1, %c0_2] : memref<256x8xf32, #tpu.memory_space<vmem>>, vector<256x8xf32>
    %cst = arith.constant 1.000000e-10 : f32
    %2 = vector.broadcast %cst : f32 to vector<256x8xf32>
    %3 = arith.addf %1, %2 : vector<256x8xf32>
    %4 = math.log %3 : vector<256x8xf32>
    %c0_3 = arith.constant 0 : index
    %c0_4 = arith.constant 0 : index
    %5 = vector.load %arg2[%c0_3, %c0_4] : memref<640x128xbf16, #tpu.memory_space<vmem>>, vector<8x128xbf16>
    %6 = arith.truncf %4 : vector<256x8xf32> to vector<256x8xbf16>
    %cst_5 = arith.constant dense<0.000000e+00> : vector<256x128xf32>
    %7 = tpu.matmul %6, %5, %cst_5 {dimension_numbers = #tpu.dot_dimension_numbers<[1], [0], [0], [1], [0, 0, 1, 1], [], []>} : vector<256x8xbf16>, vector<8x128xbf16>, vector<256x128xf32> -> vector<256x128xf32>
    %8 = vector.extract_strided_slice %0 {offsets = [0, 0], sizes = [1, 128], strides = [1, 1]} : vector<16x128xf32> to vector<1x128xf32>
    %9 = vector.broadcast %8 : vector<1x128xf32> to vector<256x128xf32>
    %10 = arith.addf %7, %9 : vector<256x128xf32>
    %11 = vector.extract_strided_slice %0 {offsets = [1, 0], sizes = [1, 128], strides = [1, 1]} : vector<16x128xf32> to vector<1x128xf32>
    %12 = vector.extract_strided_slice %0 {offsets = [2, 0], sizes = [1, 128], strides = [1, 1]} : vector<16x128xf32> to vector<1x128xf32>
    %13 = vector.extract_strided_slice %10 {offsets = [0, 32], sizes = [256, 1], strides = [1, 1]} : vector<256x128xf32> to vector<256x1xf32>
    %14 = arith.mulf %10, %10 : vector<256x128xf32>
    %cst_6 = arith.constant dense<0.000000e+00> : vector<256xf32>
    %15 = vector.multi_reduction <add>, %14, %cst_6 [1] : vector<256x128xf32> to vector<256xf32>
    %16 = vector.shape_cast %15 : vector<256xf32> to vector<256x1xf32>
    %cst_7 = arith.constant 3.125000e-02 : f32
    %17 = vector.broadcast %cst_7 : f32 to vector<256x1xf32>
    %18 = arith.mulf %13, %17 : vector<256x1xf32>
    %19 = arith.mulf %13, %13 : vector<256x1xf32>
    %20 = arith.subf %16, %19 : vector<256x1xf32>
    %cst_8 = arith.constant 3.125000e-02 : f32
    %21 = vector.broadcast %cst_8 : f32 to vector<256x1xf32>
    %22 = arith.mulf %20, %21 : vector<256x1xf32>
    %23 = arith.mulf %18, %18 : vector<256x1xf32>
    %24 = arith.subf %22, %23 : vector<256x1xf32>
    %25 = vector.broadcast %18 : vector<256x1xf32> to vector<256x128xf32>
    %26 = arith.subf %10, %25 : vector<256x128xf32>
    %cst_9 = arith.constant 9.99999974E-6 : f32
    %27 = vector.broadcast %cst_9 : f32 to vector<256x1xf32>
    %28 = arith.addf %24, %27 : vector<256x1xf32>
    %29 = math.rsqrt %28 : vector<256x1xf32>
    %30 = vector.broadcast %29 : vector<256x1xf32> to vector<256x128xf32>
    %31 = arith.mulf %26, %30 : vector<256x128xf32>
    %32 = vector.broadcast %11 : vector<1x128xf32> to vector<256x128xf32>
    %33 = arith.mulf %31, %32 : vector<256x128xf32>
    %34 = vector.broadcast %12 : vector<1x128xf32> to vector<256x128xf32>
    %35 = arith.addf %33, %34 : vector<256x128xf32>
    %cst_10 = arith.constant 0.000000e+00 : f32
    %36 = vector.broadcast %cst_10 : f32 to vector<256x128xf32>
    %37 = arith.maximumf %35, %36 : vector<256x128xf32>
    %c128 = arith.constant 128 : index
    %c0_11 = arith.constant 0 : index
    %38 = vector.load %arg2[%c128, %c0_11] : memref<640x128xbf16, #tpu.memory_space<vmem>>, vector<128x128xbf16>
    %39 = arith.truncf %37 : vector<256x128xf32> to vector<256x128xbf16>
    %cst_12 = arith.constant dense<0.000000e+00> : vector<256x128xf32>
    %40 = tpu.matmul %39, %38, %cst_12 {dimension_numbers = #tpu.dot_dimension_numbers<[1], [0], [0], [1], [0, 0, 1, 1], [], []>} : vector<256x128xbf16>, vector<128x128xbf16>, vector<256x128xf32> -> vector<256x128xf32>
    %41 = vector.extract_strided_slice %0 {offsets = [3, 0], sizes = [1, 128], strides = [1, 1]} : vector<16x128xf32> to vector<1x128xf32>
    %42 = vector.broadcast %41 : vector<1x128xf32> to vector<256x128xf32>
    %43 = arith.addf %40, %42 : vector<256x128xf32>
    %44 = vector.extract_strided_slice %0 {offsets = [4, 0], sizes = [1, 128], strides = [1, 1]} : vector<16x128xf32> to vector<1x128xf32>
    %45 = vector.extract_strided_slice %0 {offsets = [5, 0], sizes = [1, 128], strides = [1, 1]} : vector<16x128xf32> to vector<1x128xf32>
    %46 = vector.extract_strided_slice %43 {offsets = [0, 32], sizes = [256, 1], strides = [1, 1]} : vector<256x128xf32> to vector<256x1xf32>
    %47 = arith.mulf %43, %43 : vector<256x128xf32>
    %cst_13 = arith.constant dense<0.000000e+00> : vector<256xf32>
    %48 = vector.multi_reduction <add>, %47, %cst_13 [1] : vector<256x128xf32> to vector<256xf32>
    %49 = vector.shape_cast %48 : vector<256xf32> to vector<256x1xf32>
    %cst_14 = arith.constant 3.125000e-02 : f32
    %50 = vector.broadcast %cst_14 : f32 to vector<256x1xf32>
    %51 = arith.mulf %46, %50 : vector<256x1xf32>
    %52 = arith.mulf %46, %46 : vector<256x1xf32>
    %53 = arith.subf %49, %52 : vector<256x1xf32>
    %cst_15 = arith.constant 3.125000e-02 : f32
    %54 = vector.broadcast %cst_15 : f32 to vector<256x1xf32>
    %55 = arith.mulf %53, %54 : vector<256x1xf32>
    %56 = arith.mulf %51, %51 : vector<256x1xf32>
    %57 = arith.subf %55, %56 : vector<256x1xf32>
    %58 = vector.broadcast %51 : vector<256x1xf32> to vector<256x128xf32>
    %59 = arith.subf %43, %58 : vector<256x128xf32>
    %cst_16 = arith.constant 9.99999974E-6 : f32
    %60 = vector.broadcast %cst_16 : f32 to vector<256x1xf32>
    %61 = arith.addf %57, %60 : vector<256x1xf32>
    %62 = math.rsqrt %61 : vector<256x1xf32>
    %63 = vector.broadcast %62 : vector<256x1xf32> to vector<256x128xf32>
    %64 = arith.mulf %59, %63 : vector<256x128xf32>
    %65 = vector.broadcast %44 : vector<1x128xf32> to vector<256x128xf32>
    %66 = arith.mulf %64, %65 : vector<256x128xf32>
    %67 = vector.broadcast %45 : vector<1x128xf32> to vector<256x128xf32>
    %68 = arith.addf %66, %67 : vector<256x128xf32>
    %cst_17 = arith.constant 0.000000e+00 : f32
    %69 = vector.broadcast %cst_17 : f32 to vector<256x128xf32>
    %70 = arith.maximumf %68, %69 : vector<256x128xf32>
    %c256 = arith.constant 256 : index
    %c0_18 = arith.constant 0 : index
    %71 = vector.load %arg2[%c256, %c0_18] : memref<640x128xbf16, #tpu.memory_space<vmem>>, vector<128x128xbf16>
    %72 = arith.truncf %70 : vector<256x128xf32> to vector<256x128xbf16>
    %cst_19 = arith.constant dense<0.000000e+00> : vector<256x128xf32>
    %73 = tpu.matmul %72, %71, %cst_19 {dimension_numbers = #tpu.dot_dimension_numbers<[1], [0], [0], [1], [0, 0, 1, 1], [], []>} : vector<256x128xbf16>, vector<128x128xbf16>, vector<256x128xf32> -> vector<256x128xf32>
    %74 = vector.extract_strided_slice %0 {offsets = [6, 0], sizes = [1, 128], strides = [1, 1]} : vector<16x128xf32> to vector<1x128xf32>
    %75 = vector.broadcast %74 : vector<1x128xf32> to vector<256x128xf32>
    %76 = arith.addf %73, %75 : vector<256x128xf32>
    %77 = vector.extract_strided_slice %0 {offsets = [7, 0], sizes = [1, 128], strides = [1, 1]} : vector<16x128xf32> to vector<1x128xf32>
    %78 = vector.extract_strided_slice %0 {offsets = [8, 0], sizes = [1, 128], strides = [1, 1]} : vector<16x128xf32> to vector<1x128xf32>
    %79 = vector.extract_strided_slice %76 {offsets = [0, 32], sizes = [256, 1], strides = [1, 1]} : vector<256x128xf32> to vector<256x1xf32>
    %80 = arith.mulf %76, %76 : vector<256x128xf32>
    %cst_20 = arith.constant dense<0.000000e+00> : vector<256xf32>
    %81 = vector.multi_reduction <add>, %80, %cst_20 [1] : vector<256x128xf32> to vector<256xf32>
    %82 = vector.shape_cast %81 : vector<256xf32> to vector<256x1xf32>
    %cst_21 = arith.constant 3.125000e-02 : f32
    %83 = vector.broadcast %cst_21 : f32 to vector<256x1xf32>
    %84 = arith.mulf %79, %83 : vector<256x1xf32>
    %85 = arith.mulf %79, %79 : vector<256x1xf32>
    %86 = arith.subf %82, %85 : vector<256x1xf32>
    %cst_22 = arith.constant 3.125000e-02 : f32
    %87 = vector.broadcast %cst_22 : f32 to vector<256x1xf32>
    %88 = arith.mulf %86, %87 : vector<256x1xf32>
    %89 = arith.mulf %84, %84 : vector<256x1xf32>
    %90 = arith.subf %88, %89 : vector<256x1xf32>
    %91 = vector.broadcast %84 : vector<256x1xf32> to vector<256x128xf32>
    %92 = arith.subf %76, %91 : vector<256x128xf32>
    %cst_23 = arith.constant 9.99999974E-6 : f32
    %93 = vector.broadcast %cst_23 : f32 to vector<256x1xf32>
    %94 = arith.addf %90, %93 : vector<256x1xf32>
    %95 = math.rsqrt %94 : vector<256x1xf32>
    %96 = vector.broadcast %95 : vector<256x1xf32> to vector<256x128xf32>
    %97 = arith.mulf %92, %96 : vector<256x128xf32>
    %98 = vector.broadcast %77 : vector<1x128xf32> to vector<256x128xf32>
    %99 = arith.mulf %97, %98 : vector<256x128xf32>
    %100 = vector.broadcast %78 : vector<1x128xf32> to vector<256x128xf32>
    %101 = arith.addf %99, %100 : vector<256x128xf32>
    %cst_24 = arith.constant 0.000000e+00 : f32
    %102 = vector.broadcast %cst_24 : f32 to vector<256x128xf32>
    %103 = arith.maximumf %101, %102 : vector<256x128xf32>
    %c384 = arith.constant 384 : index
    %c0_25 = arith.constant 0 : index
    %104 = vector.load %arg2[%c384, %c0_25] : memref<640x128xbf16, #tpu.memory_space<vmem>>, vector<128x128xbf16>
    %105 = arith.truncf %103 : vector<256x128xf32> to vector<256x128xbf16>
    %cst_26 = arith.constant dense<0.000000e+00> : vector<256x128xf32>
    %106 = tpu.matmul %105, %104, %cst_26 {dimension_numbers = #tpu.dot_dimension_numbers<[1], [0], [0], [1], [0, 0, 1, 1], [], []>} : vector<256x128xbf16>, vector<128x128xbf16>, vector<256x128xf32> -> vector<256x128xf32>
    %107 = vector.extract_strided_slice %0 {offsets = [9, 0], sizes = [1, 128], strides = [1, 1]} : vector<16x128xf32> to vector<1x128xf32>
    %108 = vector.broadcast %107 : vector<1x128xf32> to vector<256x128xf32>
    %109 = arith.addf %106, %108 : vector<256x128xf32>
    %110 = vector.extract_strided_slice %0 {offsets = [10, 0], sizes = [1, 128], strides = [1, 1]} : vector<16x128xf32> to vector<1x128xf32>
    %111 = vector.extract_strided_slice %0 {offsets = [11, 0], sizes = [1, 128], strides = [1, 1]} : vector<16x128xf32> to vector<1x128xf32>
    %112 = vector.extract_strided_slice %109 {offsets = [0, 32], sizes = [256, 1], strides = [1, 1]} : vector<256x128xf32> to vector<256x1xf32>
    %113 = arith.mulf %109, %109 : vector<256x128xf32>
    %cst_27 = arith.constant dense<0.000000e+00> : vector<256xf32>
    %114 = vector.multi_reduction <add>, %113, %cst_27 [1] : vector<256x128xf32> to vector<256xf32>
    %115 = vector.shape_cast %114 : vector<256xf32> to vector<256x1xf32>
    %cst_28 = arith.constant 3.125000e-02 : f32
    %116 = vector.broadcast %cst_28 : f32 to vector<256x1xf32>
    %117 = arith.mulf %112, %116 : vector<256x1xf32>
    %118 = arith.mulf %112, %112 : vector<256x1xf32>
    %119 = arith.subf %115, %118 : vector<256x1xf32>
    %cst_29 = arith.constant 3.125000e-02 : f32
    %120 = vector.broadcast %cst_29 : f32 to vector<256x1xf32>
    %121 = arith.mulf %119, %120 : vector<256x1xf32>
    %122 = arith.mulf %117, %117 : vector<256x1xf32>
    %123 = arith.subf %121, %122 : vector<256x1xf32>
    %124 = vector.broadcast %117 : vector<256x1xf32> to vector<256x128xf32>
    %125 = arith.subf %109, %124 : vector<256x128xf32>
    %cst_30 = arith.constant 9.99999974E-6 : f32
    %126 = vector.broadcast %cst_30 : f32 to vector<256x1xf32>
    %127 = arith.addf %123, %126 : vector<256x1xf32>
    %128 = math.rsqrt %127 : vector<256x1xf32>
    %129 = vector.broadcast %128 : vector<256x1xf32> to vector<256x128xf32>
    %130 = arith.mulf %125, %129 : vector<256x128xf32>
    %131 = vector.broadcast %110 : vector<1x128xf32> to vector<256x128xf32>
    %132 = arith.mulf %130, %131 : vector<256x128xf32>
    %133 = vector.broadcast %111 : vector<1x128xf32> to vector<256x128xf32>
    %134 = arith.addf %132, %133 : vector<256x128xf32>
    %cst_31 = arith.constant 0.000000e+00 : f32
    %135 = vector.broadcast %cst_31 : f32 to vector<256x128xf32>
    %136 = arith.maximumf %134, %135 : vector<256x128xf32>
    %137 = arith.addf %136, %70 : vector<256x128xf32>
    %c512 = arith.constant 512 : index
    %c0_32 = arith.constant 0 : index
    %138 = vector.load %arg2[%c512, %c0_32] : memref<640x128xbf16, #tpu.memory_space<vmem>>, vector<128x128xbf16>
    %139 = arith.truncf %137 : vector<256x128xf32> to vector<256x128xbf16>
    %cst_33 = arith.constant dense<0.000000e+00> : vector<256x128xf32>
    %140 = tpu.matmul %139, %138, %cst_33 {dimension_numbers = #tpu.dot_dimension_numbers<[1], [0], [0], [1], [0, 0, 1, 1], [], []>} : vector<256x128xbf16>, vector<128x128xbf16>, vector<256x128xf32> -> vector<256x128xf32>
    %141 = vector.extract_strided_slice %0 {offsets = [12, 0], sizes = [1, 128], strides = [1, 1]} : vector<16x128xf32> to vector<1x128xf32>
    %142 = vector.broadcast %141 : vector<1x128xf32> to vector<256x128xf32>
    %143 = arith.addf %140, %142 : vector<256x128xf32>
    %c0_34 = arith.constant 0 : index
    %c0_35 = arith.constant 0 : index
    %144 = vector.load %arg4[%c0_34, %c0_35] : memref<256x128xf32, #tpu.memory_space<vmem>>, vector<256x128xf32>
    tpu.vector_store %arg4[%c0_34, %c0_35], %143 {strides = array<i32>} : memref<256x128xf32, #tpu.memory_space<vmem>>, vector<256x128xf32>,
    return
  }
  func.func @transform_0(%arg0: i32) -> (i32, i32) {
    %c0_i32 = arith.constant 0 : i32
    %c0_i32_0 = arith.constant 0 : i32
    return %arg0, %c0_i32 : i32, i32
  }
  func.func @transform_1(%arg0: i32) -> (i32, i32) {
    %c0_i32 = arith.constant 0 : i32
    %c0_i32_0 = arith.constant 0 : i32
    %c0_i32_1 = arith.constant 0 : i32
    return %c0_i32, %c0_i32_0 : i32, i32
  }
  func.func @transform_2(%arg0: i32) -> (i32, i32) {
    %c0_i32 = arith.constant 0 : i32
    %c0_i32_0 = arith.constant 0 : i32
    %c0_i32_1 = arith.constant 0 : i32
    return %c0_i32, %c0_i32_0 : i32, i32
  }
  func.func @transform_3(%arg0: i32) -> (i32, i32) {
    %c0_i32 = arith.constant 0 : i32
    %c0_i32_0 = arith.constant 0 : i32
    return %arg0, %c0_i32 : i32, i32
  }
}

</mosaic_0001>

<bundles_post_ra>
// kernel: a2c_forward.1
= control target key start
LH: loop header
LB: loop body
LE: loop exit
PB: predicated region body
PF: predicated region fallthrough
CT: control target
= control target key end

     0   :  { %8 = vsyncpa [#allocation3], 0  ;;  %s5452_s12 = smov [#allocation2]   ;;  %s9119_s0 = inlined_call_operand.vmem [shape: f32[256,8], index: 0, kind: input, shape index: {}]   ;;  %s9120_s1 = inlined_call_operand.hbm [shape: bf16[640,128], index: 1, kind: input, shape index: {}]   ;;  %s9121_s2 = inlined_call_operand.vmem [shape: f32[16,128], index: 2, kind: input, shape index: {}]   ;;  %s9122_s3 = inlined_call_operand.vmem [shape: f32[256,128], index: 3, kind: output, shape index: {}]  }
   0x1   :  { %s16_s13 = sshll.u32 %s5452_s12, 4  ;;  %s5428_s16 = scalar_lea.hbm %s9120_s1, 5120  ;;  %s17_s13 = int_to_ptr.vmem [resolvable:$true] %s16_s13 }
   0x2   :  { %p5429_p0 = scmp.ne.s32.totalorder %s9120_s1, %s5428_s16  ;;  %p5432_p1 = scmp.lt.u32.totalorder %s5428_s16, %s9120_s1 }
   0x4   :  { %p5434_p2 = pnand %p5432_p1, %p5429_p0 }
   0x6   :  { %5437 = shalt.err (!%p5434_p2)
}
   0x7   :  { %s5438_s21 = scalar_lea.vmem %s17_s13, 5120  ;;  %p5443_p4 = scmp.lt.s32.totalorder %s17_s13, %s17_s13 }
   0x8   :  { %p5439_p3 = scmp.ne.s32.totalorder %s17_s13, %s5438_s21  ;;  %p5444_p5 = scmp.lt.s32.totalorder %s5438_s21, %s5438_s21 }
   0xa   :  { %p5445_p6 = por %p5444_p5, %p5443_p4 }
   0xc   :  { %p5446_p7 = pnand %p5445_p6, %p5439_p3 }
   0xe   :  { %5449 = shalt.err (!%p5446_p7)
}
   0xf   :  { %s5453_s22 = smov 64   ;;  %s5454_s23 = smov 4  }
  0x10   :  { %22 = dma.hbm_to_vmem [thread:$0]  %s9120_s1, 5120, %s17_s13, [#allocation3], %s5453_s22, %s5453_s22, %s5454_s23  }
  0x11   :  { %5450 = dma.done.wait [#allocation3], 5120  }
  0x12   :  { %5451 = vsyncadd [#allocation3], 4294962176  ;;  %vm229_vm0 = vcmask 1043456   ;;  %v159_v0 = vld [vmem:[#allocation2] sm:$0xf]  ;;  %v32_v2 = vld [vmem:[%s9119_s0 + $0x8] sm:$0xff] }
  0x13   :  { %v31_v1 = vld [vmem:[%s9119_s0] sm:$0xff]  ;;  %5064 = vmatprep.subr.msk.bf16.mxu0 %vm229_vm0, %v159_v0  ;;  %5065 = vmatprep.subr.msk.bf16.mxu1 %vm229_vm0, %v159_v0  ;;  %v231_v3 = vsel %vm229_vm0, %v159_v0, 0  ;;  %v64_v5 = vadd.f32 1e-10, %v32_v2  ;;  %v48_v7 = vld [vmem:[%s9119_s0 + $0x88] sm:$0xff]  ;;  %v33_v9 = vld [vmem:[%s9119_s0 + $0x10] sm:$0xff] }
  0x14   :  { %v63_v4 = vadd.f32 1e-10, %v31_v1  ;;  %v47_v6 = vld [vmem:[%s9119_s0 + $0x80] sm:$0xff]  ;;  %4837 = vmatpush3.bf16.msra.mxu0 %v231_v3  ;;  %5063 = vmatpush3.bf16.msra.mxu1 %v231_v3  ;;  %v34_v10 = vld [vmem:[%s9119_s0 + $0x18] sm:$0xff]  ;;  %v80_v11 = vadd.f32 1e-10, %v48_v7 }
  0x15   :  { %v79_v8 = vadd.f32 1e-10, %v47_v6  ;;  %v65_v12 = vadd.f32 1e-10, %v33_v9  ;;  %v66_v13 = vadd.f32 1e-10, %v34_v10 }
  0x16   :  { %5104 = vlog2.f32 %v63_v4  ;;  %v49_v14 = vld [vmem:[%s9119_s0 + $0x90] sm:$0xff]  ;;  %v50_v15 = vld [vmem:[%s9119_s0 + $0x98] sm:$0xff]  ;;  %v35_v16 = vld [vmem:[%s9119_s0 + $0x20] sm:$0xff]  ;;  %vm180_vm1 = vcmask 64512  }
  0x17   :  { %5106 = vlog2.f32 %v64_v5  ;;  %v81_v17 = vadd.f32 1e-10, %v49_v14  ;;  %v82_v18 = vadd.f32 1e-10, %v50_v15  ;;  %v36_v19 = vld [vmem:[%s9119_s0 + $0x28] sm:$0xff]  ;;  %v37_v20 = vld [vmem:[%s9119_s0 + $0x30] sm:$0xff] }
  0x18   :  { %5108 = vlog2.f32 %v79_v8  ;;  %v67_v21 = vadd.f32 1e-10, %v35_v16  ;;  %v68_v22 = vadd.f32 1e-10, %v36_v19  ;;  %v38_v23 = vld [vmem:[%s9119_s0 + $0x38] sm:$0xff]  ;;  %v51_v24 = vld [vmem:[%s9119_s0 + $0xa0] sm:$0xff] }
  0x19   :  { %5110 = vlog2.f32 %v80_v11  ;;  %v69_v25 = vadd.f32 1e-10, %v37_v20  ;;  %v70_v26 = vadd.f32 1e-10, %v38_v23  ;;  %v52_v27 = vld [vmem:[%s9119_s0 + $0xa8] sm:$0xff]  ;;  %v53_v28 = vld [vmem:[%s9119_s0 + $0xb0] sm:$0xff] }
  0x1a   :  { %5112 = vlog2.f32 %v65_v12  ;;  %v83_v29 = vadd.f32 1e-10, %v51_v24  ;;  %v84_v30 = vadd.f32 1e-10, %v52_v27  ;;  %v54_v31 = vld [vmem:[%s9119_s0 + $0xb8] sm:$0xff]  ;;  %v39_v32 = vld [vmem:[%s9119_s0 + $0x40] sm:$0xff] }
  0x1b   :  { %5114 = vlog2.f32 %v66_v13  ;;  %v85_v33 = vadd.f32 1e-10, %v53_v28  ;;  %v86_v34 = vadd.f32 1e-10, %v54_v31  ;;  %v40_v35 = vld [vmem:[%s9119_s0 + $0x48] sm:$0xff]  ;;  %v41_v36 = vld [vmem:[%s9119_s0 + $0x50] sm:$0xff] }
  0x1c   :  { %5116 = vlog2.f32 %v81_v17  ;;  %v71_v37 = vadd.f32 1e-10, %v39_v32  ;;  %v72_v38 = vadd.f32 1e-10, %v40_v35  ;;  %v42_v39 = vld [vmem:[%s9119_s0 + $0x58] sm:$0xff]  ;;  %v55_v40 = vld [vmem:[%s9119_s0 + $0xc0] sm:$0xff] }
  0x1d   :  { %5118 = vlog2.f32 %v82_v18  ;;  %v73_v41 = vadd.f32 1e-10, %v41_v36  ;;  %v74_v42 = vadd.f32 1e-10, %v42_v39  ;;  %v56_v43 = vld [vmem:[%s9119_s0 + $0xc8] sm:$0xff]  ;;  %v57_v44 = vld [vmem:[%s9119_s0 + $0xd0] sm:$0xff] }
  0x1e   :  { %5120 = vlog2.f32 %v67_v21  ;;  %v87_v45 = vadd.f32 1e-10, %v55_v40  ;;  %v88_v46 = vadd.f32 1e-10, %v56_v43  ;;  %v58_v47 = vld [vmem:[%s9119_s0 + $0xd8] sm:$0xff] }
  0x1f   :  { %5122 = vlog2.f32 %v68_v22  ;;  %v89_v49 = vadd.f32 1e-10, %v57_v44  ;;  %v90_v50 = vadd.f32 1e-10, %v58_v47  ;;  %v43_v47 = vld [vmem:[%s9119_s0 + $0x60] sm:$0xff] }
  0x20   :  { %v5105_v48 = vpop.eup %5104  ;;  %5124 = vlog2.f32 %v69_v25 }
  0x21   :  { %v5107_v51 = vpop.eup %5106  ;;  %v96_v52 = vmul.f32 0.6931472, %v5105_v48  ;;  %5126 = vlog2.f32 %v70_v26  ;;  %v44_v48 = vld [vmem:[%s9119_s0 + $0x68] sm:$0xff] }
  0x22   :  { %v5109_v53 = vpop.eup %5108  ;;  %v98_v54 = vmul.f32 0.6931472, %v5107_v51  ;;  %5128 = vlog2.f32 %v83_v29  ;;  %v76_v51 = vadd.f32 1e-10, %v44_v48 }
  0x23   :  { %v5111_v55 = vpop.eup %5110  ;;  %v128_v56 = vmul.f32 0.6931472, %v5109_v53  ;;  %5130 = vlog2.f32 %v84_v30  ;;  %v59_v53 = vld [vmem:[%s9119_s0 + $0xe0] sm:$0xff] }
  0x24   :  { %v5113_v57 = vpop.eup %5112  ;;  %v160_v58 = vpack.c.bf16 %v98_v54, %v96_v52  ;;  %v130_v59 = vmul.f32 0.6931472, %v5111_v55  ;;  %5132 = vlog2.f32 %v85_v33  ;;  %v46_v52 = vld [vmem:[%s9119_s0 + $0x78] sm:$0xff] }
  0x25   :  { %v5115_v60 = vpop.eup %5114  ;;  %v100_v61 = vmul.f32 0.6931472, %v5113_v57  ;;  %5134 = vlog2.f32 %v86_v34  ;;  %v78_v55 = vadd.f32 1e-10, %v46_v52  ;;  %v61_v57 = vld [vmem:[%s9119_s0 + $0xf0] sm:$0xff] }
  0x26   :  { %v5117_v62 = vpop.eup %5116  ;;  %4838 = vmatprep.mubr.msk.bf16.mxu0 %vm180_vm1, %v160_v58  ;;  %v168_v63 = vpack.c.bf16 %v130_v59, %v128_v56  ;;  %v102_v0 = vmul.f32 0.6931472, %v5115_v60  ;;  %5136 = vlog2.f32 %v71_v37  ;;  %v60_v56 = vld [vmem:[%s9119_s0 + $0xe8] sm:$0xff]  ;;  %v91_v58 = vadd.f32 1e-10, %v59_v53  ;;  %v62_v59 = vld [vmem:[%s9119_s0 + $0xf8] sm:$0xff] }
  0x27   :  { %v5119_v1 = vpop.eup %5118  ;;  %v132_v2 = vmul.f32 0.6931472, %v5117_v62  ;;  %5138 = vlog2.f32 %v72_v38  ;;  %v92_v60 = vadd.f32 1e-10, %v60_v56  ;;  %v94_v62 = vadd.f32 1e-10, %v62_v59 }
  0x28   :  { %v5121_v3 = vpop.eup %5120  ;;  %4854 = vmatprep.mubr.msk.bf16.mxu1 %vm180_vm1, %v168_v63  ;;  %v161_v4 = vpack.c.bf16 %v102_v0, %v100_v61  ;;  %v134_v5 = vmul.f32 0.6931472, %v5119_v1  ;;  %5140 = vlog2.f32 %v73_v41  ;;  %v93_v61 = vadd.f32 1e-10, %v61_v57 }
  0x29   :  { %v5123_v6 = vpop.eup %5122  ;;  %v104_v7 = vmul.f32 0.6931472, %v5121_v3  ;;  %5142 = vlog2.f32 %v74_v42 }
  0x2a   :  { %v5125_v8 = vpop.eup %5124  ;;  %4839 = vmatmul.mubr.msk.bf16.vlgmr.msra.gmra.mrb[0].mxu0 %vm180_vm1, %v161_v4  ;;  %v169_v9 = vpack.c.bf16 %v134_v5, %v132_v2  ;;  %v106_v10 = vmul.f32 0.6931472, %v5123_v6  ;;  %5144 = vlog2.f32 %v87_v45 }
  0x2b   :  { %v5127_v11 = vpop.eup %5126  ;;  %v108_v12 = vmul.f32 0.6931472, %v5125_v8  ;;  %5146 = vlog2.f32 %v88_v46  ;;  %v5455_v46 = vmov 32  }
  0x2c   :  { %v5129_v13 = vpop.eup %5128  ;;  %4855 = vmatmul.mubr.msk.bf16.vlgmr.msra.gmra.mrb[0].mxu1 %vm180_vm1, %v169_v9  ;;  %v162_v14 = vpack.c.bf16 %v106_v10, %v104_v7  ;;  %v110_v15 = vmul.f32 0.6931472, %v5127_v11  ;;  %5148 = vlog2.f32 %v89_v49  ;;  %5070 = vset.pattern.permute.xlu1 %v5455_v46  ;;  %v45_v49 = vld [vmem:[%s9119_s0 + $0x70] sm:$0xff] }
  0x2d   :  { %v5131_v16 = vpop.eup %5130  ;;  %v136_v17 = vmul.f32 0.6931472, %v5129_v13  ;;  %5150 = vlog2.f32 %v90_v50  ;;  %5071 = vset.pattern.permute.xlu0 %v5455_v46  ;;  %v75_v50 = vadd.f32 1e-10, %v43_v47  ;;  %v77_v54 = vadd.f32 1e-10, %v45_v49 }
  0x2e   :  { %v5133_v18 = vpop.eup %5132  ;;  %4842 = vmatprep.mubr.msk.bf16.mxu0 %vm180_vm1, %v162_v14  ;;  %v163_v19 = vpack.c.bf16 %v110_v15, %v108_v12  ;;  %v138_v20 = vmul.f32 0.6931472, %v5131_v16 }
  0x2f   :  { %v5135_v21 = vpop.eup %5134  ;;  %v140_v22 = vmul.f32 0.6931472, %v5133_v18  ;;  %5152 = vlog2.f32 %v75_v50 }
  0x30   :  { %v5137_v23 = vpop.eup %5136  ;;  %v170_v24 = vpack.c.bf16 %v138_v20, %v136_v17  ;;  %v142_v25 = vmul.f32 0.6931472, %v5135_v21  ;;  %5154 = vlog2.f32 %v76_v51 }
  0x31   :  { %v5139_v26 = vpop.eup %5138  ;;  %v112_v27 = vmul.f32 0.6931472, %v5137_v23  ;;  %5156 = vlog2.f32 %v77_v54 }
  0x32   :  { %v5141_v28 = vpop.eup %5140  ;;  %4843 = vmatmul.mubr.msk.bf16.gmra.mrb[4].mxu0 %vm180_vm1, %v163_v19  ;;  %4858 = vmatprep.mubr.msk.bf16.mxu1 %vm180_vm1, %v170_v24  ;;  %v171_v29 = vpack.c.bf16 %v142_v25, %v140_v22  ;;  %v114_v30 = vmul.f32 0.6931472, %v5139_v26  ;;  %5158 = vlog2.f32 %v78_v55  ;;  %v176_v19 = vlaneseq  ;;  %v29_v22 = vld [vmem:[%s9121_s2] sm:$0xff] }
  0x33   :  { %v5143_v31 = vpop.eup %5142  ;;  %v116_v32 = vmul.f32 0.6931472, %v5141_v28  ;;  %5160 = vlog2.f32 %v91_v58 }
  0x34   :  { %v5145_v33 = vpop.eup %5144  ;;  %4859 = vmatmul.mubr.msk.bf16.gmra.mrb[4].mxu1 %vm180_vm1, %v171_v29  ;;  %v164_v34 = vpack.c.bf16 %v114_v30, %v112_v27  ;;  %v118_v35 = vmul.f32 0.6931472, %v5143_v31  ;;  %5162 = vlog2.f32 %v92_v60  ;;  %v5600_v20 = vshrl.u32 %v176_v19, 7 }
  0x35   :  { %v5147_v36 = vpop.eup %5146  ;;  %v144_v37 = vmul.f32 0.6931472, %v5145_v33  ;;  %5164 = vlog2.f32 %v93_v61 }
  0x36   :  { %v5149_v38 = vpop.eup %5148  ;;  %4846 = vmatprep.mubr.msk.bf16.mxu0 %vm180_vm1, %v164_v34  ;;  %v165_v39 = vpack.c.bf16 %v118_v35, %v116_v32  ;;  %v146_v40 = vmul.f32 0.6931472, %v5147_v36  ;;  %5166 = vlog2.f32 %v94_v62  ;;  %9400 = vst [vmem:[#allocation5_spill] sm:$0xff] %v5600_v20  ;;  %v9123_v21 = vsub.s32 0, %v5600_v20 }
  0x37   :  { %v5151_v41 = vpop.eup %5150  ;;  %v148_v42 = vmul.f32 0.6931472, %v5149_v38 }
  0x38   :  { %v172_v43 = vpack.c.bf16 %v146_v40, %v144_v37  ;;  %v150_v44 = vmul.f32 0.6931472, %v5151_v41  ;;  %v5608_v23 = vrot.slane %v29_v22, %v9123_v21 }
  0x39   :  { %v5153_v63 = vpop.eup %5152 }
  0x3a   :  { %4847 = vmatmul.mubr.msk.bf16.gmra.mrb[8].mxu0 %vm180_vm1, %v165_v39  ;;  %4862 = vmatprep.mubr.msk.bf16.mxu1 %vm180_vm1, %v172_v43  ;;  %v173_v45 = vpack.c.bf16 %v150_v44, %v148_v42  ;;  %v5155_v0 = vpop.eup %5154  ;;  %v120_v1 = vmul.f32 0.6931472, %v5153_v63 }
  0x3b   :  { %v5157_v2 = vpop.eup %5156  ;;  %v122_v3 = vmul.f32 0.6931472, %v5155_v0 }
  0x3c   :  { %4863 = vmatmul.mubr.msk.bf16.gmra.mrb[8].mxu1 %vm180_vm1, %v173_v45  ;;  %v5159_v4 = vpop.eup %5158  ;;  %v124_v5 = vmul.f32 0.6931472, %v5157_v2 }
  0x3d   :  { %v5161_v6 = vpop.eup %5160  ;;  %v166_v7 = vpack.c.bf16 %v122_v3, %v120_v1  ;;  %v126_v8 = vmul.f32 0.6931472, %v5159_v4 }
  0x3e   :  { %v5163_v9 = vpop.eup %5162  ;;  %v152_v10 = vmul.f32 0.6931472, %v5161_v6 }
  0x3f   :  { %v5165_v11 = vpop.eup %5164  ;;  %4850 = vmatprep.mubr.msk.bf16.mxu0 %vm180_vm1, %v166_v7  ;;  %v167_v12 = vpack.c.bf16 %v126_v8, %v124_v5  ;;  %v154_v13 = vmul.f32 0.6931472, %v5163_v9 }
  0x40   :  { %v5167_v14 = vpop.eup %5166  ;;  %v156_v15 = vmul.f32 0.6931472, %v5165_v11 }
  0x41   :  { %v174_v16 = vpack.c.bf16 %v154_v13, %v152_v10  ;;  %v158_v17 = vmul.f32 0.6931472, %v5167_v14 }
  0x42   :  { %4851 = vmatmul.mubr.msk.bf16.gmra.mrb[12].mxu0 %vm180_vm1, %v167_v12 }
  0x43   :  { %4866 = vmatprep.mubr.msk.bf16.mxu1 %vm180_vm1, %v174_v16  ;;  %v175_v18 = vpack.c.bf16 %v158_v17, %v156_v15 }
  0x45   :  { %4867 = vmatmul.mubr.msk.bf16.gmra.mrb[12].mxu1 %vm180_vm1, %v175_v18 }
  0xfd   :  { %v4840_v24 = vpop.f32.mrb[0].mxu0 }
  0xfe   :  { %v5611_v25 = vadd.f32 %v4840_v24, %v5608_v23  ;;  %v267_v26 = vpop.f32.mrb[1].mxu0 }
  0xff   :  { %v4856_v27 = vpop.f32.mrb[0].mxu1  ;;  %v4841_v28 = vpop.f32.mrb[2].mxu0  ;;  %v5621_v34 = vadd.f32 %v267_v26, %v5608_v23 }
 0x100   :  { %9401 = vst [vmem:[#allocation6_spill] sm:$0xff] %v5611_v25  ;;  %v5614_v29 = vadd.f32 %v4856_v27, %v5608_v23  ;;  %v270_v30 = vpop.f32.mrb[3].mxu0  ;;  %v5618_v31 = vmul.f32 %v5611_v25, %v5611_v25  ;;  %v331_v32 = vpop.f32.mrb[1].mxu1  ;;  %v5651_v48 = vmul.f32 0.03125, %v5611_v25  ;;  %v5674_v54 = vadd.f32 %v4841_v28, %v5608_v23 }
 0x101   :  { %v4857_v33 = vpop.f32.mrb[2].mxu1  ;;  %9403 = vst [vmem:[#allocation8_spill] sm:$0xff] %v5621_v34  ;;  %v5630_v37 = vadd.f32 %v331_v32, %v5608_v23  ;;  %v5634_v39 = vmul.f32 %v5621_v34, %v5621_v34  ;;  %v5666_v52 = vmul.f32 0.03125, %v5621_v34  ;;  %v5683_v57 = vadd.f32 %v270_v30, %v5608_v23 }
 0x102   :  { %9402 = vst [vmem:[#allocation7_spill] sm:$0xff] %v5614_v29  ;;  %v5625_v35 = vmul.f32 %v5614_v29, %v5614_v29  ;;  %430 = vadd.xlane.f32.xlu1 %v5618_v31  ;;  %v334_v36 = vpop.f32.mrb[3].mxu1  ;;  %v5655_v49 = vmul.f32 0.03125, %v5614_v29  ;;  %v5663_v51 = vadd.f32 %v4857_v33, %v5608_v23  ;;  %9406 = vst [vmem:[#allocation11_spill] sm:$0xff] %v5674_v54  ;;  %v5703_v63 = vmul.f32 0.03125, %v5674_v54 }
 0x103   :  { %9404 = vst [vmem:[#allocation9_spill] sm:$0xff] %v5630_v37  ;;  %v5641_v43 = vmul.f32 %v5630_v37, %v5630_v37  ;;  %v5659_v50 = vmul.f32 0.03125, %v5630_v37  ;;  %v5678_v55 = vmul.f32 %v5674_v54, %v5674_v54  ;;  %9407 = vst [vmem:[#allocation12_spill] sm:$0xff] %v5683_v57  ;;  %v5695_v60 = vmul.f32 %v5683_v57, %v5683_v57 }
 0x104   :  { %462 = vadd.xlane.f32.xlu0 %v5625_v35  ;;  %9405 = vst [vmem:[#allocation10_spill] sm:$0xff] %v5663_v51  ;;  %v5670_v53 = vmul.f32 0.03125, %v5663_v51  ;;  %v5688_v58 = vmul.f32 %v5663_v51, %v5663_v51  ;;  %v5707_v0 = vadd.f32 %v334_v36, %v5608_v23  ;;  %v5759_v15 = vmul.f32 0.03125, %v5683_v57 }
 0x105   :  { %v4844_v38 = vpop.f32.mrb[4].mxu0 }
 0x106   :  { %v283_v40 = vpop.f32.mrb[5].mxu0  ;;  %9408 = vst [vmem:[#allocation13_spill] sm:$0xff] %v5707_v0  ;;  %v5714_v3 = vmul.f32 0.03125, %v5707_v0  ;;  %v5722_v6 = vadd.f32 %v4844_v38, %v5608_v23  ;;  %v5729_v8 = vmul.f32 %v5707_v0, %v5707_v0 }
 0x107   :  { %v4860_v41 = vpop.f32.mrb[4].mxu1  ;;  %v5636_v42 = vpop.f32.mrb[6].mxu0  ;;  %v5738_v10 = vadd.f32 %v283_v40, %v5608_v23 }
 0x108   :  { %426 = vadd.xlane.f32.xlu0 %v5634_v39  ;;  %v347_v44 = vpop.f32.mrb[5].mxu1  ;;  %v5643_v45 = vpop.f32.mrb[7].mxu0  ;;  %9409 = vst [vmem:[#allocation14_spill] sm:$0xff] %v5722_v6  ;;  %v5725_v7 = vadd.f32 %v4860_v41, %v5608_v23  ;;  %v5733_v9 = vmul.f32 %v5722_v6, %v5722_v6  ;;  %v5763_v16 = vmul.f32 0.03125, %v5722_v6  ;;  %v5780_v24 = vadd.f32 %v5636_v42, %v5608_v23 }
 0x109   :  { %v5645_v46 = vpop.f32.mrb[6].mxu1  ;;  %9411 = vst [vmem:[#allocation16_spill] sm:$0xff] %v5738_v10  ;;  %v5746_v12 = vadd.f32 %v347_v44, %v5608_v23  ;;  %v5750_v13 = vmul.f32 %v5738_v10, %v5738_v10  ;;  %v5773_v19 = vmul.f32 0.03125, %v5738_v10  ;;  %v5800_v33 = vadd.f32 %v5643_v45, %v5608_v23 }
 0x10a   :  { %v5647_v47 = vpop.f32.mrb[7].mxu1  ;;  %9410 = vst [vmem:[#allocation15_spill] sm:$0xff] %v5725_v7  ;;  %v5742_v11 = vmul.f32 %v5725_v7, %v5725_v7  ;;  %v5767_v17 = vmul.f32 0.03125, %v5725_v7  ;;  %9413 = vst [vmem:[#allocation18_spill] sm:$0xff] %v5780_v24  ;;  %v5790_v28 = vadd.f32 %v5645_v46, %v5608_v23  ;;  %v5793_v30 = vmul.f32 0.03125, %v5780_v24 }
 0x10b   :  { %9412 = vst [vmem:[#allocation17_spill] sm:$0xff] %v5746_v12  ;;  %v5755_v14 = vmul.f32 %v5746_v12, %v5746_v12  ;;  %v5783_v26 = vmul.f32 0.03125, %v5746_v12  ;;  %9415 = vst [vmem:[#allocation20_spill] sm:$0xff] %v5800_v33  ;;  %v5810_v40 = vadd.f32 %v5647_v47, %v5608_v23  ;;  %v5813_v41 = vmul.f32 0.03125, %v5800_v33 }
 0x10c   :  { %458 = vadd.xlane.f32.xlu0 %v5641_v43  ;;  %9414 = vst [vmem:[#allocation19_spill] sm:$0xff] %v5790_v28  ;;  %v5803_v36 = vmul.f32 0.03125, %v5790_v28  ;;  %v5828_v47 = vmul.f32 %v5780_v24, %v5780_v24  ;;  %v5837_v7 = vmul.f32 %v5790_v28, %v5790_v28  ;;  %v5846_v12 = vmul.f32 %v5800_v33, %v5800_v33 }
 0x10d   :  { %v5680_v56 = vpop.f32.mrb[8].mxu0  ;;  %9416 = vst [vmem:[#allocation21_spill] sm:$0xff] %v5810_v40  ;;  %v5821_v45 = vmul.f32 0.03125, %v5810_v40 }
 0x10e   :  { %v5698_v61 = vpop.f32.mrb[9].mxu0  ;;  %v5833_v21 = vadd.f32 %v5680_v56, %v5608_v23 }
 0x10f   :  { %v5690_v59 = vpop.f32.mrb[8].mxu1  ;;  %v5709_v1 = vpop.f32.mrb[10].mxu0  ;;  %v5856_v56 = vadd.f32 %v5698_v61, %v5608_v23 }
 0x110   :  { %v5700_v62 = vpop.f32.mrb[9].mxu1  ;;  %v5711_v2 = vpop.f32.mrb[11].mxu0  ;;  %9417 = vst [vmem:[#allocation22_spill] sm:$0xff] %v5833_v21  ;;  %v5842_v51 = vadd.f32 %v5690_v59, %v5608_v23  ;;  %v5850_v29 = vmul.f32 %v5833_v21, %v5833_v21  ;;  %v5860_v59 = vmul.f32 %v5810_v40, %v5810_v40  ;;  %v5883_v37 = vmul.f32 0.03125, %v5833_v21 }
 0x111   :  { %v5717_v4 = vpop.f32.mrb[10].mxu1  ;;  %9419 = vst [vmem:[#allocation24_spill] sm:$0xff] %v5856_v56  ;;  %v5870_v0 = vadd.f32 %v5700_v62, %v5608_v23  ;;  %v5874_v61 = vmul.f32 %v5856_v56, %v5856_v56  ;;  %v5891_v10 = vmul.f32 0.03125, %v5856_v56  ;;  %v5896_v24 = vadd.f32 %v5709_v1, %v5608_v23 }
 0x112   :  { %v5719_v5 = vpop.f32.mrb[11].mxu1  ;;  %9418 = vst [vmem:[#allocation23_spill] sm:$0xff] %v5842_v51  ;;  %v5864_v28 = vmul.f32 %v5842_v51, %v5842_v51  ;;  %v5887_v62 = vmul.f32 0.03125, %v5842_v51  ;;  %v5904_v51 = vadd.f32 %v5717_v4, %v5608_v23  ;;  %v5912_v56 = vadd.f32 %v5711_v2, %v5608_v23 }
 0x113   :  { %662 = vperm.xlu1 %5070, %v5651_v48   ;;  %9420 = vst [vmem:[#allocation25_spill] sm:$0xff] %v5870_v0  ;;  %v5879_v40 = vmul.f32 %v5870_v0, %v5870_v0  ;;  %9421 = vst [vmem:[#allocation26_spill] sm:$0xff] %v5896_v24  ;;  %v5899_v33 = vmul.f32 0.03125, %v5870_v0  ;;  %v5907_v21 = vmul.f32 0.03125, %v5896_v24  ;;  %v5920_v0 = vadd.f32 %v5719_v5, %v5608_v23 }
 0x114   :  { %9422 = vst [vmem:[#allocation27_spill] sm:$0xff] %v5904_v51  ;;  %9423 = vst [vmem:[#allocation28_spill] sm:$0xff] %v5912_v56  ;;  %v5915_v1 = vmul.f32 0.03125, %v5904_v51  ;;  %v5923_v4 = vmul.f32 0.03125, %v5912_v56  ;;  %v5936_v54 = vmul.f32 %v5896_v24, %v5896_v24  ;;  %v5945_v25 = vmul.f32 %v5904_v51, %v5904_v51 }
 0x115   :  { %v5769_v18 = vpop.f32.mrb[12].mxu0  ;;  %9425 = vst [vmem:[#allocation30_spill] sm:$0xff] %v5920_v0  ;;  %v5927_v6 = vmul.f32 0.03125, %v5920_v0  ;;  %v5956_v24 = vmul.f32 %v5912_v56, %v5912_v56 }
 0x116   :  { %v5785_v27 = vpop.f32.mrb[13].mxu0  ;;  %9424 = vst [vmem:[#allocation29_spill] sm:$0xff] %v5915_v1  ;;  %9426 = vst [vmem:[#allocation31_spill] sm:$0xff] %v5923_v4  ;;  %v5941_v5 = vadd.f32 %v5769_v18, %v5608_v23 }
 0x117   :  { %742 = vperm.xlu1 %5070, %v5655_v49   ;;  %v5806_v38 = vpop.f32.mrb[14].mxu0  ;;  %9427 = vst [vmem:[#allocation32_spill] sm:$0xff] %v5927_v6  ;;  %9432 = vst [vmem:[#allocation37_spill] sm:$0xff] %v5956_v24 }
 0x118   :  { %v5775_v22 = vpop.f32.mrb[12].mxu1  ;;  %v5816_v42 = vpop.f32.mrb[15].mxu0  ;;  %9429 = vst [vmem:[#allocation34_spill] sm:$0xff] %v5941_v5  ;;  %v5960_v18 = vmul.f32 %v5941_v5, %v5941_v5 }
 0x119   :  { %v5796_v32 = vpop.f32.mrb[13].mxu1 }
 0x11a   :  { %v5818_v44 = vpop.f32.mrb[14].mxu1  ;;  %9433 = vst [vmem:[#allocation38_spill] sm:$0xff] %v5960_v18 }
 0x11b   :  { %732 = vperm.xlu1 %5070, %v5659_v50   ;;  %v5824_v46 = vpop.f32.mrb[15].mxu1 }
 0x122   :  { %652 = vperm.xlu0 %5071, %v5666_v52  }
 0x126   :  { %747 = vperm.xlu0 %5071, %v5670_v53  }
 0x13f   :  { %432 = vadd.xlane.f32.xlu1 %v5678_v55 }
 0x143   :  { %464 = vadd.xlane.f32.xlu1 %v5688_v58 }
 0x145   :  { %428 = vadd.xlane.f32.xlu0 %v5695_v60 }
 0x154   :  { %667 = vperm.xlu1 %5070, %v5703_v63  }
 0x15b   :  { %737 = vperm.xlu0 %5071, %v5714_v3  }
 0x178   :  { %460 = vadd.xlane.f32.xlu1 %v5729_v8 }
 0x17a   :  { %438 = vadd.xlane.f32.xlu0 %v5733_v9 }
 0x17e   :  { %470 = vadd.xlane.f32.xlu0 %v5742_v11 }
 0x182   :  { %434 = vadd.xlane.f32.xlu0 %v5750_v13 }
 0x186   :  { %466 = vadd.xlane.f32.xlu0 %v5755_v14 }
 0x189   :  { %657 = vperm.xlu1 %5070, %v5759_v15  }
 0x18d   :  { %682 = vperm.xlu1 %5070, %v5763_v16  }
 0x18f   :  { %v5930_v2 = vpop.xlane.xlu1 %430 }
 0x191   :  { %762 = vperm.xlu1 %5070, %v5767_v17  }
 0x193   :  { %v5932_v57 = vpop.permute.xlu1 %662 }
 0x194   :  { %9428 = vst [vmem:[#allocation33_spill] sm:$0xff] %v5932_v57  ;;  %v5952_v57 = vadd.f32 %v5775_v22, %v5608_v23  ;;  %v5972_v22 = vmul.f32 %v5920_v0, %v5920_v0 }
 0x195   :  { %672 = vperm.xlu1 %5070, %v5773_v19  }
 0x196   :  { %9431 = vst [vmem:[#allocation36_spill] sm:$0xff] %v5952_v57  ;;  %9436 = vst [vmem:[#allocation41_spill] sm:$0xff] %v5972_v22  ;;  %v5976_v56 = vmul.f32 %v5952_v57, %v5952_v57 }
 0x197   :  { %v5947_v20 = vpop.permute.xlu1 %742 }
 0x198   :  { %9430 = vst [vmem:[#allocation35_spill] sm:$0xff] %v5947_v20  ;;  %v5968_v20 = vadd.f32 %v5785_v27, %v5608_v23  ;;  %9437 = vst [vmem:[#allocation42_spill] sm:$0xff] %v5976_v56 }
 0x199   :  { %752 = vperm.xlu1 %5070, %v5783_v26  }
 0x19a   :  { %9435 = vst [vmem:[#allocation40_spill] sm:$0xff] %v5968_v20  ;;  %v5988_v27 = vmul.f32 %v5968_v20, %v5968_v20 }
 0x19b   :  { %v5963_v51 = vpop.permute.xlu1 %732 }
 0x19c   :  { %687 = vperm.xlu0 %5071, %v5793_v30   ;;  %9434 = vst [vmem:[#allocation39_spill] sm:$0xff] %v5963_v51  ;;  %v5984_v51 = vadd.f32 %v5796_v32, %v5608_v23  ;;  %9439 = vst [vmem:[#allocation44_spill] sm:$0xff] %v5988_v27  ;;  %v6001_v32 = vpop.xlane.xlu0 %462 }
 0x19e   :  { %9438 = vst [vmem:[#allocation43_spill] sm:$0xff] %v5984_v51  ;;  %v5993_v0 = vmul.f32 %v5984_v51, %v5984_v51 }
 0x1a0   :  { %767 = vperm.xlu0 %5071, %v5803_v36   ;;  %9440 = vst [vmem:[#allocation45_spill] sm:$0xff] %v5993_v0 }
 0x1a4   :  { %677 = vperm.xlu0 %5071, %v5813_v41  }
 0x1a8   :  { %757 = vperm.xlu0 %5071, %v5821_v45  }
 0x1bd   :  { %440 = vadd.xlane.f32.xlu1 %v5828_v47 }
 0x1c1   :  { %472 = vadd.xlane.f32.xlu1 %v5837_v7 }
 0x1c5   :  { %436 = vadd.xlane.f32.xlu1 %v5846_v12 }
 0x1c7   :  { %446 = vadd.xlane.f32.xlu0 %v5850_v29 }
 0x1c9   :  { %468 = vadd.xlane.f32.xlu1 %v5860_v59 }
 0x1cb   :  { %478 = vadd.xlane.f32.xlu0 %v5864_v28 }
 0x1cc   :  { %v5979_v34 = vpop.xlane.xlu1 %432 }
 0x1cf   :  { %442 = vadd.xlane.f32.xlu0 %v5874_v61 }
 0x1d3   :  { %474 = vadd.xlane.f32.xlu0 %v5879_v40 }
 0x1da   :  { %702 = vperm.xlu1 %5070, %v5883_v37  }
 0x1de   :  { %782 = vperm.xlu1 %5070, %v5887_v62  }
 0x1e2   :  { %692 = vperm.xlu1 %5070, %v5891_v10  }
 0x1e6   :  { %772 = vperm.xlu1 %5070, %v5899_v33  }
 0x1e9   :  { %707 = vperm.xlu0 %5071, %v5907_v21  }
 0x1ed   :  { %787 = vperm.xlu0 %5071, %v5915_v1  }
 0x1f1   :  { %697 = vperm.xlu0 %5071, %v5923_v4  }
 0x1f5   :  { %777 = vperm.xlu0 %5071, %v5927_v6   ;;  %v465_v6 = vpop.xlane.xlu1 %464 }
 0x1f6   :  { %v541_v4 = vsub.f32 %v465_v6, %v5688_v58  ;;  %v605_v58 = vmul.f32 %v5670_v53, %v5670_v53  ;;  %v6025_v6 = vmul.f32 0.03125, %v5984_v51  ;;  %v603_v53 = vmul.f32 %v5714_v3, %v5714_v3 }
 0x1f7   :  { %v6056_v3 = vadd.f32 %v5824_v46, %v5608_v23 }
 0x1f8   :  { %9446 = vst [vmem:[#allocation51_spill] sm:$0xff] %v6025_v6 }
 0x20a   :  { %448 = vadd.xlane.f32.xlu1 %v5936_v54 }
 0x20e   :  { %480 = vadd.xlane.f32.xlu1 %v5945_v25 }
 0x212   :  { %444 = vadd.xlane.f32.xlu1 %v5956_v24  ;;  %v6009_v24 = vpop.xlane.xlu0 %426 }
 0x214   :  { %454 = vadd.xlane.f32.xlu0 %v5960_v18  ;;  %v6005_v18 = vmul.f32 0.03125, %v5952_v57  ;;  %v6020_v57 = vadd.f32 %v5806_v38, %v5608_v23 }
 0x216   :  { %476 = vadd.xlane.f32.xlu1 %v5972_v22  ;;  %v5997_v22 = vmul.f32 0.03125, %v5941_v5  ;;  %9443 = vst [vmem:[#allocation48_spill] sm:$0xff] %v6005_v18  ;;  %v6037_v38 = vmul.f32 0.03125, %v6020_v57 }
 0x218   :  { %486 = vadd.xlane.f32.xlu0 %v5976_v56  ;;  %9441 = vst [vmem:[#allocation46_spill] sm:$0xff] %v5997_v22  ;;  %v5999_v56 = vpop.permute.xlu1 %667  ;;  %9448 = vst [vmem:[#allocation53_spill] sm:$0xff] %v6037_v38 }
 0x219   :  { %9442 = vst [vmem:[#allocation47_spill] sm:$0xff] %v5999_v56  ;;  %v573_v56 = vmul.f32 0.03125, %v541_v4 }
 0x21c   :  { %450 = vadd.xlane.f32.xlu0 %v5988_v27  ;;  %v461_v27 = vpop.xlane.xlu1 %460 }
 0x21d   :  { %v539_v1 = vsub.f32 %v461_v27, %v5729_v8  ;;  %v6034_v8 = vadd.f32 %v5818_v44, %v5608_v23 }
 0x21f   :  { %v6049_v51 = vmul.f32 0.03125, %v6034_v8 }
 0x220   :  { %482 = vadd.xlane.f32.xlu0 %v5993_v0  ;;  %v6012_v0 = vmul.f32 0.03125, %v5968_v20  ;;  %v6014_v5 = vpop.permute.xlu1 %657  ;;  %v637_v20 = vsub.f32 %v573_v56, %v605_v58  ;;  %v6046_v58 = vadd.f32 %v5816_v42, %v5608_v23 }
 0x221   :  { %9445 = vst [vmem:[#allocation50_spill] sm:$0xff] %v6014_v5  ;;  %9450 = vst [vmem:[#allocation55_spill] sm:$0xff] %v6049_v51  ;;  %v593_v5 = vmul.f32 %v5793_v30, %v5793_v30  ;;  %v591_v30 = vmul.f32 %v5813_v41, %v5813_v41  ;;  %v524_v41 = vsub.f32 %v5930_v2, %v5618_v31 }
 0x222   :  { %9444 = vst [vmem:[#allocation49_spill] sm:$0xff] %v6012_v0  ;;  %v861_v56 = vadd.f32 1e-05, %v637_v20  ;;  %v6059_v20 = vmul.f32 0.03125, %v6046_v58  ;;  %v6112_v31 = vmul.f32 %v6046_v58, %v6046_v58  ;;  %v588_v2 = vmul.f32 %v5651_v48, %v5651_v48 }
 0x224   :  { %v6030_v4 = vpop.permute.xlu1 %682  ;;  %5168 = vrsqrt.f32 %v861_v56  ;;  %9452 = vst [vmem:[#allocation57_spill] sm:$0xff] %v6059_v20 }
 0x225   :  { %9447 = vst [vmem:[#allocation52_spill] sm:$0xff] %v6030_v4 }
 0x227   :  { %722 = vperm.xlu1 %5070, %v5997_v22   ;;  %v571_v22 = vmul.f32 0.03125, %v539_v1 }
 0x228   :  { %v6051_v44 = vpop.permute.xlu1 %762 }
 0x229   :  { %v635_v1 = vsub.f32 %v571_v22, %v603_v53  ;;  %9451 = vst [vmem:[#allocation56_spill] sm:$0xff] %v6051_v44  ;;  %v6067_v53 = vmul.f32 0.03125, %v6056_v3 }
 0x22b   :  { %802 = vperm.xlu1 %5070, %v6005_v18   ;;  %v6027_v18 = vpop.xlane.xlu0 %458  ;;  %v859_v4 = vadd.f32 1e-05, %v635_v1  ;;  %9455 = vst [vmem:[#allocation60_spill] sm:$0xff] %v6067_v53 }
 0x22c   :  { %v6064_v42 = vpop.permute.xlu1 %672 }
 0x22d   :  { %5170 = vrsqrt.f32 %v859_v4  ;;  %9454 = vst [vmem:[#allocation59_spill] sm:$0xff] %v6064_v42 }
 0x22e   :  { %v5169_v56 = vpop.eup %5168 }
 0x22f   :  { %712 = vperm.xlu1 %5070, %v6012_v0   ;;  %v6042_v27 = vpop.permute.xlu0 %652 }
 0x230   :  { %9449 = vst [vmem:[#allocation54_spill] sm:$0xff] %v6042_v27  ;;  %v6074_v46 = vpop.permute.xlu1 %752 }
 0x231   :  { %9457 = vst [vmem:[#allocation62_spill] sm:$0xff] %v6074_v46 }
 0x233   :  { %792 = vperm.xlu1 %5070, %v6025_v6   ;;  %v6061_v22 = vpop.permute.xlu0 %747 }
 0x234   :  { %9453 = vst [vmem:[#allocation58_spill] sm:$0xff] %v6061_v22 }
 0x236   :  { %727 = vperm.xlu0 %5071, %v6037_v38  }
 0x237   :  { %v6069_v44 = vpop.xlane.xlu0 %428  ;;  %v5171_v1 = vpop.eup %5170 }
 0x23a   :  { %807 = vperm.xlu0 %5071, %v6049_v51  }
 0x23b   :  { %v6072_v23 = vpop.permute.xlu0 %737 }
 0x23c   :  { %9456 = vst [vmem:[#allocation61_spill] sm:$0xff] %v6072_v23 }
 0x23e   :  { %717 = vperm.xlu0 %5071, %v6059_v20  }
 0x23f   :  { %v6076_v22 = vpop.xlane.xlu0 %438 }
 0x242   :  { %797 = vperm.xlu0 %5071, %v6067_v53  }
 0x243   :  { %v6081_v51 = vpop.xlane.xlu0 %470 }
 0x246   :  { %1003 = vperm.xlu0 %5071, %v5169_v56   ;;  %v609_v56 = vmul.f32 %v5803_v36, %v5803_v36 }
 0x24a   :  { %993 = vperm.xlu0 %5071, %v5171_v1   ;;  %v441_v4 = vpop.xlane.xlu1 %440 }
 0x24b   :  { %v529_v42 = vsub.f32 %v441_v4, %v5828_v47 }
 0x24d   :  { %v561_v27 = vmul.f32 0.03125, %v529_v42  ;;  %v6089_v42 = vpop.xlane.xlu0 %434 }
 0x24e   :  { %v473_v20 = vpop.xlane.xlu1 %472 }
 0x24f   :  { %v625_v53 = vsub.f32 %v561_v27, %v593_v5  ;;  %v545_v23 = vsub.f32 %v473_v20, %v5837_v7  ;;  %v6093_v7 = vmul.f32 %v6020_v57, %v6020_v57  ;;  %v6103_v20 = vmul.f32 %v6034_v8, %v6034_v8 }
 0x251   :  { %v849_v46 = vadd.f32 1e-05, %v625_v53  ;;  %v577_v38 = vmul.f32 0.03125, %v545_v23  ;;  %v6105_v53 = vpop.xlane.xlu0 %466  ;;  %v540_v23 = vsub.f32 %v6001_v32, %v5625_v35  ;;  %v522_v35 = vsub.f32 %v6009_v24, %v5634_v39 }
 0x252   :  { %v437_v6 = vpop.xlane.xlu1 %436  ;;  %v6123_v32 = vmul.f32 %v6056_v3, %v6056_v3  ;;  %v586_v39 = vmul.f32 %v5666_v52, %v5666_v52  ;;  %v525_v24 = vsub.f32 %v5979_v34, %v5678_v55  ;;  %v523_v52 = vsub.f32 %v6069_v44, %v5695_v60 }
 0x253   :  { %5172 = vrsqrt.f32 %v849_v46  ;;  %v641_v1 = vsub.f32 %v577_v38, %v609_v56  ;;  %v527_v47 = vsub.f32 %v437_v6, %v5846_v12  ;;  %v607_v12 = vmul.f32 %v5821_v45, %v5821_v45 }
 0x254   :  { %v556_v45 = vmul.f32 0.03125, %v524_v41  ;;  %v589_v34 = vmul.f32 %v5703_v63, %v5703_v63  ;;  %v544_v63 = vsub.f32 %v6081_v51, %v5742_v11  ;;  %v608_v51 = vmul.f32 %v5767_v17, %v5767_v17 }
 0x255   :  { %v865_v4 = vadd.f32 1e-05, %v641_v1  ;;  %v559_v0 = vmul.f32 0.03125, %v527_v47  ;;  %v6116_v56 = vpop.permute.xlu0 %687  ;;  %v572_v47 = vmul.f32 0.03125, %v540_v23 }
 0x256   :  { %v469_v5 = vpop.xlane.xlu1 %468 }
 0x257   :  { %5174 = vrsqrt.f32 %v865_v4  ;;  %v623_v36 = vsub.f32 %v559_v0, %v591_v30  ;;  %v543_v27 = vsub.f32 %v469_v5, %v5860_v59  ;;  %456 = vadd.xlane.f32.xlu1 %v6093_v7  ;;  %v620_v30 = vsub.f32 %v556_v45, %v588_v2 }
 0x258   :  { %v604_v4 = vmul.f32 %v5655_v49, %v5655_v49  ;;  %v555_v2 = vmul.f32 0.03125, %v523_v52  ;;  %v606_v52 = vmul.f32 %v5783_v26, %v5783_v26 }
 0x259   :  { %v847_v6 = vadd.f32 1e-05, %v623_v36  ;;  %v575_v38 = vmul.f32 0.03125, %v543_v27  ;;  %v844_v36 = vadd.f32 1e-05, %v620_v30  ;;  %v554_v27 = vmul.f32 0.03125, %v522_v35  ;;  %v6130_v41 = vpop.permute.xlu0 %767 }
 0x25a   :  { %v636_v5 = vsub.f32 %v572_v47, %v604_v4  ;;  %v587_v30 = vmul.f32 %v5759_v15, %v5759_v15 }
 0x25b   :  { %5176 = vrsqrt.f32 %v847_v6  ;;  %v639_v0 = vsub.f32 %v575_v38, %v607_v12  ;;  %488 = vadd.xlane.f32.xlu1 %v6103_v20  ;;  %v538_v12 = vsub.f32 %v6027_v18, %v5641_v43  ;;  %v618_v38 = vsub.f32 %v554_v27, %v586_v39 }
 0x25c   :  { %v860_v49 = vadd.f32 1e-05, %v636_v5  ;;  %v557_v43 = vmul.f32 0.03125, %v525_v24  ;;  %v619_v60 = vsub.f32 %v555_v2, %v587_v30  ;;  %v526_v27 = vsub.f32 %v6089_v42, %v5750_v13  ;;  %v5076_v2 = vld [vmem:[#allocation2 + $0x60] sm:$0xff]  }
 0x25d   :  { %v5173_v59 = vpop.eup %5172  ;;  %v863_v46 = vadd.f32 1e-05, %v639_v0  ;;  %v570_v0 = vmul.f32 0.03125, %v538_v12  ;;  %v6138_v23 = vpop.permute.xlu0 %677  ;;  %v842_v18 = vadd.f32 1e-05, %v618_v38  ;;  %v5073_v12 = vld [vmem:[#allocation2 + $0x48] sm:$0xff]   ;;  %v590_v13 = vmul.f32 %v5773_v19, %v5773_v19 }
 0x25e   :  { %943 = vperm.xlu0 %5071, %v5173_v59   ;;  %v602_v59 = vmul.f32 %v5659_v50, %v5659_v50  ;;  %v621_v55 = vsub.f32 %v557_v43, %v589_v34  ;;  %v5074_v38 = vld [vmem:[#allocation2 + $0x50] sm:$0xff]  }
 0x25f   :  { %5178 = vrsqrt.f32 %v863_v46  ;;  %452 = vadd.xlane.f32.xlu1 %v6112_v31 }
 0x260   :  { %5180 = vrsqrt.f32 %v844_v36  ;;  %v634_v45 = vsub.f32 %v570_v0, %v602_v59  ;;  %v845_v35 = vadd.f32 1e-05, %v621_v55  ;;  %v576_v36 = vmul.f32 0.03125, %v544_v63  ;;  %v5077_v63 = vld [vmem:[#allocation2 + $0x68] sm:$0xff]  }
 0x261   :  { %v5175_v1 = vpop.eup %5174  ;;  %5182 = vrsqrt.f32 %v860_v49  ;;  %v6146_v50 = vpop.permute.xlu0 %757  ;;  %v558_v49 = vmul.f32 0.03125, %v526_v27  ;;  %v594_v27 = vmul.f32 %v5891_v10, %v5891_v10 }
 0x262   :  { %1023 = vperm.xlu0 %5071, %v5175_v1   ;;  %5184 = vrsqrt.f32 %v842_v18  ;;  %v858_v46 = vadd.f32 1e-05, %v634_v45  ;;  %v528_v1 = vsub.f32 %v6076_v22, %v5733_v9  ;;  %v592_v9 = vmul.f32 %v5763_v16, %v5763_v16  ;;  %v5075_v18 = vld [vmem:[#allocation2 + $0x58] sm:$0xff]  }
 0x263   :  { %484 = vadd.xlane.f32.xlu1 %v6123_v32  ;;  %v843_v22 = vadd.f32 1e-05, %v619_v60  ;;  %v542_v16 = vsub.f32 %v6105_v53, %v5755_v14  ;;  %v622_v59 = vsub.f32 %v558_v49, %v590_v13  ;;  %v6163_v53 = vpop.permute.xlu1 %702 }
 0x264   :  { %5186 = vrsqrt.f32 %v858_v46  ;;  %v560_v44 = vmul.f32 0.03125, %v528_v1 }
 0x265   :  { %v5177_v48 = vpop.eup %5176  ;;  %v447_v4 = vpop.xlane.xlu0 %446  ;;  %5188 = vrsqrt.f32 %v845_v35  ;;  %v574_v42 = vmul.f32 0.03125, %v542_v16  ;;  %v846_v19 = vadd.f32 1e-05, %v622_v59 }
 0x266   :  { %933 = vperm.xlu0 %5071, %v5177_v48   ;;  %v5072_v48 = vld [vmem:[#allocation2 + $0x40] sm:$0xff]   ;;  %v624_v15 = vsub.f32 %v560_v44, %v592_v9  ;;  %5190 = vrsqrt.f32 %v843_v22  ;;  %v532_v14 = vsub.f32 %v447_v4, %v5850_v29  ;;  %v596_v29 = vmul.f32 %v5883_v37, %v5883_v37 }
 0x267   :  { %4870 = vmatprep.subr.bf16.mxu1 %v5072_v48  ;;  %v638_v34 = vsub.f32 %v574_v42, %v606_v52  ;;  %v9458_v52 = vld [vmem:[#allocation29_spill] sm:$0xff] }
 0x268   :  { %4871 = vmatpush3.bf16.msra.mxu1 %v5072_v48  ;;  %v848_v24 = vadd.f32 1e-05, %v624_v15  ;;  %v564_v55 = vmul.f32 0.03125, %v532_v14 }
 0x269   :  { %v5179_v6 = vpop.eup %5178  ;;  %v479_v11 = vpop.xlane.xlu0 %478  ;;  %4872 = vmatprep.subr.bf16.mxu1 %v5073_v12  ;;  %v862_v35 = vadd.f32 1e-05, %v638_v34  ;;  %v613_v34 = vmul.f32 %v9458_v52, %v9458_v52  ;;  %v9468_v52 = vld [vmem:[#allocation49_spill] sm:$0xff] }
 0x26a   :  { %1013 = vperm.xlu0 %5071, %v5179_v6   ;;  %v5181_v47 = vpop.eup %5180  ;;  %v640_v6 = vsub.f32 %v576_v36, %v608_v51  ;;  %5192 = vrsqrt.f32 %v848_v24  ;;  %v548_v46 = vsub.f32 %v479_v11, %v5864_v28  ;;  %v628_v26 = vsub.f32 %v564_v55, %v596_v29  ;;  %v5078_v36 = vld [vmem:[#allocation2 + $0x70] sm:$0xff]   ;;  %v5079_v11 = vld [vmem:[#allocation2 + $0x78] sm:$0xff]  }
 0x26b   :  { %v5183_v5 = vpop.eup %5182  ;;  %v612_v28 = vmul.f32 %v5887_v62, %v5887_v62 }
 0x26c   :  { %v5185_v39 = vpop.eup %5184  ;;  %4873 = vmatpush3.bf16.msra.mxu1 %v5073_v12  ;;  %v864_v17 = vadd.f32 1e-05, %v640_v6  ;;  %v580_v60 = vmul.f32 0.03125, %v548_v46  ;;  %v852_v37 = vadd.f32 1e-05, %v628_v26 }
 0x26d   :  { %4874 = vmatprep.subr.bf16.mxu1 %v5074_v38  ;;  %v443_v43 = vpop.xlane.xlu0 %442 }
 0x26e   :  { %v5187_v0 = vpop.eup %5186  ;;  %5194 = vrsqrt.f32 %v864_v17  ;;  %v530_v44 = vsub.f32 %v443_v43, %v5874_v61 }
 0x26f   :  { %v5189_v45 = vpop.eup %5188  ;;  %5196 = vrsqrt.f32 %v846_v19 }
 0x270   :  { %4875 = vmatpush3.bf16.msra.mxu1 %v5074_v38  ;;  %v5191_v1 = vpop.eup %5190  ;;  %5198 = vrsqrt.f32 %v862_v35  ;;  %v562_v9 = vmul.f32 0.03125, %v530_v44 }
 0x271   :  { %4876 = vmatprep.subr.bf16.mxu1 %v5075_v18  ;;  %v475_v30 = vpop.xlane.xlu0 %474  ;;  %5200 = vrsqrt.f32 %v852_v37 }
 0x272   :  { %v546_v22 = vsub.f32 %v475_v30, %v5879_v40  ;;  %v626_v12 = vsub.f32 %v562_v9, %v594_v27  ;;  %v610_v40 = vmul.f32 %v5899_v33, %v5899_v33  ;;  %v597_v33 = vmul.f32 %v5907_v21, %v5907_v21  ;;  %v9459_v21 = vld [vmem:[#allocation37_spill] sm:$0xff]  ;;  %v9460_v30 = vld [vmem:[#allocation31_spill] sm:$0xff] }
 0x274   :  { %918 = vperm.xlu1 %5070, %v5181_v47   ;;  %4877 = vmatpush3.bf16.msra.mxu1 %v5075_v18  ;;  %v6170_v47 = vpop.permute.xlu1 %782  ;;  %v5193_v4 = vpop.eup %5192  ;;  %v850_v10 = vadd.f32 1e-05, %v626_v12 }
 0x275   :  { %4878 = vmatprep.subr.bf16.mxu1 %v5076_v2  ;;  %v6175_v48 = vpop.permute.xlu0 %707 }
 0x278   :  { %998 = vperm.xlu1 %5070, %v5183_v5   ;;  %4879 = vmatpush3.bf16.msra.mxu1 %v5076_v2  ;;  %v644_v5 = vsub.f32 %v580_v60, %v612_v28  ;;  %v6178_v15 = vpop.permute.xlu1 %692  ;;  %v5195_v61 = vpop.eup %5194  ;;  %v9461_v60 = vld [vmem:[#allocation38_spill] sm:$0xff] }
 0x279   :  { %4880 = vmatprep.subr.bf16.mxu1 %v5077_v63  ;;  %v6182_v51 = vpop.permute.xlu0 %787  ;;  %v5197_v16 = vpop.eup %5196 }
 0x27a   :  { %v868_v62 = vadd.f32 1e-05, %v644_v5  ;;  %v5199_v49 = vpop.eup %5198 }
 0x27b   :  { %v5201_v59 = vpop.eup %5200 }
 0x27c   :  { %908 = vperm.xlu1 %5070, %v5185_v39   ;;  %4881 = vmatpush3.bf16.msra.mxu1 %v5077_v63  ;;  %v578_v39 = vmul.f32 0.03125, %v546_v22  ;;  %v6186_v24 = vpop.permute.xlu1 %772  ;;  %5202 = vrsqrt.f32 %v868_v62  ;;  %v9463_v22 = vld [vmem:[#allocation41_spill] sm:$0xff] }
 0x27d   :  { %4882 = vmatprep.subr.bf16.mxu1 %v5078_v36  ;;  %v6188_v38 = vpop.permute.xlu0 %697  ;;  %5204 = vrsqrt.f32 %v850_v10 }
 0x27e   :  { %v642_v6 = vsub.f32 %v578_v39, %v610_v40 }
 0x280   :  { %988 = vperm.xlu1 %5070, %v5187_v0   ;;  %4883 = vmatpush3.bf16.msra.mxu1 %v5078_v36  ;;  %v866_v42 = vadd.f32 1e-05, %v642_v6  ;;  %v9466_v6 = vld [vmem:[#allocation48_spill] sm:$0xff] }
 0x281   :  { %4884 = vmatprep.subr.bf16.mxu1 %v5079_v11 }
 0x282   :  { %5206 = vrsqrt.f32 %v866_v42 }
 0x284   :  { %923 = vperm.xlu1 %5070, %v5189_v45   ;;  %4885 = vmatpush3.bf16.msra.mxu1 %v5079_v11  ;;  %v6194_v45 = vpop.permute.xlu0 %777 }
 0x286   :  { %v5203_v55 = vpop.eup %5202 }
 0x287   :  { %v5205_v63 = vpop.eup %5204 }
 0x288   :  { %913 = vperm.xlu1 %5070, %v5191_v1  }
 0x28c   :  { %938 = vperm.xlu1 %5070, %v5193_v4   ;;  %v9462_v4 = vld [vmem:[#allocation46_spill] sm:$0xff]  ;;  %v5207_v10 = vpop.eup %5206 }
 0x28d   :  { %v600_v28 = vmul.f32 %v9462_v4, %v9462_v4 }
 0x290   :  { %1018 = vperm.xlu1 %5070, %v5195_v61   ;;  %v9464_v61 = vld [vmem:[#allocation32_spill] sm:$0xff] }
 0x291   :  { %v611_v27 = vmul.f32 %v9464_v61, %v9464_v61 }
 0x294   :  { %928 = vperm.xlu1 %5070, %v5197_v16   ;;  %v9465_v16 = vld [vmem:[#allocation42_spill] sm:$0xff] }
 0x297   :  { %v449_v0 = vpop.xlane.xlu1 %448 }
 0x298   :  { %v533_v13 = vsub.f32 %v449_v0, %v5936_v54  ;;  %1008 = vperm.xlu1 %5070, %v5199_v49   ;;  %v616_v49 = vmul.f32 %v9466_v6, %v9466_v6 }
 0x29a   :  { %v565_v17 = vmul.f32 0.03125, %v533_v13 }
 0x29b   :  { %v481_v14 = vpop.xlane.xlu1 %480 }
 0x29c   :  { %v629_v43 = vsub.f32 %v565_v17, %v597_v33  ;;  %v549_v18 = vsub.f32 %v481_v14, %v5945_v25  ;;  %958 = vperm.xlu1 %5070, %v5201_v59   ;;  %v595_v25 = vmul.f32 %v9460_v30, %v9460_v30 }
 0x29e   :  { %v853_v54 = vadd.f32 1e-05, %v629_v43  ;;  %v581_v19 = vmul.f32 0.03125, %v549_v18  ;;  %v9467_v43 = vld [vmem:[#allocation44_spill] sm:$0xff] }
 0x29f   :  { %v445_v46 = vpop.xlane.xlu1 %444 }
 0x2a0   :  { %5208 = vrsqrt.f32 %v853_v54  ;;  %v645_v2 = vsub.f32 %v581_v19, %v613_v34  ;;  %v531_v1 = vsub.f32 %v445_v46, %v9459_v21  ;;  %1038 = vperm.xlu1 %5070, %v5203_v55   ;;  %v598_v34 = vmul.f32 %v9468_v52, %v9468_v52  ;;  %v9469_v21 = vld [vmem:[#allocation45_spill] sm:$0xff] }
 0x2a1   :  { %v455_v29 = vpop.xlane.xlu0 %454 }
 0x2a2   :  { %v869_v35 = vadd.f32 1e-05, %v645_v2  ;;  %v563_v26 = vmul.f32 0.03125, %v531_v1  ;;  %v536_v44 = vsub.f32 %v455_v29, %v9461_v60  ;;  %v9470_v29 = vld [vmem:[#allocation51_spill] sm:$0xff] }
 0x2a3   :  { %v477_v37 = vpop.xlane.xlu1 %476  ;;  %v614_v30 = vmul.f32 %v9470_v29, %v9470_v29 }
 0x2a4   :  { %5210 = vrsqrt.f32 %v869_v35  ;;  %v627_v5 = vsub.f32 %v563_v26, %v595_v25  ;;  %v568_v9 = vmul.f32 0.03125, %v536_v44  ;;  %v547_v36 = vsub.f32 %v477_v37, %v9463_v22  ;;  %948 = vperm.xlu1 %5070, %v5205_v63  }
 0x2a5   :  { %v487_v62 = vpop.xlane.xlu0 %486 }
 0x2a6   :  { %v851_v12 = vadd.f32 1e-05, %v627_v5  ;;  %v632_v39 = vsub.f32 %v568_v9, %v600_v28  ;;  %v579_v11 = vmul.f32 0.03125, %v547_v36  ;;  %v552_v40 = vsub.f32 %v487_v62, %v9465_v16 }
 0x2a7   :  { %v6216_v9 = vpop.permute.xlu1 %722 }
 0x2a8   :  { %5212 = vrsqrt.f32 %v851_v12  ;;  %v856_v0 = vadd.f32 1e-05, %v632_v39  ;;  %v643_v13 = vsub.f32 %v579_v11, %v611_v27  ;;  %v584_v42 = vmul.f32 0.03125, %v552_v40  ;;  %1028 = vperm.xlu1 %5070, %v5207_v10   ;;  %v9471_v11 = vld [vmem:[#allocation53_spill] sm:$0xff] }
 0x2a9   :  { %v451_v33 = vpop.xlane.xlu0 %450  ;;  %v601_v16 = vmul.f32 %v9471_v11, %v9471_v11 }
 0x2aa   :  { %v5209_v17 = vpop.eup %5208  ;;  %5214 = vrsqrt.f32 %v856_v0  ;;  %v867_v59 = vadd.f32 1e-05, %v643_v13  ;;  %v648_v14 = vsub.f32 %v584_v42, %v616_v49  ;;  %v534_v18 = vsub.f32 %v451_v33, %v9467_v43  ;;  %v9472_v13 = vld [vmem:[#allocation55_spill] sm:$0xff]  ;;  %v9473_v43 = vld [vmem:[#allocation57_spill] sm:$0xff] }
 0x2ab   :  { %963 = vperm.xlu0 %5071, %v5209_v17   ;;  %v6218_v22 = vpop.permute.xlu1 %802  ;;  %v617_v42 = vmul.f32 %v9472_v13, %v9472_v13  ;;  %v9481_v13 = vld [vmem:[#allocation11_spill] sm:$0xff] }
 0x2ac   :  { %5216 = vrsqrt.f32 %v867_v59  ;;  %v872_v54 = vadd.f32 1e-05, %v648_v14  ;;  %v566_v19 = vmul.f32 0.03125, %v534_v18  ;;  %v599_v18 = vmul.f32 %v9473_v43, %v9473_v43 }
 0x2ad   :  { %v483_v55 = vpop.xlane.xlu0 %482 }
 0x2ae   :  { %v5211_v46 = vpop.eup %5210  ;;  %5218 = vrsqrt.f32 %v872_v54  ;;  %v630_v2 = vsub.f32 %v566_v19, %v598_v34  ;;  %v550_v1 = vsub.f32 %v483_v55, %v9469_v21 }
 0x2af   :  { %1043 = vperm.xlu0 %5071, %v5211_v46   ;;  %v6220_v36 = vpop.permute.xlu1 %712  ;;  %v9474_v46 = vld [vmem:[#allocation60_spill] sm:$0xff] }
 0x2b0   :  { %v854_v25 = vadd.f32 1e-05, %v630_v2  ;;  %v582_v35 = vmul.f32 0.03125, %v550_v1  ;;  %v615_v2 = vmul.f32 %v9474_v46, %v9474_v46 }
 0x2b2   :  { %v5213_v26 = vpop.eup %5212  ;;  %5220 = vrsqrt.f32 %v854_v25  ;;  %v646_v60 = vsub.f32 %v582_v35, %v614_v30 }
 0x2b3   :  { %953 = vperm.xlu0 %5071, %v5213_v26   ;;  %v6224_v27 = vpop.permute.xlu1 %792 }
 0x2b4   :  { %v5215_v44 = vpop.eup %5214  ;;  %v870_v63 = vadd.f32 1e-05, %v646_v60 }
 0x2b5   :  { %978 = vperm.xlu1 %5070, %v5215_v44   ;;  %v6222_v61 = vpop.permute.xlu0 %727 }
 0x2b6   :  { %v5217_v4 = vpop.eup %5216  ;;  %5222 = vrsqrt.f32 %v870_v63 }
 0x2b7   :  { %1033 = vperm.xlu0 %5071, %v5217_v4  }
 0x2b8   :  { %v5219_v28 = vpop.eup %5218 }
 0x2b9   :  { %1058 = vperm.xlu1 %5070, %v5219_v28   ;;  %v6226_v62 = vpop.permute.xlu0 %807 }
 0x2bc   :  { %v5221_v37 = vpop.eup %5220 }
 0x2bd   :  { %968 = vperm.xlu1 %5070, %v5221_v37   ;;  %v6232_v0 = vpop.permute.xlu0 %717  ;;  %v9475_v37 = vld [vmem:[#allocation54_spill] sm:$0xff] }
 0x2c0   :  { %v5223_v5 = vpop.eup %5222 }
 0x2c1   :  { %1048 = vperm.xlu1 %5070, %v5223_v5   ;;  %v6239_v54 = vpop.permute.xlu0 %797  ;;  %v9476_v5 = vld [vmem:[#allocation8_spill] sm:$0xff] }
 0x2c5   :  { %v6244_v30 = vpop.permute.xlu0 %1003 }
 0x2c9   :  { %v6248_v44 = vpop.permute.xlu0 %993 }
 0x2dd   :  { %v944_v4 = vpop.permute.xlu0 %943 }
 0x2e4   :  { %v457_v12 = vpop.xlane.xlu1 %456 }
 0x2e5   :  { %v537_v39 = vsub.f32 %v457_v12, %v6093_v7  ;;  %v810_v12 = vsub.f32 %v9476_v5, %v9475_v37 }
 0x2e7   :  { %v569_v40 = vmul.f32 0.03125, %v537_v39  ;;  %v9477_v39 = vld [vmem:[#allocation5_spill] sm:$0xff] }
 0x2e8   :  { %v489_v10 = vpop.xlane.xlu1 %488  ;;  %v9173_v11 = vsub.s32 1, %v9477_v39 }
 0x2e9   :  { %v633_v6 = vsub.f32 %v569_v40, %v601_v16  ;;  %v553_v49 = vsub.f32 %v489_v10, %v6103_v20  ;;  %v9478_v16 = vld [vmem:[#allocation33_spill] sm:$0xff]  ;;  %v9479_v40 = vld [vmem:[#allocation6_spill] sm:$0xff] }
 0x2ea   :  { %v812_v10 = vsub.f32 %v9479_v40, %v9478_v16  ;;  %v9486_v16 = vld [vmem:[#allocation20_spill] sm:$0xff] }
 0x2eb   :  { %v857_v33 = vadd.f32 1e-05, %v633_v6  ;;  %v585_v17 = vmul.f32 0.03125, %v553_v49  ;;  %v9480_v49 = vld [vmem:[#allocation47_spill] sm:$0xff]  ;;  %v815_v40 = vsub.f32 %v9486_v16, %v6138_v23  ;;  %v9489_v23 = vld [vmem:[#allocation16_spill] sm:$0xff] }
 0x2ec   :  { %v453_v59 = vpop.xlane.xlu1 %452 }
 0x2ed   :  { %5224 = vrsqrt.f32 %v857_v33  ;;  %v649_v14 = vsub.f32 %v585_v17, %v617_v42  ;;  %v535_v7 = vsub.f32 %v453_v59, %v6112_v31  ;;  %v813_v42 = vsub.f32 %v9481_v13, %v9480_v49 }
 0x2ee   :  { %v9172_v17 = vsub.s32 2, %v9477_v39 }
 0x2ef   :  { %v873_v52 = vadd.f32 1e-05, %v649_v14  ;;  %v567_v34 = vmul.f32 0.03125, %v535_v7  ;;  %v6263_v7 = vld [vmem:[%s9121_s2] sm:$0xff] }
 0x2f0   :  { %v485_v20 = vpop.xlane.xlu1 %484  ;;  %v6268_v43 = vrot.slane %v6263_v7, %v9173_v11 }
 0x2f1   :  { %5226 = vrsqrt.f32 %v873_v52  ;;  %v631_v19 = vsub.f32 %v567_v34, %v599_v18  ;;  %v551_v55 = vsub.f32 %v485_v20, %v6123_v32  ;;  %v6270_v52 = vpop.permute.xlu0 %1023  ;;  %v9482_v34 = vld [vmem:[#allocation50_spill] sm:$0xff]  ;;  %v9483_v20 = vld [vmem:[#allocation12_spill] sm:$0xff] }
 0x2f3   :  { %v855_v21 = vadd.f32 1e-05, %v631_v19  ;;  %v583_v1 = vmul.f32 0.03125, %v551_v55  ;;  %v811_v19 = vsub.f32 %v9483_v20, %v9482_v34 }
 0x2f4   :  { %v919_v29 = vpop.permute.xlu1 %918 }
 0x2f5   :  { %5228 = vrsqrt.f32 %v855_v21  ;;  %v647_v31 = vsub.f32 %v583_v1, %v615_v2  ;;  %v1068_v59 = vmul.f32 %v919_v29, %v812_v10  ;;  %v6279_v2 = vrot.slane %v6263_v7, %v9172_v17  ;;  %v934_v37 = vpop.permute.xlu0 %933 }
 0x2f7   :  { %v5225_v25 = vpop.eup %5224  ;;  %v871_v35 = vadd.f32 1e-05, %v647_v31  ;;  %v1104_v21 = vmul.f32 %v6268_v43, %v1068_v59 }
 0x2f8   :  { %v6246_v26 = vpop.permute.xlu1 %998  ;;  %983 = vperm.xlu0 %5071, %v5225_v25  }
 0x2f9   :  { %5230 = vrsqrt.f32 %v871_v35  ;;  %v1140_v5 = vadd.f32 %v6279_v2, %v1104_v21  ;;  %v9488_v21 = vld [vmem:[#allocation59_spill] sm:$0xff] }
 0x2fb   :  { %v5227_v60 = vpop.eup %5226  ;;  %v1172_v34 = vmax.f32 %v1140_v5, 0.0 }
 0x2fc   :  { %1063 = vperm.xlu0 %5071, %v5227_v60   ;;  %v909_v32 = vpop.permute.xlu1 %908  ;;  %v9484_v60 = vld [vmem:[#allocation52_spill] sm:$0xff] }
 0x2fd   :  { %v1066_v33 = vmul.f32 %v909_v32, %v810_v12  ;;  %v9485_v32 = vld [vmem:[#allocation14_spill] sm:$0xff] }
 0x2ff   :  { %v5229_v63 = vpop.eup %5228  ;;  %v1102_v55 = vmul.f32 %v6268_v43, %v1066_v33  ;;  %v1071_v33 = vmul.f32 %v934_v37, %v815_v40 }
 0x300   :  { %973 = vperm.xlu0 %5071, %v5229_v63   ;;  %v6250_v28 = vpop.permute.xlu1 %988  ;;  %v816_v63 = vsub.f32 %v9485_v32, %v9484_v60 }
 0x301   :  { %v1138_v25 = vadd.f32 %v6279_v2, %v1102_v55 }
 0x303   :  { %v5231_v6 = vpop.eup %5230  ;;  %v1170_v59 = vmax.f32 %v1138_v25, 0.0 }
 0x304   :  { %1053 = vperm.xlu0 %5071, %v5231_v6   ;;  %v924_v14 = vpop.permute.xlu1 %923  ;;  %v9487_v6 = vld [vmem:[#allocation18_spill] sm:$0xff] }
 0x305   :  { %v1069_v18 = vmul.f32 %v924_v14, %v813_v42  ;;  %v817_v49 = vsub.f32 %v9487_v6, %v6116_v56 }
 0x307   :  { %v1105_v46 = vmul.f32 %v6268_v43, %v1069_v18  ;;  %v1073_v18 = vmul.f32 %v944_v4, %v817_v49 }
 0x308   :  { %v914_v1 = vpop.permute.xlu1 %913 }
 0x309   :  { %v1067_v29 = vmul.f32 %v914_v1, %v811_v19  ;;  %v1141_v31 = vadd.f32 %v6279_v2, %v1105_v46  ;;  %v814_v1 = vsub.f32 %v9489_v23, %v9488_v21  ;;  %v1109_v56 = vmul.f32 %v6268_v43, %v1073_v18 }
 0x30b   :  { %v1103_v35 = vmul.f32 %v6268_v43, %v1067_v29  ;;  %v1173_v13 = vmax.f32 %v1141_v31, 0.0  ;;  %v1107_v29 = vmul.f32 %v6268_v43, %v1071_v33  ;;  %v1145_v32 = vadd.f32 %v6279_v2, %v1109_v56  ;;  %v9490_v33 = vld [vmem:[#allocation26_spill] sm:$0xff] }
 0x30c   :  { %v939_v12 = vpop.permute.xlu1 %938 }
 0x30d   :  { %v1139_v10 = vadd.f32 %v6279_v2, %v1103_v35  ;;  %v1072_v42 = vmul.f32 %v939_v12, %v816_v63  ;;  %v1219_v55 = vpack.c.bf16 %v1173_v13, %v1172_v34  ;;  %v1143_v35 = vadd.f32 %v6279_v2, %v1107_v29  ;;  %v9491_v34 = vld [vmem:[#allocation24_spill] sm:$0xff] }
 0x30e   :  { %v1177_v40 = vmax.f32 %v1145_v32, 0.0 }
 0x30f   :  { %v1171_v14 = vmax.f32 %v1139_v10, 0.0  ;;  %v1108_v46 = vmul.f32 %v6268_v43, %v1072_v42  ;;  %v1175_v16 = vmax.f32 %v1143_v35, 0.0  ;;  %v6309_v42 = vpop.permute.xlu0 %1013 }
 0x310   :  { %v6293_v20 = vpop.permute.xlu1 %1018 }
 0x311   :  { %v1218_v19 = vpack.c.bf16 %v1171_v14, %v1170_v59  ;;  %v1144_v4 = vadd.f32 %v6279_v2, %v1108_v46  ;;  %v821_v59 = vsub.f32 %v9490_v33, %v6175_v48 }
 0x313   :  { %4886 = vmatprep.mubr.bf16.mxu1 %v1218_v19  ;;  %v1176_v5 = vmax.f32 %v1144_v4, 0.0  ;;  %v818_v19 = vsub.f32 %v9491_v34, %v6178_v15 }
 0x314   :  { %4887 = vmatmul.mubr.bf16.vlgmr.msra.gmra.mrb[16].mxu1 %v1219_v55  ;;  %v929_v31 = vpop.permute.xlu1 %928  ;;  %v9492_v55 = vld [vmem:[#allocation22_spill] sm:$0xff] }
 0x315   :  { %v1070_v25 = vmul.f32 %v929_v31, %v814_v1  ;;  %v1221_v49 = vpack.c.bf16 %v1177_v40, %v1176_v5  ;;  %v820_v46 = vsub.f32 %v9492_v55, %v6163_v53  ;;  %v9493_v31 = vld [vmem:[#allocation28_spill] sm:$0xff]  ;;  %v9494_v55 = vld [vmem:[#allocation39_spill] sm:$0xff] }
 0x317   :  { %v1106_v60 = vmul.f32 %v6268_v43, %v1070_v25  ;;  %v819_v25 = vsub.f32 %v9493_v31, %v6188_v38 }
 0x318   :  { %v6304_v63 = vpop.permute.xlu1 %1008 }
 0x319   :  { %v1142_v37 = vadd.f32 %v6279_v2, %v1106_v60 }
 0x31b   :  { %v1174_v12 = vmax.f32 %v1142_v37, 0.0 }
 0x31c   :  { %v959_v6 = vpop.permute.xlu1 %958 }
 0x31d   :  { %v1220_v10 = vpack.c.bf16 %v1175_v16, %v1174_v12  ;;  %v1076_v1 = vmul.f32 %v959_v6, %v820_v46  ;;  %v9495_v46 = vld [vmem:[#allocation9_spill] sm:$0xff] }
 0x31f   :  { %4890 = vmatprep.mubr.bf16.mxu1 %v1220_v10  ;;  %v1112_v4 = vmul.f32 %v6268_v43, %v1076_v1 }
 0x320   :  { %4891 = vmatmul.mubr.bf16.gmra.mrb[20].mxu1 %v1221_v49  ;;  %v6307_v13 = vpop.permute.xlu1 %1038 }
 0x321   :  { %v1148_v37 = vadd.f32 %v6279_v2, %v1112_v4  ;;  %v9499_v4 = vld [vmem:[#allocation13_spill] sm:$0xff] }
 0x323   :  { %v1180_v38 = vmax.f32 %v1148_v37, 0.0 }
 0x324   :  { %v949_v14 = vpop.permute.xlu1 %948 }
 0x325   :  { %v1074_v23 = vmul.f32 %v949_v14, %v818_v19 }
 0x327   :  { %v1110_v48 = vmul.f32 %v6268_v43, %v1074_v23  ;;  %v9496_v23 = vld [vmem:[#allocation40_spill] sm:$0xff] }
 0x328   :  { %v6329_v49 = vpop.permute.xlu1 %1028  ;;  %v822_v1 = vsub.f32 %v9496_v23, %v6220_v36  ;;  %v823_v36 = vsub.f32 %v6046_v58, %v6232_v0  ;;  %v9506_v58 = vld [vmem:[#allocation21_spill] sm:$0xff] }
 0x329   :  { %v1146_v53 = vadd.f32 %v6279_v2, %v1110_v48  ;;  %v9498_v48 = vld [vmem:[#allocation61_spill] sm:$0xff]  ;;  %v831_v0 = vsub.f32 %v9506_v58, %v6146_v50 }
 0x32a   :  { %v964_v18 = vpop.permute.xlu0 %963 }
 0x32b   :  { %v1077_v21 = vmul.f32 %v964_v18, %v821_v59  ;;  %v1178_v16 = vmax.f32 %v1146_v53, 0.0  ;;  %v825_v18 = vsub.f32 %v6020_v57, %v6222_v61  ;;  %v1087_v50 = vmul.f32 %v6309_v42, %v831_v0 }
 0x32d   :  { %v1113_v56 = vmul.f32 %v6268_v43, %v1077_v21  ;;  %v826_v21 = vsub.f32 %v9495_v46, %v9494_v55  ;;  %v1123_v42 = vmul.f32 %v6268_v43, %v1087_v50 }
 0x32e   :  { %v6317_v29 = vpop.permute.xlu0 %1043 }
 0x32f   :  { %v1149_v15 = vadd.f32 %v6279_v2, %v1113_v56  ;;  %v9497_v56 = vld [vmem:[#allocation34_spill] sm:$0xff] }
 0x330   :  { %v824_v31 = vsub.f32 %v9497_v56, %v6216_v9 }
 0x331   :  { %v1181_v12 = vmax.f32 %v1149_v15, 0.0 }
 0x332   :  { %v954_v35 = vpop.permute.xlu0 %953 }
 0x333   :  { %v1075_v60 = vmul.f32 %v954_v35, %v819_v25  ;;  %v1223_v6 = vpack.c.bf16 %v1181_v12, %v1180_v38  ;;  %v827_v35 = vsub.f32 %v9499_v4, %v9498_v48  ;;  %v9501_v12 = vld [vmem:[#allocation7_spill] sm:$0xff]  ;;  %v9502_v38 = vld [vmem:[#allocation62_spill] sm:$0xff] }
 0x334   :  { %v979_v33 = vpop.permute.xlu1 %978 }
 0x335   :  { %v1111_v32 = vmul.f32 %v6268_v43, %v1075_v60  ;;  %v1082_v60 = vmul.f32 %v6250_v28, %v826_v21  ;;  %v1080_v53 = vmul.f32 %v979_v33, %v824_v31  ;;  %v1083_v61 = vmul.f32 %v6248_v44, %v827_v35 }
 0x336   :  { %v1034_v14 = vpop.permute.xlu0 %1033 }
 0x337   :  { %v1147_v5 = vadd.f32 %v6279_v2, %v1111_v32  ;;  %v1118_v37 = vmul.f32 %v6268_v43, %v1082_v60  ;;  %v1116_v28 = vmul.f32 %v6268_v43, %v1080_v53  ;;  %v1119_v44 = vmul.f32 %v6268_v43, %v1083_v61  ;;  %v9507_v61 = vld [vmem:[#allocation56_spill] sm:$0xff] }
 0x338   :  { %v6331_v59 = vpop.permute.xlu1 %1058 }
 0x339   :  { %v1179_v40 = vmax.f32 %v1147_v5, 0.0  ;;  %v9500_v5 = vld [vmem:[#allocation35_spill] sm:$0xff]  ;;  %v1154_v21 = vadd.f32 %v6279_v2, %v1118_v37  ;;  %v1155_v48 = vadd.f32 %v6279_v2, %v1119_v44  ;;  %v9511_v44 = vld [vmem:[#allocation25_spill] sm:$0xff] }
 0x33b   :  { %v1222_v10 = vpack.c.bf16 %v1179_v40, %v1178_v16  ;;  %v828_v16 = vsub.f32 %v9501_v12, %v9500_v5  ;;  %v1186_v53 = vmax.f32 %v1154_v21, 0.0 }
 0x33c   :  { %v969_v34 = vpop.permute.xlu1 %968 }
 0x33d   :  { %4894 = vmatprep.mubr.bf16.mxu1 %v1222_v10  ;;  %v1078_v15 = vmul.f32 %v969_v34, %v822_v1  ;;  %v9503_v10 = vld [vmem:[#allocation17_spill] sm:$0xff]  ;;  %v9505_v34 = vld [vmem:[#allocation10_spill] sm:$0xff]  ;;  %v1084_v55 = vmul.f32 %v6246_v26, %v828_v16  ;;  %v1187_v16 = vmax.f32 %v1155_v48, 0.0 }
 0x33e   :  { %4895 = vmatmul.mubr.bf16.gmra.mrb[24].mxu1 %v1223_v6  ;;  %v830_v6 = vsub.f32 %v9503_v10, %v9502_v38 }
 0x33f   :  { %v1114_v9 = vmul.f32 %v6268_v43, %v1078_v15  ;;  %v1120_v4 = vmul.f32 %v6268_v43, %v1084_v55 }
 0x340   :  { %v1086_v23 = vmul.f32 %v6304_v63, %v830_v6 }
 0x341   :  { %v1150_v1 = vadd.f32 %v6279_v2, %v1114_v9  ;;  %v9509_v9 = vld [vmem:[#allocation30_spill] sm:$0xff]  ;;  %v1156_v38 = vadd.f32 %v6279_v2, %v1120_v4  ;;  %v1049_v4 = vpop.permute.xlu1 %1048 }
 0x342   :  { %v1122_v60 = vmul.f32 %v6268_v43, %v1086_v23  ;;  %v835_v5 = vsub.f32 %v9509_v9, %v6194_v45  ;;  %v1226_v45 = vpack.c.bf16 %v1187_v16, %v1186_v53 }
 0x343   :  { %v1182_v63 = vmax.f32 %v1150_v1, 0.0  ;;  %v1188_v55 = vmax.f32 %v1156_v38, 0.0 }
 0x377   :  { %v984_v19 = vpop.permute.xlu0 %983 }
 0x378   :  { %v1081_v25 = vmul.f32 %v984_v19, %v825_v18  ;;  %v9504_v18 = vld [vmem:[#allocation58_spill] sm:$0xff] }
 0x379   :  { %v829_v19 = vsub.f32 %v9505_v34, %v9504_v18  ;;  %v1158_v18 = vadd.f32 %v6279_v2, %v1122_v60  ;;  %v1091_v34 = vmul.f32 %v1034_v14, %v835_v5  ;;  %v9512_v14 = vld [vmem:[#allocation27_spill] sm:$0xff] }
 0x37a   :  { %v1117_v32 = vmul.f32 %v6268_v43, %v1081_v25  ;;  %v1152_v25 = vadd.f32 %v6279_v2, %v1116_v28  ;;  %v9510_v28 = vld [vmem:[#allocation19_spill] sm:$0xff]  ;;  %v837_v21 = vsub.f32 %v9512_v14, %v6182_v51 }
 0x37b   :  { %v6344_v57 = vpop.permute.xlu0 %1063  ;;  %v1085_v31 = vmul.f32 %v6244_v30, %v829_v19  ;;  %v9514_v51 = vld [vmem:[#allocation43_spill] sm:$0xff] }
 0x37c   :  { %v1153_v46 = vadd.f32 %v6279_v2, %v1117_v32  ;;  %v9508_v32 = vld [vmem:[#allocation15_spill] sm:$0xff]  ;;  %v1184_v37 = vmax.f32 %v1152_v25, 0.0  ;;  %v838_v60 = vsub.f32 %v9514_v51, %v6224_v27  ;;  %v841_v27 = vsub.f32 %v6034_v8, %v6226_v62 }
 0x37d   :  { %v1121_v30 = vmul.f32 %v6268_v43, %v1085_v31  ;;  %v9513_v25 = vld [vmem:[#allocation23_spill] sm:$0xff] }
 0x37e   :  { %v1185_v35 = vmax.f32 %v1153_v46, 0.0  ;;  %v1190_v46 = vmax.f32 %v1158_v18, 0.0  ;;  %v836_v48 = vsub.f32 %v9513_v25, %v6170_v47 }
 0x37f   :  { %v974_v40 = vpop.permute.xlu0 %973  ;;  %v1157_v19 = vadd.f32 %v6279_v2, %v1121_v30 }
 0x380   :  { %v1079_v33 = vmul.f32 %v974_v40, %v823_v36  ;;  %v832_v36 = vsub.f32 %v9508_v32, %v9507_v61  ;;  %v833_v40 = vsub.f32 %v9510_v28, %v6130_v41  ;;  %v1225_v6 = vpack.c.bf16 %v1185_v35, %v1184_v37 }
 0x381   :  { %v1159_v41 = vadd.f32 %v6279_v2, %v1123_v42  ;;  %v1094_v61 = vmul.f32 %v1049_v4, %v838_v60  ;;  %v9515_v42 = vld [vmem:[#allocation36_spill] sm:$0xff]  ;;  %v1097_v28 = vmul.f32 %v6344_v57, %v841_v27 }
 0x382   :  { %v1115_v56 = vmul.f32 %v6268_v43, %v1079_v33  ;;  %v1088_v10 = vmul.f32 %v6293_v20, %v832_v36  ;;  %v834_v33 = vsub.f32 %v9511_v44, %v6186_v24  ;;  %v1089_v58 = vmul.f32 %v6270_v52, %v833_v40 }
 0x383   :  { %v1127_v24 = vmul.f32 %v6268_v43, %v1091_v34  ;;  %v1054_v1 = vpop.permute.xlu0 %1053  ;;  %v839_v52 = vsub.f32 %v6056_v3, %v6239_v54  ;;  %v1092_v54 = vmul.f32 %v6307_v13, %v836_v48  ;;  %v1130_v5 = vmul.f32 %v6268_v43, %v1094_v61 }
 0x384   :  { %v1151_v26 = vadd.f32 %v6279_v2, %v1115_v56  ;;  %v1090_v0 = vmul.f32 %v6329_v49, %v834_v33  ;;  %v1124_v20 = vmul.f32 %v6268_v43, %v1088_v10  ;;  %v1125_v23 = vmul.f32 %v6268_v43, %v1089_v58 }
 0x385   :  { %v1189_v56 = vmax.f32 %v1157_v19, 0.0  ;;  %v1191_v49 = vmax.f32 %v1159_v41, 0.0  ;;  %v1128_v37 = vmul.f32 %v6268_v43, %v1092_v54  ;;  %v1166_v62 = vadd.f32 %v6279_v2, %v1130_v5 }
 0x386   :  { %v1183_v15 = vmax.f32 %v1151_v26, 0.0  ;;  %v1126_v31 = vmul.f32 %v6268_v43, %v1090_v0  ;;  %v1160_v50 = vadd.f32 %v6279_v2, %v1124_v20  ;;  %v1093_v26 = vmul.f32 %v6317_v29, %v837_v21 }
 0x387   :  { %v1227_v35 = vpack.c.bf16 %v1189_v56, %v1188_v55  ;;  %v1228_v53 = vpack.c.bf16 %v1191_v49, %v1190_v46  ;;  %v1161_v3 = vadd.f32 %v6279_v2, %v1125_v23  ;;  %v1133_v44 = vmul.f32 %v6268_v43, %v1097_v28 }
 0x388   :  { %v1224_v12 = vpack.c.bf16 %v1183_v15, %v1182_v63  ;;  %v1163_v63 = vadd.f32 %v6279_v2, %v1127_v24  ;;  %v1095_v15 = vmul.f32 %v1054_v1, %v839_v52  ;;  %v1162_v47 = vadd.f32 %v6279_v2, %v1126_v31 }
 0x389   :  { %v1129_v29 = vmul.f32 %v6268_v43, %v1093_v26  ;;  %v1192_v32 = vmax.f32 %v1160_v50, 0.0  ;;  %v1193_v9 = vmax.f32 %v1161_v3, 0.0  ;;  %v1198_v57 = vmax.f32 %v1166_v62, 0.0 }
 0x38a   :  { %4898 = vmatprep.mubr.bf16.mxu1 %v1224_v12  ;;  %v1131_v36 = vmul.f32 %v6268_v43, %v1095_v15  ;;  %v1195_v30 = vmax.f32 %v1163_v63, 0.0  ;;  %v1194_v13 = vmax.f32 %v1162_v47, 0.0  ;;  %v840_v12 = vsub.f32 %v9515_v42, %v6218_v22 }
 0x38b   :  { %4899 = vmatmul.mubr.bf16.gmra.mrb[28].mxu1 %v1225_v6  ;;  %v1165_v16 = vadd.f32 %v6279_v2, %v1129_v29  ;;  %v1229_v40 = vpack.c.bf16 %v1193_v9, %v1192_v32  ;;  %v1164_v6 = vadd.f32 %v6279_v2, %v1128_v37  ;;  %v9171_v55 = vsub.s32 3, %v9477_v39 }
 0x38c   :  { %4902 = vmatprep.mubr.bf16.mxu1 %v1226_v45  ;;  %v1167_v38 = vadd.f32 %v6279_v2, %v1131_v36  ;;  %v1230_v10 = vpack.c.bf16 %v1195_v30, %v1194_v13  ;;  %v1096_v8 = vmul.f32 %v6331_v59, %v840_v12  ;;  %v1169_v45 = vadd.f32 %v6279_v2, %v1133_v44 }
 0x38d   :  { %v1197_v33 = vmax.f32 %v1165_v16, 0.0  ;;  %v1196_v34 = vmax.f32 %v1164_v6, 0.0 }
 0x38e   :  { %v1199_v22 = vmax.f32 %v1167_v38, 0.0  ;;  %v1132_v18 = vmul.f32 %v6268_v43, %v1096_v8  ;;  %v1201_v59 = vmax.f32 %v1169_v45, 0.0  ;;  %v6432_v43 = vrot.slane %v6263_v7, %v9171_v55 }
 0x38f   :  { %v1231_v19 = vpack.c.bf16 %v1197_v33, %v1196_v34 }
 0x390   :  { %v1232_v58 = vpack.c.bf16 %v1199_v22, %v1198_v57  ;;  %v1168_v41 = vadd.f32 %v6279_v2, %v1132_v18 }
 0x392   :  { %v1200_v0 = vmax.f32 %v1168_v41, 0.0 }
 0x393   :  { %4903 = vmatmul.mubr.bf16.gmra.mrb[32].mxu1 %v1227_v35 }
 0x394   :  { %4906 = vmatprep.mubr.bf16.mxu1 %v1228_v53  ;;  %v1233_v20 = vpack.c.bf16 %v1201_v59, %v1200_v0 }
 0x39b   :  { %4907 = vmatmul.mubr.bf16.gmra.mrb[36].mxu1 %v1229_v40 }
 0x39c   :  { %4910 = vmatprep.mubr.bf16.mxu1 %v1230_v10 }
 0x3a3   :  { %4911 = vmatmul.mubr.bf16.gmra.mrb[40].mxu1 %v1231_v19 }
 0x3a4   :  { %4914 = vmatprep.mubr.bf16.mxu1 %v1232_v58 }
 0x3ab   :  { %4915 = vmatmul.mubr.bf16.gmra.mrb[44].mxu1 %v1233_v20 }
 0x3e7   :  { %v4888_v24 = vpop.f32.mrb[16].mxu1 }
 0x3e8   :  { %v6435_v46 = vadd.f32 %v4888_v24, %v6432_v43  ;;  %v1320_v14 = vpop.f32.mrb[17].mxu1 }
 0x3e9   :  { %v4889_v21 = vpop.f32.mrb[18].mxu1  ;;  %v6447_v49 = vadd.f32 %v1320_v14, %v6432_v43 }
 0x3ea   :  { %9516 = vst [vmem:[#allocation29_spill] sm:$0xff] %v6435_v46  ;;  %v6438_v2 = vmul.f32 0.03125, %v6435_v46  ;;  %v1323_v23 = vpop.f32.mrb[19].mxu1  ;;  %v6442_v1 = vmul.f32 %v6435_v46, %v6435_v46  ;;  %v6450_v25 = vadd.f32 %v4889_v21, %v6432_v43 }
 0x3eb   :  { %9517 = vst [vmem:[#allocation37_spill] sm:$0xff] %v6447_v49  ;;  %v6453_v48 = vmul.f32 0.03125, %v6447_v49  ;;  %v6462_v26 = vmul.f32 %v6447_v49, %v6447_v49  ;;  %v6471_v15 = vadd.f32 %v1323_v23, %v6432_v43 }
 0x3ec   :  { %1483 = vadd.xlane.f32.xlu0 %v6442_v1  ;;  %1715 = vperm.xlu1 %5070, %v6438_v2   ;;  %9518 = vst [vmem:[#allocation31_spill] sm:$0xff] %v6450_v25  ;;  %v6457_v50 = vmul.f32 0.03125, %v6450_v25  ;;  %v6467_v51 = vmul.f32 %v6450_v25, %v6450_v25 }
 0x3ed   :  { %9519 = vst [vmem:[#allocation38_spill] sm:$0xff] %v6471_v15  ;;  %v6474_v53 = vmul.f32 0.03125, %v6471_v15  ;;  %v6481_v54 = vmul.f32 %v6471_v15, %v6471_v15 }
 0x3f3   :  { %v4892_v7 = vpop.f32.mrb[20].mxu1 }
 0x3f4   :  { %v1336_v56 = vpop.f32.mrb[21].mxu1  ;;  %v6477_v3 = vadd.f32 %v4892_v7, %v6432_v43 }
 0x3f5   :  { %v4893_v52 = vpop.f32.mrb[22].mxu1  ;;  %v6489_v61 = vadd.f32 %v1336_v56, %v6432_v43 }
 0x3f6   :  { %v1339_v31 = vpop.f32.mrb[23].mxu1  ;;  %9520 = vst [vmem:[#allocation46_spill] sm:$0xff] %v6477_v3  ;;  %v6486_v47 = vmul.f32 0.03125, %v6477_v3  ;;  %v6493_v29 = vmul.f32 %v6477_v3, %v6477_v3  ;;  %v6507_v30 = vadd.f32 %v4893_v52, %v6432_v43 }
 0x3f7   :  { %9521 = vst [vmem:[#allocation41_spill] sm:$0xff] %v6489_v61  ;;  %v6498_v32 = vmul.f32 0.03125, %v6489_v61  ;;  %v6502_v36 = vmul.f32 %v6489_v61, %v6489_v61  ;;  %v6513_v37 = vadd.f32 %v1339_v31, %v6432_v43 }
 0x3f8   :  { %9522 = vst [vmem:[#allocation32_spill] sm:$0xff] %v6507_v30  ;;  %v6510_v27 = vmul.f32 0.03125, %v6507_v30  ;;  %v6522_v5 = vmul.f32 %v6507_v30, %v6507_v30 }
 0x3f9   :  { %9523 = vst [vmem:[#allocation42_spill] sm:$0xff] %v6513_v37  ;;  %v6517_v9 = vmul.f32 0.03125, %v6513_v37  ;;  %v6527_v13 = vmul.f32 %v6513_v37, %v6513_v37 }
 0x402   :  { %1705 = vperm.xlu0 %5071, %v6453_v48  }
 0x406   :  { %1720 = vperm.xlu0 %5071, %v6457_v50  }
 0x410   :  { %1479 = vadd.xlane.f32.xlu1 %v6462_v26 }
 0x411   :  { %v4896_v4 = vpop.f32.mrb[24].mxu1 }
 0x412   :  { %v1352_v35 = vpop.f32.mrb[25].mxu1  ;;  %v6531_v16 = vadd.f32 %v4896_v4, %v6432_v43 }
 0x413   :  { %v4897_v60 = vpop.f32.mrb[26].mxu1  ;;  %v6537_v10 = vadd.f32 %v1352_v35, %v6432_v43 }
 0x414   :  { %1485 = vadd.xlane.f32.xlu1 %v6467_v51  ;;  %v1355_v63 = vpop.f32.mrb[27].mxu1  ;;  %9524 = vst [vmem:[#allocation48_spill] sm:$0xff] %v6531_v16  ;;  %v6534_v38 = vmul.f32 0.03125, %v6531_v16  ;;  %v6541_v6 = vmul.f32 %v6531_v16, %v6531_v16  ;;  %v6569_v20 = vadd.f32 %v4897_v60, %v6432_v43 }
 0x415   :  { %9525 = vst [vmem:[#allocation44_spill] sm:$0xff] %v6537_v10  ;;  %v6546_v44 = vmul.f32 0.03125, %v6537_v10  ;;  %v6550_v22 = vmul.f32 %v6537_v10, %v6537_v10  ;;  %v6575_v14 = vadd.f32 %v1355_v63, %v6432_v43 }
 0x416   :  { %9526 = vst [vmem:[#allocation49_spill] sm:$0xff] %v6569_v20  ;;  %v6572_v24 = vmul.f32 0.03125, %v6569_v20  ;;  %v6592_v31 = vmul.f32 %v6569_v20, %v6569_v20 }
 0x417   :  { %9527 = vst [vmem:[#allocation45_spill] sm:$0xff] %v6575_v14  ;;  %v6587_v52 = vmul.f32 0.03125, %v6575_v14  ;;  %v6597_v4 = vmul.f32 %v6575_v14, %v6575_v14 }
 0x425   :  { %1481 = vadd.xlane.f32.xlu0 %v6481_v54  ;;  %1710 = vperm.xlu1 %5070, %v6474_v53  }
 0x429   :  { %1735 = vperm.xlu1 %5070, %v6486_v47   ;;  %1491 = vadd.xlane.f32.xlu0 %v6493_v29 }
 0x42d   :  { %1725 = vperm.xlu1 %5070, %v6498_v32   ;;  %1487 = vadd.xlane.f32.xlu0 %v6502_v36 }
 0x443   :  { %1740 = vperm.xlu0 %5071, %v6510_v27  }
 0x447   :  { %1730 = vperm.xlu0 %5071, %v6517_v9  }
 0x451   :  { %1493 = vadd.xlane.f32.xlu1 %v6522_v5 }
 0x455   :  { %1489 = vadd.xlane.f32.xlu1 %v6527_v13 }
 0x45e   :  { %v4900_v42 = vpop.f32.mrb[28].mxu1 }
 0x45f   :  { %v1368_v12 = vpop.f32.mrb[29].mxu1  ;;  %v6601_v35 = vadd.f32 %v4900_v42, %v6432_v43 }
 0x460   :  { %v4901_v28 = vpop.f32.mrb[30].mxu1  ;;  %v6607_v63 = vadd.f32 %v1368_v12, %v6432_v43 }
 0x461   :  { %v1371_v40 = vpop.f32.mrb[31].mxu1  ;;  %9528 = vst [vmem:[#allocation51_spill] sm:$0xff] %v6601_v35  ;;  %v6604_v60 = vmul.f32 0.03125, %v6601_v35  ;;  %v6611_v55 = vmul.f32 %v6601_v35, %v6601_v35  ;;  %v6625_v12 = vadd.f32 %v4901_v28, %v6432_v43 }
 0x462   :  { %9529 = vst [vmem:[#allocation53_spill] sm:$0xff] %v6607_v63  ;;  %v6616_v17 = vmul.f32 0.03125, %v6607_v63  ;;  %v6620_v42 = vmul.f32 %v6607_v63, %v6607_v63  ;;  %v6631_v35 = vadd.f32 %v1371_v40, %v6432_v43 }
 0x463   :  { %9531 = vst [vmem:[#allocation57_spill] sm:$0xff] %v6625_v12  ;;  %v6628_v11 = vmul.f32 0.03125, %v6625_v12  ;;  %v6640_v63 = vmul.f32 %v6625_v12, %v6625_v12 }
 0x464   :  { %9530 = vst [vmem:[#allocation55_spill] sm:$0xff] %v6616_v17  ;;  %9532 = vst [vmem:[#allocation60_spill] sm:$0xff] %v6631_v35  ;;  %v6635_v10 = vmul.f32 0.03125, %v6631_v35  ;;  %v6645_v28 = vmul.f32 %v6631_v35, %v6631_v35 }
 0x466   :  { %1755 = vperm.xlu1 %5070, %v6534_v38   ;;  %1499 = vadd.xlane.f32.xlu0 %v6541_v6  ;;  %v4904_v8 = vpop.f32.mrb[32].mxu1 }
 0x467   :  { %v1384_v62 = vpop.f32.mrb[33].mxu1  ;;  %v6649_v40 = vadd.f32 %v4904_v8, %v6432_v43 }
 0x468   :  { %v4905_v33 = vpop.f32.mrb[34].mxu1  ;;  %v6655_v20 = vadd.f32 %v1384_v62, %v6432_v43 }
 0x469   :  { %v1387_v18 = vpop.f32.mrb[35].mxu1  ;;  %9533 = vst [vmem:[#allocation54_spill] sm:$0xff] %v6649_v40  ;;  %v6652_v16 = vmul.f32 0.03125, %v6649_v40  ;;  %v6659_v12 = vmul.f32 %v6649_v40, %v6649_v40  ;;  %v6673_v62 = vadd.f32 %v4905_v33, %v6432_v43 }
 0x46a   :  { %1745 = vperm.xlu1 %5070, %v6546_v44   ;;  %1495 = vadd.xlane.f32.xlu0 %v6550_v22  ;;  %9535 = vst [vmem:[#allocation33_spill] sm:$0xff] %v6655_v20  ;;  %v6664_v35 = vmul.f32 0.03125, %v6655_v20  ;;  %v6668_v8 = vmul.f32 %v6655_v20, %v6655_v20  ;;  %v6679_v14 = vadd.f32 %v1387_v18, %v6432_v43 }
 0x46b   :  { %9534 = vst [vmem:[#allocation8_spill] sm:$0xff] %v6652_v16  ;;  %9536 = vst [vmem:[#allocation6_spill] sm:$0xff] %v6659_v12  ;;  %v6676_v40 = vmul.f32 0.03125, %v6673_v62  ;;  %v6688_v20 = vmul.f32 %v6673_v62, %v6673_v62  ;;  %v6751_v25 = vpop.permute.xlu1 %1715 }
 0x46c   :  { %9537 = vst [vmem:[#allocation47_spill] sm:$0xff] %v6664_v35  ;;  %9538 = vst [vmem:[#allocation11_spill] sm:$0xff] %v6668_v8  ;;  %v6683_v61 = vmul.f32 0.03125, %v6679_v14  ;;  %v6693_v33 = vmul.f32 %v6679_v14, %v6679_v14 }
 0x46d   :  { %9539 = vst [vmem:[#allocation50_spill] sm:$0xff] %v6673_v62  ;;  %9540 = vst [vmem:[#allocation12_spill] sm:$0xff] %v6679_v14 }
 0x46e   :  { %v4908_v34 = vpop.f32.mrb[36].mxu1  ;;  %9552 = vst [vmem:[#allocation9_spill] sm:$0xff] %v6751_v25 }
 0x46f   :  { %v6554_v57 = vpop.f32.mrb[37].mxu1  ;;  %v6697_v18 = vadd.f32 %v4908_v34, %v6432_v43 }
 0x470   :  { %v6556_v45 = vpop.f32.mrb[38].mxu1  ;;  %v6704_v30 = vadd.f32 %v6554_v57, %v6432_v43 }
 0x471   :  { %v6558_v19 = vpop.f32.mrb[39].mxu1  ;;  %9541 = vst [vmem:[#allocation52_spill] sm:$0xff] %v6697_v18  ;;  %v6700_v3 = vmul.f32 0.03125, %v6697_v18  ;;  %v6708_v62 = vmul.f32 %v6697_v18, %v6697_v18  ;;  %v6723_v57 = vadd.f32 %v6556_v45, %v6432_v43 }
 0x472   :  { %9543 = vst [vmem:[#allocation20_spill] sm:$0xff] %v6704_v30  ;;  %v6713_v14 = vmul.f32 0.03125, %v6704_v30  ;;  %v6717_v34 = vmul.f32 %v6704_v30, %v6704_v30  ;;  %v6730_v37 = vadd.f32 %v6558_v19, %v6432_v43 }
 0x473   :  { %9542 = vst [vmem:[#allocation14_spill] sm:$0xff] %v6700_v3  ;;  %9544 = vst [vmem:[#allocation18_spill] sm:$0xff] %v6708_v62  ;;  %v6726_v18 = vmul.f32 0.03125, %v6723_v57  ;;  %v6739_v49 = vmul.f32 %v6723_v57, %v6723_v57 }
 0x474   :  { %9545 = vst [vmem:[#allocation59_spill] sm:$0xff] %v6713_v14  ;;  %9546 = vst [vmem:[#allocation16_spill] sm:$0xff] %v6717_v34  ;;  %v6734_v30 = vmul.f32 0.03125, %v6730_v37  ;;  %v6744_v45 = vmul.f32 %v6730_v37, %v6730_v37 }
 0x475   :  { %9547 = vst [vmem:[#allocation26_spill] sm:$0xff] %v6723_v57  ;;  %9548 = vst [vmem:[#allocation24_spill] sm:$0xff] %v6730_v37 }
 0x476   :  { %v6560_v58 = vpop.f32.mrb[40].mxu1  ;;  %9549 = vst [vmem:[#allocation22_spill] sm:$0xff] %v6734_v30  ;;  %9550 = vst [vmem:[#allocation28_spill] sm:$0xff] %v6744_v45 }
 0x477   :  { %v6562_v41 = vpop.f32.mrb[41].mxu1  ;;  %v6749_v19 = vadd.f32 %v6560_v58, %v6432_v43 }
 0x478   :  { %v6564_v59 = vpop.f32.mrb[42].mxu1  ;;  %v6758_v57 = vadd.f32 %v6562_v41, %v6432_v43 }
 0x479   :  { %v6566_v0 = vpop.f32.mrb[43].mxu1  ;;  %9551 = vst [vmem:[#allocation39_spill] sm:$0xff] %v6749_v19  ;;  %v6754_v46 = vmul.f32 0.03125, %v6749_v19  ;;  %v6762_v15 = vmul.f32 %v6749_v19, %v6749_v19 }
 0x47a   :  { %9554 = vst [vmem:[#allocation34_spill] sm:$0xff] %v6758_v57  ;;  %v6769_v58 = vmul.f32 0.03125, %v6758_v57  ;;  %v6773_v25 = vmul.f32 %v6758_v57, %v6758_v57  ;;  %v6792_v57 = vadd.f32 %v6566_v0, %v6432_v43 }
 0x47b   :  { %9553 = vst [vmem:[#allocation40_spill] sm:$0xff] %v6754_v46  ;;  %9555 = vst [vmem:[#allocation61_spill] sm:$0xff] %v6762_v15 }
 0x47c   :  { %9556 = vst [vmem:[#allocation13_spill] sm:$0xff] %v6769_v58  ;;  %9557 = vst [vmem:[#allocation35_spill] sm:$0xff] %v6773_v25 }
 0x47d   :  { %9562 = vst [vmem:[#allocation10_spill] sm:$0xff] %v6792_v57 }
 0x47e   :  { %v6577_v21 = vpop.f32.mrb[44].mxu1 }
 0x47f   :  { %v6579_v23 = vpop.f32.mrb[45].mxu1 }
 0x480   :  { %1760 = vperm.xlu0 %5071, %v6572_v24   ;;  %v6582_v7 = vpop.f32.mrb[46].mxu1 }
 0x481   :  { %v6584_v56 = vpop.f32.mrb[47].mxu1 }
 0x484   :  { %1750 = vperm.xlu0 %5071, %v6587_v52  }
 0x48e   :  { %1501 = vadd.xlane.f32.xlu1 %v6592_v31 }
 0x492   :  { %1497 = vadd.xlane.f32.xlu1 %v6597_v4 }
 0x49d   :  { %v6766_v37 = vpop.xlane.xlu1 %1479 }
 0x4a1   :  { %v1486_v41 = vpop.xlane.xlu1 %1485 }
 0x4a3   :  { %1775 = vperm.xlu1 %5070, %v6604_v60   ;;  %1507 = vadd.xlane.f32.xlu0 %v6611_v55 }
 0x4a5   :  { %v6777_v19 = vpop.permute.xlu1 %1710 }
 0x4a6   :  { %9558 = vst [vmem:[#allocation7_spill] sm:$0xff] %v6777_v19 }
 0x4a7   :  { %1765 = vperm.xlu1 %5070, %v6616_v17   ;;  %1503 = vadd.xlane.f32.xlu0 %v6620_v42 }
 0x4a9   :  { %v6779_v39 = vpop.permute.xlu1 %1735 }
 0x4aa   :  { %9559 = vst [vmem:[#allocation62_spill] sm:$0xff] %v6779_v39  ;;  %v6800_v39 = vmul.f32 0.03125, %v6792_v57 }
 0x4ac   :  { %9565 = vst [vmem:[#allocation15_spill] sm:$0xff] %v6800_v39 }
 0x4bd   :  { %1780 = vperm.xlu0 %5071, %v6628_v11  }
 0x4c1   :  { %1770 = vperm.xlu0 %5071, %v6635_v10  }
 0x4cb   :  { %1509 = vadd.xlane.f32.xlu1 %v6640_v63 }
 0x4cf   :  { %1505 = vadd.xlane.f32.xlu1 %v6645_v28 }
 0x4e0   :  { %1795 = vperm.xlu1 %5070, %v6652_v16   ;;  %1515 = vadd.xlane.f32.xlu0 %v6659_v12 }
 0x4e4   :  { %1785 = vperm.xlu1 %5070, %v6664_v35   ;;  %1511 = vadd.xlane.f32.xlu0 %v6668_v8 }
 0x4fa   :  { %1800 = vperm.xlu0 %5071, %v6676_v40  }
 0x4fe   :  { %1790 = vperm.xlu0 %5071, %v6683_v61  }
 0x508   :  { %1517 = vadd.xlane.f32.xlu1 %v6688_v20 }
 0x50c   :  { %1513 = vadd.xlane.f32.xlu1 %v6693_v33 }
 0x51d   :  { %1815 = vperm.xlu1 %5070, %v6700_v3   ;;  %1523 = vadd.xlane.f32.xlu0 %v6708_v62 }
 0x521   :  { %1805 = vperm.xlu1 %5070, %v6713_v14   ;;  %1519 = vadd.xlane.f32.xlu0 %v6717_v34  ;;  %v6785_v14 = vpop.xlane.xlu0 %1483 }
 0x537   :  { %1820 = vperm.xlu0 %5071, %v6726_v18  }
 0x53b   :  { %1810 = vperm.xlu0 %5071, %v6734_v30  }
 0x545   :  { %1525 = vadd.xlane.f32.xlu1 %v6739_v49 }
 0x549   :  { %1521 = vadd.xlane.f32.xlu1 %v6744_v45 }
 0x55a   :  { %1835 = vperm.xlu1 %5070, %v6754_v46   ;;  %1531 = vadd.xlane.f32.xlu0 %v6762_v15  ;;  %v6783_v46 = vadd.f32 %v6564_v59, %v6432_v43 }
 0x55c   :  { %9560 = vst [vmem:[#allocation17_spill] sm:$0xff] %v6783_v46  ;;  %v6788_v15 = vmul.f32 0.03125, %v6783_v46  ;;  %v6807_v0 = vmul.f32 %v6783_v46, %v6783_v46 }
 0x55e   :  { %1825 = vperm.xlu1 %5070, %v6769_v58   ;;  %1527 = vadd.xlane.f32.xlu0 %v6773_v25  ;;  %9561 = vst [vmem:[#allocation58_spill] sm:$0xff] %v6788_v15  ;;  %v6794_v58 = vpop.permute.xlu0 %1705  ;;  %v6796_v25 = vpop.permute.xlu1 %1725  ;;  %9567 = vst [vmem:[#allocation19_spill] sm:$0xff] %v6807_v0 }
 0x55f   :  { %9563 = vst [vmem:[#allocation21_spill] sm:$0xff] %v6794_v58  ;;  %9564 = vst [vmem:[#allocation56_spill] sm:$0xff] %v6796_v25 }
 0x562   :  { %v1494_v59 = vpop.xlane.xlu1 %1493  ;;  %v6803_v19 = vpop.permute.xlu0 %1720 }
 0x563   :  { %9566 = vst [vmem:[#allocation30_spill] sm:$0xff] %v6803_v19 }
 0x566   :  { %v1482_v3 = vpop.xlane.xlu0 %1481  ;;  %v1490_v34 = vpop.xlane.xlu1 %1489 }
 0x567   :  { %v1576_v17 = vsub.f32 %v1482_v3, %v6481_v54  ;;  %v6875_v3 = vadd.f32 %v6582_v7, %v6432_v43 }
 0x569   :  { %v1608_v30 = vmul.f32 0.03125, %v1576_v17  ;;  %v1646_v17 = vmul.f32 %v6510_v27, %v6510_v27 }
 0x56a   :  { %v6810_v58 = vpop.xlane.xlu0 %1491  ;;  %v6812_v25 = vpop.permute.xlu1 %1755 }
 0x56b   :  { %9568 = vst [vmem:[#allocation25_spill] sm:$0xff] %v6812_v25 }
 0x56e   :  { %v6821_v19 = vpop.permute.xlu1 %1745 }
 0x56f   :  { %9570 = vst [vmem:[#allocation23_spill] sm:$0xff] %v6821_v19 }
 0x572   :  { %v1502_v46 = vpop.xlane.xlu1 %1501 }
 0x574   :  { %1840 = vperm.xlu0 %5071, %v6788_v15   ;;  %v6816_v15 = vmul.f32 %v6792_v57, %v6792_v57  ;;  %v6836_v57 = vadd.f32 %v6579_v23, %v6432_v43  ;;  %v1578_v23 = vsub.f32 %v1486_v41, %v6467_v51  ;;  %v1640_v51 = vmul.f32 %v6474_v53, %v6474_v53 }
 0x575   :  { %v1586_v53 = vsub.f32 %v1502_v46, %v6592_v31 }
 0x576   :  { %9569 = vst [vmem:[#allocation27_spill] sm:$0xff] %v6816_v15  ;;  %v1498_v25 = vpop.xlane.xlu1 %1497  ;;  %9575 = vst [vmem:[#allocation65_spill] sm:$0xff] %v6836_v57 }
 0x577   :  { %v1584_v27 = vsub.f32 %v1498_v25, %v6597_v4 }
 0x578   :  { %1830 = vperm.xlu0 %5071, %v6800_v39   ;;  %v6819_v39 = vpop.xlane.xlu0 %1487 }
 0x57c   :  { %v6823_v35 = vpop.permute.xlu0 %1740 }
 0x57d   :  { %9571 = vst [vmem:[#allocation43_spill] sm:$0xff] %v6823_v35 }
 0x580   :  { %v6829_v62 = vpop.permute.xlu0 %1730 }
 0x581   :  { %9573 = vst [vmem:[#allocation63_spill] sm:$0xff] %v6829_v62  ;;  %v6849_v62 = vpop.permute.xlu1 %1775 }
 0x582   :  { %1533 = vadd.xlane.f32.xlu1 %v6807_v0  ;;  %v6827_v0 = vadd.f32 %v6577_v21, %v6432_v43  ;;  %v6847_v21 = vmul.f32 0.03125, %v6836_v57  ;;  %9578 = vst [vmem:[#allocation68_spill] sm:$0xff] %v6849_v62  ;;  %v1642_v62 = vmul.f32 %v6457_v50, %v6457_v50 }
 0x584   :  { %9572 = vst [vmem:[#allocation36_spill] sm:$0xff] %v6827_v0  ;;  %v6832_v16 = vmul.f32 0.03125, %v6827_v0  ;;  %v6840_v19 = vmul.f32 %v6827_v0, %v6827_v0  ;;  %v6842_v35 = vpop.xlane.xlu0 %1499  ;;  %9577 = vst [vmem:[#allocation67_spill] sm:$0xff] %v6847_v21 }
 0x586   :  { %1529 = vadd.xlane.f32.xlu1 %v6816_v15  ;;  %9574 = vst [vmem:[#allocation64_spill] sm:$0xff] %v6832_v16  ;;  %9576 = vst [vmem:[#allocation66_spill] sm:$0xff] %v6840_v19  ;;  %v6853_v15 = vmul.f32 %v6836_v57, %v6836_v57 }
 0x588   :  { %9579 = vst [vmem:[#allocation69_spill] sm:$0xff] %v6853_v15  ;;  %v6858_v0 = vpop.xlane.xlu0 %1495 }
 0x58c   :  { %v6862_v8 = vpop.permute.xlu0 %1760 }
 0x58d   :  { %9581 = vst [vmem:[#allocation71_spill] sm:$0xff] %v6862_v8  ;;  %v1580_v8 = vsub.f32 %v1490_v34, %v6527_v13  ;;  %v6887_v13 = vadd.f32 %v6584_v56, %v6432_v43  ;;  %v1650_v43 = vmul.f32 %v6572_v24, %v6572_v24  ;;  %v1616_v56 = vmul.f32 0.03125, %v1584_v27 }
 0x597   :  { %1855 = vperm.xlu1 %5070, %v6832_v16   ;;  %1539 = vadd.xlane.f32.xlu0 %v6840_v19  ;;  %v6860_v16 = vpop.permute.xlu1 %1765  ;;  %v1610_v19 = vmul.f32 0.03125, %v1578_v23  ;;  %v1672_v23 = vsub.f32 %v1608_v30, %v1640_v51  ;;  %v6883_v30 = vmul.f32 0.03125, %v6875_v3  ;;  %v1648_v51 = vmul.f32 %v6587_v52, %v6587_v52 }
 0x598   :  { %9580 = vst [vmem:[#allocation70_spill] sm:$0xff] %v6860_v16  ;;  %v1641_v52 = vmul.f32 %v6438_v2, %v6438_v2 }
 0x599   :  { %v1674_v12 = vsub.f32 %v1610_v19, %v1642_v62  ;;  %v1896_v54 = vadd.f32 1e-05, %v1672_v23  ;;  %v1612_v62 = vmul.f32 0.03125, %v1580_v8  ;;  %v1618_v8 = vmul.f32 0.03125, %v1586_v53 }
 0x59a   :  { %v1680_v24 = vsub.f32 %v1616_v56, %v1648_v51 }
 0x59b   :  { %1845 = vperm.xlu1 %5070, %v6847_v21   ;;  %1535 = vadd.xlane.f32.xlu0 %v6853_v15  ;;  %v1510_v57 = vpop.xlane.xlu1 %1509  ;;  %v1582_v21 = vsub.f32 %v1494_v59, %v6522_v5  ;;  %v6868_v15 = vpop.permute.xlu0 %1750  ;;  %v1898_v41 = vadd.f32 1e-05, %v1674_v12  ;;  %v1644_v12 = vmul.f32 %v6517_v9, %v6517_v9  ;;  %v1682_v4 = vsub.f32 %v1618_v8, %v1650_v43 }
 0x59c   :  { %v1590_v59 = vsub.f32 %v1510_v57, %v6640_v63  ;;  %v1654_v63 = vmul.f32 %v6628_v11, %v6628_v11  ;;  %v6923_v57 = vmul.f32 %v6875_v3, %v6875_v3  ;;  %v1581_v8 = vsub.f32 %v6810_v58, %v6493_v29 }
 0x59d   :  { %v1614_v45 = vmul.f32 0.03125, %v1582_v21  ;;  %5232 = vrsqrt.f32 %v1898_v41  ;;  %v1676_v31 = vsub.f32 %v1612_v62, %v1644_v12  ;;  %v1577_v41 = vsub.f32 %v6785_v14, %v6442_v1 }
 0x59e   :  { %5234 = vrsqrt.f32 %v1896_v54  ;;  %v1622_v54 = vmul.f32 0.03125, %v1590_v59  ;;  %v1575_v1 = vsub.f32 %v6766_v37, %v6462_v26  ;;  %v1904_v14 = vadd.f32 1e-05, %v1680_v24 }
 0x59f   :  { %v1506_v16 = vpop.xlane.xlu1 %1505  ;;  %v6877_v50 = vpop.xlane.xlu0 %1507  ;;  %v1678_v5 = vsub.f32 %v1614_v45, %v1646_v17  ;;  %v6898_v45 = vmul.f32 0.03125, %v6887_v13  ;;  %v1900_v25 = vadd.f32 1e-05, %v1676_v31  ;;  %v1906_v17 = vadd.f32 1e-05, %v1682_v4 }
 0x5a0   :  { %v1609_v12 = vmul.f32 0.03125, %v1577_v41  ;;  %v1652_v26 = vmul.f32 %v6635_v10, %v6635_v10  ;;  %v1607_v37 = vmul.f32 0.03125, %v1575_v1  ;;  %v6935_v43 = vmul.f32 %v6887_v13, %v6887_v13  ;;  %v5081_v1 = vld [vmem:[#allocation2 + $0x88] sm:$0xff]  }
 0x5a1   :  { %v1902_v46 = vadd.f32 1e-05, %v1678_v5  ;;  %v1588_v5 = vsub.f32 %v1506_v16, %v6645_v28  ;;  %v1686_v16 = vsub.f32 %v1622_v54, %v1654_v63  ;;  %v1639_v59 = vmul.f32 %v6453_v48, %v6453_v48 }
 0x5a2   :  { %v1673_v31 = vsub.f32 %v1609_v12, %v1641_v52  ;;  %v1658_v29 = vmul.f32 %v6676_v40, %v6676_v40  ;;  %v1613_v51 = vmul.f32 0.03125, %v1581_v8  ;;  %v1579_v41 = vsub.f32 %v6819_v39, %v6502_v36 }
 0x5a3   :  { %v6889_v7 = vpop.permute.xlu1 %1795  ;;  %v6894_v34 = vpop.xlane.xlu0 %1503  ;;  %5236 = vrsqrt.f32 %v1902_v46  ;;  %v1620_v28 = vmul.f32 0.03125, %v1588_v5  ;;  %v1645_v54 = vmul.f32 %v6486_v47, %v6486_v47  ;;  %v1585_v40 = vsub.f32 %v6842_v35, %v6541_v6 }
 0x5a4   :  { %5238 = vrsqrt.f32 %v1900_v25  ;;  %v1897_v58 = vadd.f32 1e-05, %v1673_v31  ;;  %v1611_v63 = vmul.f32 0.03125, %v1579_v41  ;;  %v1643_v6 = vmul.f32 %v6498_v32, %v6498_v32  ;;  %v5084_v41 = vld [vmem:[#allocation2 + $0xa0] sm:$0xff]  }
 0x5a5   :  { %5240 = vrsqrt.f32 %v1906_v17  ;;  %v1684_v56 = vsub.f32 %v1620_v28, %v1652_v26  ;;  %v1677_v12 = vsub.f32 %v1613_v51, %v1645_v54  ;;  %v1583_v35 = vsub.f32 %v6858_v0, %v6550_v22 }
 0x5a6   :  { %5242 = vrsqrt.f32 %v1904_v14  ;;  %v1589_v22 = vsub.f32 %v6877_v50, %v6611_v55  ;;  %v1587_v50 = vsub.f32 %v6894_v34, %v6620_v42  ;;  %v9583_v42 = vld [vmem:[#allocation22_spill] sm:$0xff] }
 0x5a7   :  { %v6902_v19 = vpop.permute.xlu0 %1780  ;;  %v6904_v9 = vpop.permute.xlu1 %1785  ;;  %v1901_v28 = vadd.f32 1e-05, %v1677_v12  ;;  %v1660_v34 = vmul.f32 %v9583_v42, %v9583_v42  ;;  %v9592_v42 = vld [vmem:[#allocation61_spill] sm:$0xff] }
 0x5a8   :  { %v5233_v21 = vpop.eup %5232  ;;  %v1621_v55 = vmul.f32 0.03125, %v1589_v22  ;;  %v9587_v22 = vld [vmem:[#allocation8_spill] sm:$0xff] }
 0x5a9   :  { %v5235_v53 = vpop.eup %5234 }
 0x5ab   :  { %v1518_v23 = vpop.xlane.xlu1 %1517  ;;  %v6913_v62 = vpop.permute.xlu0 %1770 }
 0x5ac   :  { %v1594_v27 = vsub.f32 %v1518_v23, %v6688_v20  ;;  %v1910_v20 = vadd.f32 1e-05, %v1686_v16  ;;  %v5080_v23 = vld [vmem:[#allocation2 + $0x80] sm:$0xff]  }
 0x5ad   :  { %v5237_v2 = vpop.eup %5236  ;;  %4918 = vmatprep.subr.bf16.mxu0 %v5080_v23 }
 0x5ae   :  { %v1626_v25 = vmul.f32 0.03125, %v1594_v27  ;;  %v5239_v10 = vpop.eup %5238  ;;  %5244 = vrsqrt.f32 %v1910_v20  ;;  %4919 = vmatpush3.bf16.msra.mxu0 %v5080_v23  ;;  %v1675_v27 = vsub.f32 %v1611_v63, %v1643_v6  ;;  %v1615_v20 = vmul.f32 0.03125, %v1583_v35 }
 0x5af   :  { %v6926_v46 = vpop.xlane.xlu0 %1515  ;;  %v1514_v11 = vpop.xlane.xlu1 %1513  ;;  %5246 = vrsqrt.f32 %v1897_v58  ;;  %4920 = vmatprep.subr.bf16.mxu0 %v5081_v1 }
 0x5b0   :  { %v1592_v4 = vsub.f32 %v1514_v11, %v6693_v33  ;;  %v1908_v33 = vadd.f32 1e-05, %v1684_v56  ;;  %v1690_v17 = vsub.f32 %v1626_v25, %v1658_v29  ;;  %v5241_v5 = vpop.eup %5240  ;;  %v5082_v11 = vld [vmem:[#allocation2 + $0x90] sm:$0xff]   ;;  %v1899_v0 = vadd.f32 1e-05, %v1675_v27  ;;  %v5083_v56 = vld [vmem:[#allocation2 + $0x98] sm:$0xff]  }
 0x5b1   :  { %1860 = vperm.xlu0 %5071, %v6883_v30   ;;  %v5243_v16 = vpop.eup %5242 }
 0x5b2   :  { %v1624_v48 = vmul.f32 0.03125, %v1592_v4  ;;  %5248 = vrsqrt.f32 %v1908_v33  ;;  %v1914_v47 = vadd.f32 1e-05, %v1690_v17  ;;  %4921 = vmatpush3.bf16.msra.mxu0 %v5081_v1 }
 0x5b3   :  { %v6945_v24 = vpop.xlane.xlu0 %1511  ;;  %v6953_v39 = vpop.permute.xlu1 %1815  ;;  %4922 = vmatprep.subr.bf16.mxu0 %v5082_v11 }
 0x5b5   :  { %1850 = vperm.xlu0 %5071, %v6898_v45  }
 0x5b6   :  { %4923 = vmatpush3.bf16.msra.mxu0 %v5082_v11 }
 0x5b7   :  { %v6955_v52 = vpop.permute.xlu0 %1800  ;;  %v6963_v26 = vpop.permute.xlu1 %1805  ;;  %4924 = vmatprep.subr.bf16.mxu0 %v5083_v56 }
 0x5b8   :  { %v5245_v32 = vpop.eup %5244 }
 0x5b9   :  { %1976 = vperm.xlu0 %5071, %v5233_v21   ;;  %v1671_v21 = vsub.f32 %v1607_v37, %v1639_v59  ;;  %v5247_v4 = vpop.eup %5246 }
 0x5ba   :  { %4925 = vmatpush3.bf16.msra.mxu0 %v5083_v56 }
 0x5bb   :  { %v1895_v36 = vadd.f32 1e-05, %v1671_v21  ;;  %v6965_v37 = vpop.permute.xlu0 %1790  ;;  %4926 = vmatprep.subr.bf16.mxu0 %v5084_v41 }
 0x5bc   :  { %v5249_v29 = vpop.eup %5248 }
 0x5bd   :  { %1966 = vperm.xlu0 %5071, %v5235_v53   ;;  %v1656_v53 = vmul.f32 %v6683_v61, %v6683_v61  ;;  %v1617_v61 = vmul.f32 0.03125, %v1585_v40  ;;  %5250 = vrsqrt.f32 %v1895_v36  ;;  %v9584_v36 = vld [vmem:[#allocation6_spill] sm:$0xff] }
 0x5be   :  { %5252 = vrsqrt.f32 %v1914_v47  ;;  %4927 = vmatpush3.bf16.msra.mxu0 %v5084_v41  ;;  %v1593_v12 = vsub.f32 %v6926_v46, %v9584_v36  ;;  %v5085_v47 = vld [vmem:[#allocation2 + $0xa8] sm:$0xff]   ;;  %v9593_v36 = vld [vmem:[#allocation59_spill] sm:$0xff] }
 0x5bf   :  { %1541 = vadd.xlane.f32.xlu1 %v6923_v57  ;;  %v1688_v14 = vsub.f32 %v1624_v48, %v1656_v53  ;;  %5254 = vrsqrt.f32 %v1901_v28  ;;  %v6971_v59 = vpop.xlane.xlu0 %1523  ;;  %v9582_v48 = vld [vmem:[#allocation28_spill] sm:$0xff]  ;;  %4928 = vmatprep.subr.bf16.mxu0 %v5085_v47  ;;  %v9586_v28 = vld [vmem:[#allocation11_spill] sm:$0xff] }
 0x5c0   :  { %v1591_v27 = vsub.f32 %v6945_v24, %v9586_v28 }
 0x5c1   :  { %1996 = vperm.xlu0 %5071, %v5237_v2   ;;  %v1649_v2 = vmul.f32 %v6534_v38, %v6534_v38  ;;  %v1912_v31 = vadd.f32 1e-05, %v1688_v14  ;;  %v1647_v38 = vmul.f32 %v6546_v44, %v6546_v44  ;;  %v1662_v44 = vmul.f32 %v6726_v18, %v6726_v18 }
 0x5c2   :  { %v1619_v18 = vmul.f32 0.03125, %v1587_v50  ;;  %4929 = vmatpush3.bf16.msra.mxu0 %v5085_v47  ;;  %v1623_v56 = vmul.f32 0.03125, %v1591_v27 }
 0x5c3   :  { %1537 = vadd.xlane.f32.xlu1 %v6935_v43  ;;  %v1681_v8 = vsub.f32 %v1617_v61, %v1649_v2  ;;  %5256 = vrsqrt.f32 %v1912_v31  ;;  %v1679_v21 = vsub.f32 %v1615_v20, %v1647_v38  ;;  %v1625_v2 = vmul.f32 0.03125, %v1593_v12 }
 0x5c4   :  { %5258 = vrsqrt.f32 %v1899_v0  ;;  %v1657_v0 = vmul.f32 %v9587_v22, %v9587_v22  ;;  %v1659_v12 = vmul.f32 %v9593_v36, %v9593_v36  ;;  %v9601_v36 = vld [vmem:[#allocation66_spill] sm:$0xff] }
 0x5c5   :  { %1986 = vperm.xlu0 %5071, %v5239_v10   ;;  %v1905_v58 = vadd.f32 1e-05, %v1681_v8  ;;  %v1903_v40 = vadd.f32 1e-05, %v1679_v21  ;;  %v5086_v8 = vld [vmem:[#allocation2 + $0xb0] sm:$0xff]  }
 0x5c6   :  { %4930 = vmatprep.subr.bf16.mxu0 %v5086_v8  ;;  %v1689_v38 = vsub.f32 %v1625_v2, %v1657_v0  ;;  %v9596_v2 = vld [vmem:[#allocation13_spill] sm:$0xff] }
 0x5c7   :  { %v5251_v33 = vpop.eup %5250  ;;  %5260 = vrsqrt.f32 %v1905_v58  ;;  %4931 = vmatpush3.bf16.msra.mxu0 %v5086_v8  ;;  %v9589_v58 = vld [vmem:[#allocation47_spill] sm:$0xff] }
 0x5c8   :  { %v1655_v21 = vmul.f32 %v9589_v58, %v9589_v58  ;;  %v9597_v58 = vld [vmem:[#allocation19_spill] sm:$0xff] }
 0x5c9   :  { %2016 = vperm.xlu0 %5071, %v5241_v5   ;;  %v5253_v5 = vpop.eup %5252 }
 0x5ca   :  { %v5255_v14 = vpop.eup %5254  ;;  %v1687_v50 = vsub.f32 %v1623_v56, %v1655_v21 }
 0x5cd   :  { %2006 = vperm.xlu0 %5071, %v5243_v16   ;;  %v9585_v16 = vld [vmem:[#allocation55_spill] sm:$0xff]  ;;  %v5257_v35 = vpop.eup %5256 }
 0x5ce   :  { %v1651_v6 = vmul.f32 %v9585_v16, %v9585_v16  ;;  %v5259_v20 = vpop.eup %5258 }
 0x5d0   :  { %v1683_v11 = vsub.f32 %v1619_v18, %v1651_v6 }
 0x5d1   :  { %2036 = vperm.xlu0 %5071, %v5245_v32  }
 0x5d2   :  { %v1526_v25 = vpop.xlane.xlu1 %1525  ;;  %v1907_v24 = vadd.f32 1e-05, %v1683_v11 }
 0x5d3   :  { %v1598_v10 = vsub.f32 %v1526_v25, %v6739_v49  ;;  %v1653_v49 = vmul.f32 %v6604_v60, %v6604_v60  ;;  %v1520_v60 = vpop.xlane.xlu0 %1519  ;;  %v9588_v25 = vld [vmem:[#allocation18_spill] sm:$0xff] }
 0x5d4   :  { %1971 = vperm.xlu1 %5070, %v5247_v4   ;;  %v1597_v4 = vsub.f32 %v6971_v59, %v9588_v25  ;;  %v9591_v59 = vld [vmem:[#allocation14_spill] sm:$0xff] }
 0x5d5   :  { %v1630_v51 = vmul.f32 0.03125, %v1598_v10  ;;  %2026 = vperm.xlu0 %5071, %v5249_v29   ;;  %v1685_v53 = vsub.f32 %v1621_v55, %v1653_v49  ;;  %v5087_v10 = vld [vmem:[#allocation2 + $0xb8] sm:$0xff]   ;;  %v5261_v29 = vpop.eup %5260 }
 0x5d6   :  { %v1522_v23 = vpop.xlane.xlu1 %1521  ;;  %4932 = vmatprep.subr.bf16.mxu0 %v5087_v10  ;;  %v1629_v41 = vmul.f32 0.03125, %v1597_v4  ;;  %v9590_v49 = vld [vmem:[#allocation16_spill] sm:$0xff] }
 0x5d7   :  { %v1694_v17 = vsub.f32 %v1630_v51, %v1662_v44  ;;  %v1596_v54 = vsub.f32 %v1522_v23, %v9582_v48  ;;  %v1909_v46 = vadd.f32 1e-05, %v1685_v53  ;;  %v6989_v31 = vpop.permute.xlu0 %1820  ;;  %4933 = vmatpush3.bf16.msra.mxu0 %v5087_v10  ;;  %v1913_v51 = vadd.f32 1e-05, %v1689_v38 }
 0x5d8   :  { %1961 = vperm.xlu1 %5070, %v5251_v33   ;;  %v1595_v23 = vsub.f32 %v1520_v60, %v9590_v49 }
 0x5d9   :  { %v1918_v63 = vadd.f32 1e-05, %v1694_v17  ;;  %v1628_v1 = vmul.f32 0.03125, %v1596_v54  ;;  %2056 = vperm.xlu0 %5071, %v5253_v5   ;;  %v1661_v17 = vmul.f32 %v9591_v59, %v9591_v59  ;;  %v1911_v54 = vadd.f32 1e-05, %v1687_v50  ;;  %v9598_v50 = vld [vmem:[#allocation58_spill] sm:$0xff] }
 0x5da   :  { %v1627_v53 = vmul.f32 0.03125, %v1595_v23  ;;  %v7010_v25 = vpop.permute.xlu1 %1835  ;;  %v9599_v23 = vld [vmem:[#allocation27_spill] sm:$0xff] }
 0x5db   :  { %5262 = vrsqrt.f32 %v1918_v63  ;;  %v1692_v61 = vsub.f32 %v1628_v1, %v1660_v34  ;;  %v6997_v55 = vpop.permute.xlu0 %1810 }
 0x5dc   :  { %5264 = vrsqrt.f32 %v1903_v40  ;;  %1991 = vperm.xlu1 %5070, %v5255_v14   ;;  %v1693_v40 = vsub.f32 %v1629_v41, %v1661_v17  ;;  %v1691_v1 = vsub.f32 %v1627_v53, %v1659_v12  ;;  %v9594_v14 = vld [vmem:[#allocation35_spill] sm:$0xff] }
 0x5dd   :  { %v1916_v32 = vadd.f32 1e-05, %v1692_v61  ;;  %2046 = vperm.xlu0 %5071, %v5257_v35   ;;  %v9595_v61 = vld [vmem:[#allocation40_spill] sm:$0xff]  ;;  %v9600_v17 = vld [vmem:[#allocation15_spill] sm:$0xff] }
 0x5de   :  { %v1917_v63 = vadd.f32 1e-05, %v1693_v40  ;;  %v1665_v35 = vmul.f32 %v9595_v61, %v9595_v61  ;;  %v1915_v28 = vadd.f32 1e-05, %v1691_v1  ;;  %v7012_v10 = vpop.permute.xlu1 %1825 }
 0x5df   :  { %5266 = vrsqrt.f32 %v1916_v32  ;;  %v1663_v32 = vmul.f32 %v9596_v2, %v9596_v2 }
 0x5e0   :  { %1981 = vperm.xlu1 %5070, %v5259_v20   ;;  %5268 = vrsqrt.f32 %v1909_v46 }
 0x5e1   :  { %5270 = vrsqrt.f32 %v1907_v24 }
 0x5e2   :  { %5272 = vrsqrt.f32 %v1913_v51 }
 0x5e3   :  { %5274 = vrsqrt.f32 %v1911_v54 }
 0x5e4   :  { %2011 = vperm.xlu1 %5070, %v5261_v29   ;;  %5276 = vrsqrt.f32 %v1917_v63  ;;  %v9602_v63 = vld [vmem:[#allocation64_spill] sm:$0xff] }
 0x5e5   :  { %v5263_v44 = vpop.eup %5262  ;;  %5278 = vrsqrt.f32 %v1915_v28  ;;  %v1669_v1 = vmul.f32 %v9602_v63, %v9602_v63  ;;  %v9604_v28 = vld [vmem:[#allocation67_spill] sm:$0xff] }
 0x5e6   :  { %v5265_v33 = vpop.eup %5264  ;;  %2076 = vperm.xlu0 %5071, %v5263_v44   ;;  %v1666_v44 = vmul.f32 %v9598_v50, %v9598_v50  ;;  %v1670_v50 = vmul.f32 %v6883_v30, %v6883_v30 }
 0x5e7   :  { %v1532_v48 = vpop.xlane.xlu0 %1531 }
 0x5e8   :  { %2001 = vperm.xlu1 %5070, %v5265_v33   ;;  %v1601_v34 = vsub.f32 %v1532_v48, %v9592_v42  ;;  %v1664_v48 = vmul.f32 %v9600_v17, %v9600_v17 }
 0x5e9   :  { %v5267_v5 = vpop.eup %5266 }
 0x5ea   :  { %2066 = vperm.xlu0 %5071, %v5267_v5   ;;  %v5269_v18 = vpop.eup %5268  ;;  %v1633_v47 = vmul.f32 0.03125, %v1601_v34 }
 0x5eb   :  { %v1528_v60 = vpop.xlane.xlu0 %1527  ;;  %v5271_v6 = vpop.eup %5270 }
 0x5ec   :  { %2031 = vperm.xlu1 %5070, %v5269_v18   ;;  %v1599_v16 = vsub.f32 %v1528_v60, %v9594_v14  ;;  %v1697_v27 = vsub.f32 %v1633_v47, %v1665_v35  ;;  %v5273_v11 = vpop.eup %5272 }
 0x5ed   :  { %v5275_v22 = vpop.eup %5274 }
 0x5ee   :  { %v1631_v46 = vmul.f32 0.03125, %v1599_v16  ;;  %v1921_v8 = vadd.f32 1e-05, %v1697_v27  ;;  %v5277_v56 = vpop.eup %5276  ;;  %v1667_v27 = vmul.f32 %v9604_v28, %v9604_v28  ;;  %v9613_v28 = vld [vmem:[#allocation37_spill] sm:$0xff] }
 0x5ef   :  { %v5279_v24 = vpop.eup %5278 }
 0x5f0   :  { %2021 = vperm.xlu1 %5070, %v5271_v6   ;;  %v1695_v20 = vsub.f32 %v1631_v46, %v1663_v32  ;;  %5280 = vrsqrt.f32 %v1921_v8  ;;  %v9603_v6 = vld [vmem:[#allocation69_spill] sm:$0xff] }
 0x5f2   :  { %v1919_v0 = vadd.f32 1e-05, %v1695_v20 }
 0x5f3   :  { %v7020_v40 = vpop.permute.xlu0 %1840 }
 0x5f4   :  { %2051 = vperm.xlu1 %5070, %v5273_v11   ;;  %5282 = vrsqrt.f32 %v1919_v0 }
 0x5f7   :  { %v7022_v42 = vpop.permute.xlu0 %1830 }
 0x5f8   :  { %2041 = vperm.xlu1 %5070, %v5275_v22  }
 0x5fa   :  { %v5281_v38 = vpop.eup %5280 }
 0x5fc   :  { %2071 = vperm.xlu1 %5070, %v5277_v56  }
 0x5fe   :  { %v5283_v4 = vpop.eup %5282 }
 0x600   :  { %2061 = vperm.xlu1 %5070, %v5279_v24  }
 0x604   :  { %2091 = vperm.xlu1 %5070, %v5281_v38  }
 0x608   :  { %2081 = vperm.xlu1 %5070, %v5283_v4  }
 0x60f   :  { %v1534_v29 = vpop.xlane.xlu1 %1533 }
 0x610   :  { %v1602_v21 = vsub.f32 %v1534_v29, %v9597_v58 }
 0x612   :  { %v1634_v51 = vmul.f32 0.03125, %v1602_v21 }
 0x613   :  { %v1530_v41 = vpop.xlane.xlu1 %1529 }
 0x614   :  { %v1698_v49 = vsub.f32 %v1634_v51, %v1666_v44  ;;  %v1600_v33 = vsub.f32 %v1530_v41, %v9599_v23  ;;  %v9605_v51 = vld [vmem:[#allocation5_spill] sm:$0xff] }
 0x615   :  { %v9228_v41 = vsub.s32 4, %v9605_v51 }
 0x616   :  { %v1922_v59 = vadd.f32 1e-05, %v1698_v49  ;;  %v1632_v54 = vmul.f32 0.03125, %v1600_v33  ;;  %v9606_v33 = vld [vmem:[#allocation7_spill] sm:$0xff] }
 0x617   :  { %v7034_v24 = vpop.permute.xlu1 %1855 }
 0x618   :  { %5284 = vrsqrt.f32 %v1922_v59  ;;  %v1696_v5 = vsub.f32 %v1632_v54, %v1664_v48  ;;  %v9607_v59 = vld [vmem:[#allocation38_spill] sm:$0xff] }
 0x619   :  { %v1864_v17 = vsub.f32 %v9607_v59, %v9606_v33 }
 0x61a   :  { %v1920_v53 = vadd.f32 1e-05, %v1696_v5  ;;  %v9608_v5 = vld [vmem:[#allocation9_spill] sm:$0xff] }
 0x61b   :  { %v7036_v4 = vpop.permute.xlu1 %1845 }
 0x61c   :  { %5286 = vrsqrt.f32 %v1920_v53  ;;  %v9609_v53 = vld [vmem:[#allocation29_spill] sm:$0xff] }
 0x622   :  { %v5285_v34 = vpop.eup %5284 }
 0x623   :  { %2096 = vperm.xlu0 %5071, %v5285_v34   ;;  %v1865_v34 = vsub.f32 %v9609_v53, %v9608_v5 }
 0x624   :  { %v1540_v18 = vpop.xlane.xlu0 %1539 }
 0x625   :  { %v1605_v12 = vsub.f32 %v1540_v18, %v9601_v36  ;;  %v9610_v18 = vld [vmem:[#allocation30_spill] sm:$0xff] }
 0x626   :  { %v5287_v60 = vpop.eup %5286 }
 0x627   :  { %v1637_v47 = vmul.f32 0.03125, %v1605_v12  ;;  %2086 = vperm.xlu0 %5071, %v5287_v60   ;;  %v1668_v60 = vmul.f32 %v6898_v45, %v6898_v45  ;;  %v9612_v45 = vld [vmem:[#allocation21_spill] sm:$0xff] }
 0x628   :  { %v1536_v14 = vpop.xlane.xlu0 %1535 }
 0x629   :  { %v1701_v16 = vsub.f32 %v1637_v47, %v1669_v1  ;;  %v1603_v61 = vsub.f32 %v1536_v14, %v9603_v6  ;;  %v7056_v1 = vld [vmem:[%s9121_s2] sm:$0xff]  ;;  %v2189_v47 = vsub.s32 5, %v9605_v51 }
 0x62b   :  { %v1925_v35 = vadd.f32 1e-05, %v1701_v16  ;;  %v1635_v46 = vmul.f32 0.03125, %v1603_v61 }
 0x62d   :  { %5288 = vrsqrt.f32 %v1925_v35  ;;  %v1699_v11 = vsub.f32 %v1635_v46, %v1667_v27  ;;  %v1863_v27 = vsub.f32 %v9613_v28, %v9612_v45 }
 0x62f   :  { %v1923_v2 = vadd.f32 1e-05, %v1699_v11 }
 0x630   :  { %v7030_v32 = vpop.permute.xlu0 %1860 }
 0x631   :  { %5290 = vrsqrt.f32 %v1923_v2 }
 0x634   :  { %v7032_v8 = vpop.permute.xlu0 %1850 }
 0x637   :  { %v5289_v20 = vpop.eup %5288 }
 0x638   :  { %2111 = vperm.xlu1 %5070, %v5289_v20   ;;  %v1977_v22 = vpop.permute.xlu0 %1976  ;;  %v7069_v20 = vrot.slane %v7056_v1, %v2189_v47  ;;  %v9625_v47 = vld [vmem:[#allocation41_spill] sm:$0xff] }
 0x63b   :  { %v5291_v0 = vpop.eup %5290 }
 0x63c   :  { %2101 = vperm.xlu1 %5070, %v5291_v0   ;;  %v1967_v56 = vpop.permute.xlu0 %1966 }
 0x63d   :  { %v2120_v12 = vmul.f32 %v1967_v56, %v1864_v17  ;;  %v9619_v17 = vld [vmem:[#allocation62_spill] sm:$0xff] }
 0x640   :  { %v1997_v38 = vpop.permute.xlu0 %1996 }
 0x644   :  { %v1987_v29 = vpop.permute.xlu0 %1986 }
 0x648   :  { %v7042_v49 = vpop.permute.xlu0 %2016 }
 0x64c   :  { %v1542_v58 = vpop.xlane.xlu1 %1541  ;;  %v2007_v35 = vpop.permute.xlu0 %2006 }
 0x64d   :  { %v1606_v21 = vsub.f32 %v1542_v58, %v6923_v57  ;;  %v9611_v57 = vld [vmem:[#allocation31_spill] sm:$0xff]  ;;  %v9615_v58 = vld [vmem:[#allocation42_spill] sm:$0xff] }
 0x64e   :  { %v1866_v36 = vsub.f32 %v9611_v57, %v9610_v18 }
 0x64f   :  { %v1638_v44 = vmul.f32 0.03125, %v1606_v21 }
 0x650   :  { %v1538_v23 = vpop.xlane.xlu1 %1537  ;;  %v2122_v14 = vmul.f32 %v1977_v22, %v1866_v36  ;;  %v9614_v22 = vld [vmem:[#allocation63_spill] sm:$0xff]  ;;  %v2037_v36 = vpop.permute.xlu0 %2036 }
 0x651   :  { %v1702_v48 = vsub.f32 %v1638_v44, %v1670_v50  ;;  %v1604_v54 = vsub.f32 %v1538_v23, %v6935_v43  ;;  %v7061_v43 = vrot.slane %v7056_v1, %v9228_v41  ;;  %v1868_v21 = vsub.f32 %v9615_v58, %v9614_v22  ;;  %v9616_v44 = vld [vmem:[#allocation43_spill] sm:$0xff]  ;;  %v9617_v23 = vld [vmem:[#allocation32_spill] sm:$0xff]  ;;  %v9628_v58 = vld [vmem:[#allocation49_spill] sm:$0xff] }
 0x652   :  { %v1870_v33 = vsub.f32 %v9617_v23, %v9616_v44  ;;  %v9627_v22 = vld [vmem:[#allocation71_spill] sm:$0xff] }
 0x653   :  { %v1926_v30 = vadd.f32 1e-05, %v1702_v48  ;;  %v1636_v63 = vmul.f32 0.03125, %v1604_v54  ;;  %v2156_v46 = vmul.f32 %v7061_v43, %v2120_v12  ;;  %v2158_v0 = vmul.f32 %v7061_v43, %v2122_v14  ;;  %v9620_v48 = vld [vmem:[#allocation46_spill] sm:$0xff] }
 0x654   :  { %v1972_v16 = vpop.permute.xlu1 %1971  ;;  %v1869_v54 = vsub.f32 %v9620_v48, %v9619_v17  ;;  %v2124_v53 = vmul.f32 %v1987_v29, %v1868_v21  ;;  %v2126_v57 = vmul.f32 %v1997_v38, %v1870_v33  ;;  %v1874_v21 = vsub.f32 %v9628_v58, %v9627_v22  ;;  %v2027_v44 = vpop.permute.xlu0 %2026  ;;  %v9631_v17 = vld [vmem:[#allocation48_spill] sm:$0xff] }
 0x655   :  { %5292 = vrsqrt.f32 %v1926_v30  ;;  %v1700_v6 = vsub.f32 %v1636_v63, %v1668_v60  ;;  %v2121_v61 = vmul.f32 %v1972_v16, %v1865_v34  ;;  %v7082_v5 = vadd.f32 %v7069_v20, %v2156_v46  ;;  %v9624_v63 = vld [vmem:[#allocation56_spill] sm:$0xff] }
 0x656   :  { %v7086_v18 = vadd.f32 %v7069_v20, %v2158_v0  ;;  %v1867_v14 = vsub.f32 %v9625_v47, %v9624_v63  ;;  %v2160_v29 = vmul.f32 %v7061_v43, %v2124_v53  ;;  %v9637_v22 = vld [vmem:[#allocation60_spill] sm:$0xff] }
 0x657   :  { %v1924_v11 = vadd.f32 1e-05, %v1700_v6  ;;  %v2157_v2 = vmul.f32 %v7061_v43, %v2121_v61  ;;  %9621 = vst [vmem:[#allocation22_spill] sm:$0xff] %v7082_v5  ;;  %v9257_v38 = vmax.f32 %v7082_v5, 0.0  ;;  %v1876_v58 = vsub.f32 %v9637_v22, %v6913_v62  ;;  %v9646_v22 = vld [vmem:[#allocation53_spill] sm:$0xff] }
 0x658   :  { %v1962_v56 = vpop.permute.xlu1 %1961  ;;  %9622 = vst [vmem:[#allocation6_spill] sm:$0xff] %v7086_v18  ;;  %v9260_v28 = vmax.f32 %v7086_v18, 0.0 }
 0x659   :  { %5294 = vrsqrt.f32 %v1924_v11  ;;  %v2119_v50 = vmul.f32 %v1962_v56, %v1863_v27  ;;  %v7077_v59 = vadd.f32 %v7069_v20, %v2157_v2  ;;  %v2162_v27 = vmul.f32 %v7061_v43, %v2126_v57  ;;  %v9626_v11 = vld [vmem:[#allocation45_spill] sm:$0xff] }
 0x65a   :  { %v1872_v2 = vsub.f32 %v9626_v11, %v6868_v15  ;;  %v9630_v15 = vld [vmem:[#allocation25_spill] sm:$0xff] }
 0x65b   :  { %9618 = vst [vmem:[#allocation28_spill] sm:$0xff] %v7077_v59  ;;  %v2155_v34 = vmul.f32 %v7061_v43, %v2119_v50  ;;  %v9259_v16 = vmax.f32 %v7077_v59, 0.0  ;;  %v1873_v48 = vsub.f32 %v9631_v17, %v9630_v15  ;;  %v7122_v57 = vadd.f32 %v7069_v20, %v2162_v27 }
 0x65c   :  { %v1992_v12 = vpop.permute.xlu1 %1991  ;;  %v2128_v53 = vmul.f32 %v2007_v35, %v1872_v2  ;;  %v2057_v2 = vpop.permute.xlu0 %2056 }
 0x65d   :  { %v7089_v30 = vadd.f32 %v7069_v20, %v2155_v34  ;;  %v2125_v60 = vmul.f32 %v1992_v12, %v1869_v54  ;;  %v2272_v50 = vpack.c.bf16 %v9260_v28, %v9259_v16  ;;  %v7118_v54 = vadd.f32 %v7069_v20, %v2160_v29  ;;  %9633 = vst [vmem:[#allocation18_spill] sm:$0xff] %v7122_v57 }
 0x65e   :  { %v2130_v12 = vmul.f32 %v7042_v49, %v1874_v21 }
 0x65f   :  { %9623 = vst [vmem:[#allocation55_spill] sm:$0xff] %v7089_v30  ;;  %v5293_v6 = vpop.eup %5292  ;;  %v2161_v61 = vmul.f32 %v7061_v43, %v2125_v60  ;;  %v9258_v45 = vmax.f32 %v7089_v30, 0.0  ;;  %9632 = vst [vmem:[#allocation8_spill] sm:$0xff] %v7118_v54  ;;  %v9254_v49 = vmax.f32 %v7118_v54, 0.0 }
 0x660   :  { %2116 = vperm.xlu0 %5071, %v5293_v6   ;;  %v1982_v46 = vpop.permute.xlu1 %1981  ;;  %v9636_v6 = vld [vmem:[#allocation44_spill] sm:$0xff]  ;;  %v2166_v11 = vmul.f32 %v7061_v43, %v2130_v12 }
 0x661   :  { %v2123_v0 = vmul.f32 %v1982_v46, %v1867_v14  ;;  %v2271_v56 = vpack.c.bf16 %v9257_v38, %v9258_v45  ;;  %v7113_v23 = vadd.f32 %v7069_v20, %v2161_v61  ;;  %v9635_v14 = vld [vmem:[#allocation23_spill] sm:$0xff]  ;;  %v2164_v61 = vmul.f32 %v7061_v43, %v2128_v53  ;;  %v9640_v53 = vld [vmem:[#allocation68_spill] sm:$0xff] }
 0x662   :  { %v1871_v29 = vsub.f32 %v9636_v6, %v9635_v14 }
 0x663   :  { %9629 = vst [vmem:[#allocation11_spill] sm:$0xff] %v7113_v23  ;;  %v5295_v33 = vpop.eup %5294  ;;  %v2159_v34 = vmul.f32 %v7061_v43, %v2123_v0  ;;  %4934 = vmatprep.mubr.bf16.mxu0 %v2271_v56  ;;  %v9255_v35 = vmax.f32 %v7113_v23, 0.0  ;;  %v9256_v56 = vmax.f32 %v7122_v57, 0.0  ;;  %v7155_v12 = vadd.f32 %v7069_v20, %v2164_v61 }
 0x664   :  { %2106 = vperm.xlu0 %5071, %v5295_v33   ;;  %v2012_v60 = vpop.permute.xlu1 %2011  ;;  %4935 = vmatmul.mubr.bf16.vlgmr.msra.gmra.mrb[16].mxu0 %v2272_v50  ;;  %v9638_v33 = vld [vmem:[#allocation57_spill] sm:$0xff] }
 0x665   :  { %v7126_v63 = vadd.f32 %v7069_v20, %v2159_v34  ;;  %v2129_v47 = vmul.f32 %v2012_v60, %v1873_v48  ;;  %v1878_v15 = vsub.f32 %v9638_v33, %v6902_v19  ;;  %v2274_v48 = vpack.c.bf16 %v9256_v56, %v9255_v35  ;;  %v9641_v34 = vld [vmem:[#allocation51_spill] sm:$0xff]  ;;  %9642 = vst [vmem:[#allocation14_spill] sm:$0xff] %v7155_v12 }
 0x666   :  { %v1877_v62 = vsub.f32 %v9641_v34, %v9640_v53  ;;  %v2132_v60 = vmul.f32 %v2027_v44, %v1876_v58  ;;  %v7159_v19 = vadd.f32 %v7069_v20, %v2166_v11  ;;  %v2047_v53 = vpop.permute.xlu0 %2046 }
 0x667   :  { %9634 = vst [vmem:[#allocation47_spill] sm:$0xff] %v7126_v63  ;;  %v2165_v46 = vmul.f32 %v7061_v43, %v2129_v47  ;;  %v9253_v27 = vmax.f32 %v7126_v63, 0.0  ;;  %v2134_v14 = vmul.f32 %v2037_v36, %v1878_v15  ;;  %v9230_v36 = vmax.f32 %v7155_v12, 0.0 }
 0x668   :  { %v2002_v0 = vpop.permute.xlu1 %2001  ;;  %9643 = vst [vmem:[#allocation61_spill] sm:$0xff] %v7159_v19  ;;  %v2168_v44 = vmul.f32 %v7061_v43, %v2132_v60  ;;  %v9252_v15 = vmax.f32 %v7159_v19, 0.0 }
 0x669   :  { %v2127_v21 = vmul.f32 %v2002_v0, %v1871_v29  ;;  %v2273_v50 = vpack.c.bf16 %v9254_v49, %v9253_v27  ;;  %v7146_v17 = vadd.f32 %v7069_v20, %v2165_v46  ;;  %v9645_v0 = vld [vmem:[#allocation70_spill] sm:$0xff] }
 0x66a   :  { %v1875_v33 = vsub.f32 %v9646_v22, %v9645_v0 }
 0x66b   :  { %9639 = vst [vmem:[#allocation16_spill] sm:$0xff] %v7146_v17  ;;  %v2163_v47 = vmul.f32 %v7061_v43, %v2127_v21  ;;  %4938 = vmatprep.mubr.bf16.mxu0 %v2273_v50  ;;  %v9241_v61 = vmax.f32 %v7146_v17, 0.0  ;;  %v2170_v21 = vmul.f32 %v7061_v43, %v2134_v14 }
 0x66c   :  { %v2032_v6 = vpop.permute.xlu1 %2031  ;;  %4939 = vmatmul.mubr.bf16.gmra.mrb[20].mxu0 %v2274_v48  ;;  %v9647_v48 = vld [vmem:[#allocation12_spill] sm:$0xff] }
 0x66d   :  { %v7162_v29 = vadd.f32 %v7069_v20, %v2163_v47  ;;  %v2133_v46 = vmul.f32 %v2032_v6, %v1877_v62  ;;  %v1880_v34 = vsub.f32 %v9647_v48, %v6965_v37  ;;  %v9648_v47 = vld [vmem:[#allocation50_spill] sm:$0xff]  ;;  %v2276_v14 = vpack.c.bf16 %v9252_v15, %v9241_v61 }
 0x66e   :  { %v1882_v6 = vsub.f32 %v9648_v47, %v6955_v52  ;;  %v9650_v37 = vld [vmem:[#allocation54_spill] sm:$0xff]  ;;  %v7195_v52 = vadd.f32 %v7069_v20, %v2170_v21 }
 0x66f   :  { %9644 = vst [vmem:[#allocation59_spill] sm:$0xff] %v7162_v29  ;;  %v2169_v58 = vmul.f32 %v7061_v43, %v2133_v46  ;;  %v9229_v11 = vmax.f32 %v7162_v29, 0.0  ;;  %v2077_v46 = vpop.permute.xlu0 %2076  ;;  %v1881_v22 = vsub.f32 %v9650_v37, %v6889_v7  ;;  %v9655_v37 = vld [vmem:[#allocation24_spill] sm:$0xff]  ;;  %v9670_v61 = vld [vmem:[#allocation10_spill] sm:$0xff] }
 0x670   :  { %v2022_v50 = vpop.permute.xlu1 %2021  ;;  %9652 = vst [vmem:[#allocation13_spill] sm:$0xff] %v7195_v52 }
 0x671   :  { %v2131_v62 = vmul.f32 %v2022_v50, %v1875_v33  ;;  %v2275_v60 = vpack.c.bf16 %v9230_v36, %v9229_v11  ;;  %v7182_v0 = vadd.f32 %v7069_v20, %v2169_v58  ;;  %v7191_v33 = vadd.f32 %v7069_v20, %v2168_v44  ;;  %v9654_v36 = vld [vmem:[#allocation33_spill] sm:$0xff] }
 0x672   :  { %v2136_v50 = vmul.f32 %v2047_v53, %v1880_v34  ;;  %v2138_v58 = vmul.f32 %v2057_v2, %v1882_v6  ;;  %v1879_v7 = vsub.f32 %v9654_v36, %v6904_v9 }
 0x673   :  { %9649 = vst [vmem:[#allocation35_spill] sm:$0xff] %v7182_v0  ;;  %9651 = vst [vmem:[#allocation40_spill] sm:$0xff] %v7191_v33  ;;  %v2167_v48 = vmul.f32 %v7061_v43, %v2131_v62  ;;  %4942 = vmatprep.mubr.bf16.mxu0 %v2275_v60  ;;  %v9240_v44 = vmax.f32 %v7182_v0, 0.0  ;;  %v9232_v21 = vmax.f32 %v7191_v33, 0.0  ;;  %v2067_v60 = vpop.permute.xlu0 %2066 }
 0x674   :  { %v2052_v47 = vpop.permute.xlu1 %2051  ;;  %4943 = vmatmul.mubr.bf16.gmra.mrb[24].mxu0 %v2276_v14  ;;  %v2172_v53 = vmul.f32 %v7061_v43, %v2136_v50  ;;  %v2174_v2 = vmul.f32 %v7061_v43, %v2138_v58  ;;  %v9233_v14 = vmax.f32 %v7195_v52, 0.0 }
 0x675   :  { %v7198_v41 = vadd.f32 %v7069_v20, %v2167_v48  ;;  %v2137_v11 = vmul.f32 %v2052_v47, %v1881_v22  ;;  %v1884_v22 = vsub.f32 %v9655_v37, %v6997_v55  ;;  %v9658_v47 = vld [vmem:[#allocation52_spill] sm:$0xff] }
 0x676   :  { %v2278_v58 = vpack.c.bf16 %v9233_v14, %v9240_v44  ;;  %v1885_v55 = vsub.f32 %v9658_v47, %v6953_v39  ;;  %v9662_v14 = vld [vmem:[#allocation20_spill] sm:$0xff] }
 0x677   :  { %9653 = vst [vmem:[#allocation19_spill] sm:$0xff] %v7198_v41  ;;  %v2173_v34 = vmul.f32 %v7061_v43, %v2137_v11  ;;  %v9231_v62 = vmax.f32 %v7198_v41, 0.0  ;;  %v9656_v11 = vld [vmem:[#allocation26_spill] sm:$0xff]  ;;  %v1883_v39 = vsub.f32 %v9662_v14, %v6963_v26 }
 0x678   :  { %v2042_v6 = vpop.permute.xlu1 %2041  ;;  %v1886_v50 = vsub.f32 %v9656_v11, %v6989_v31  ;;  %v7231_v31 = vadd.f32 %v7069_v20, %v2174_v2 }
 0x679   :  { %v2135_v9 = vmul.f32 %v2042_v6, %v1879_v7  ;;  %v2277_v36 = vpack.c.bf16 %v9232_v21, %v9231_v62  ;;  %v7218_v48 = vadd.f32 %v7069_v20, %v2173_v34  ;;  %v7227_v7 = vadd.f32 %v7069_v20, %v2172_v53 }
 0x67a   :  { %v2140_v6 = vmul.f32 %v2067_v60, %v1884_v22  ;;  %9660 = vst [vmem:[#allocation15_spill] sm:$0xff] %v7231_v31  ;;  %v2142_v34 = vmul.f32 %v2077_v46, %v1886_v50  ;;  %v9237_v50 = vmax.f32 %v7231_v31, 0.0 }
 0x67b   :  { %9657 = vst [vmem:[#allocation58_spill] sm:$0xff] %v7218_v48  ;;  %9659 = vst [vmem:[#allocation27_spill] sm:$0xff] %v7227_v7  ;;  %v2171_v37 = vmul.f32 %v7061_v43, %v2135_v9  ;;  %4946 = vmatprep.mubr.bf16.mxu0 %v2277_v36  ;;  %v9236_v53 = vmax.f32 %v7218_v48, 0.0  ;;  %v9235_v2 = vmax.f32 %v7227_v7, 0.0 }
 0x67c   :  { %v2072_v11 = vpop.permute.xlu1 %2071  ;;  %4947 = vmatmul.mubr.bf16.gmra.mrb[28].mxu0 %v2278_v58  ;;  %v2176_v60 = vmul.f32 %v7061_v43, %v2140_v6  ;;  %v2178_v46 = vmul.f32 %v7061_v43, %v2142_v34 }
 0x67d   :  { %v7234_v62 = vadd.f32 %v7069_v20, %v2171_v37  ;;  %v2141_v21 = vmul.f32 %v2072_v11, %v1885_v55 }
 0x67e   :  { %v7257_v47 = vadd.f32 %v7069_v20, %v2176_v60  ;;  %v7261_v6 = vadd.f32 %v7069_v20, %v2178_v46 }
 0x67f   :  { %9661 = vst [vmem:[#allocation66_spill] sm:$0xff] %v7234_v62  ;;  %v2177_v22 = vmul.f32 %v7061_v43, %v2141_v21  ;;  %v9234_v9 = vmax.f32 %v7234_v62, 0.0  ;;  %v2280_v21 = vpack.c.bf16 %v9237_v50, %v9236_v53 }
 0x680   :  { %v2062_v36 = vpop.permute.xlu1 %2061  ;;  %9664 = vst [vmem:[#allocation69_spill] sm:$0xff] %v7257_v47  ;;  %9665 = vst [vmem:[#allocation67_spill] sm:$0xff] %v7261_v6 }
 0x681   :  { %v2139_v58 = vmul.f32 %v2062_v36, %v1883_v39  ;;  %v2279_v26 = vpack.c.bf16 %v9235_v2, %v9234_v9  ;;  %v7250_v14 = vadd.f32 %v7069_v20, %v2177_v22  ;;  %v9238_v39 = vmax.f32 %v7257_v47, 0.0  ;;  %v9669_v2 = vld [vmem:[#allocation17_spill] sm:$0xff] }
 0x682   :  { %v9242_v22 = vmax.f32 %v7261_v6, 0.0  ;;  %v1890_v53 = vsub.f32 %v9669_v2, %v7020_v40 }
 0x683   :  { %9663 = vst [vmem:[#allocation64_spill] sm:$0xff] %v7250_v14  ;;  %v2175_v55 = vmul.f32 %v7061_v43, %v2139_v58  ;;  %4950 = vmatprep.mubr.bf16.mxu0 %v2279_v26  ;;  %v9243_v34 = vmax.f32 %v7250_v14, 0.0  ;;  %v9667_v26 = vld [vmem:[#allocation34_spill] sm:$0xff] }
 0x684   :  { %4951 = vmatmul.mubr.bf16.gmra.mrb[32].mxu0 %v2280_v21  ;;  %v2092_v36 = vpop.permute.xlu1 %2091  ;;  %v1887_v21 = vsub.f32 %v9667_v26, %v7012_v10 }
 0x685   :  { %v7264_v37 = vadd.f32 %v7069_v20, %v2175_v55  ;;  %v2282_v46 = vpack.c.bf16 %v9242_v22, %v9243_v34  ;;  %v9668_v55 = vld [vmem:[#allocation39_spill] sm:$0xff]  ;;  %v1888_v22 = vsub.f32 %v9670_v61, %v7022_v42 }
 0x686   :  { %v1889_v9 = vsub.f32 %v9668_v55, %v7010_v25 }
 0x687   :  { %9666 = vst [vmem:[#allocation7_spill] sm:$0xff] %v7264_v37  ;;  %v9239_v11 = vmax.f32 %v7264_v37, 0.0 }
 0x688   :  { %v2082_v58 = vpop.permute.xlu1 %2081 }
 0x689   :  { %v2281_v60 = vpack.c.bf16 %v9238_v39, %v9239_v11  ;;  %v2143_v50 = vmul.f32 %v2082_v58, %v1887_v21  ;;  %v2145_v39 = vmul.f32 %v2092_v36, %v1889_v9  ;;  %v9675_v36 = vld [vmem:[#allocation65_spill] sm:$0xff]  ;;  %v9676_v21 = vld [vmem:[#allocation36_spill] sm:$0xff] }
 0x68a   :  { %v1891_v58 = vsub.f32 %v9675_v36, %v7036_v4  ;;  %v1893_v55 = vsub.f32 %v9676_v21, %v7034_v24 }
 0x68b   :  { %4954 = vmatprep.mubr.bf16.mxu0 %v2281_v60  ;;  %v2179_v60 = vmul.f32 %v7061_v43, %v2143_v50  ;;  %v2181_v34 = vmul.f32 %v7061_v43, %v2145_v39 }
 0x68c   :  { %4955 = vmatmul.mubr.bf16.gmra.mrb[36].mxu0 %v2282_v46 }
 0x68d   :  { %v7293_v40 = vadd.f32 %v7069_v20, %v2179_v60  ;;  %v1894_v60 = vsub.f32 %v6875_v3, %v7030_v32 }
 0x68f   :  { %9672 = vst [vmem:[#allocation9_spill] sm:$0xff] %v7293_v40 }
 0x6a2   :  { %v2097_v11 = vpop.permute.xlu0 %2096 }
 0x6a3   :  { %v2146_v44 = vmul.f32 %v2097_v11, %v1890_v53  ;;  %v7297_v53 = vadd.f32 %v7069_v20, %v2181_v34 }
 0x6a5   :  { %v2182_v46 = vmul.f32 %v7061_v43, %v2146_v44  ;;  %9673 = vst [vmem:[#allocation29_spill] sm:$0xff] %v7297_v53  ;;  %v9245_v44 = vmax.f32 %v7293_v40, 0.0  ;;  %v9251_v50 = vmax.f32 %v7297_v53, 0.0 }
 0x6a6   :  { %v2087_v10 = vpop.permute.xlu0 %2086 }
 0x6a7   :  { %v2144_v26 = vmul.f32 %v2087_v10, %v1888_v22  ;;  %v7290_v25 = vadd.f32 %v7069_v20, %v2182_v46 }
 0x6a9   :  { %9671 = vst [vmem:[#allocation38_spill] sm:$0xff] %v7290_v25  ;;  %v2180_v9 = vmul.f32 %v7061_v43, %v2144_v26  ;;  %v9250_v61 = vmax.f32 %v7290_v25, 0.0 }
 0x6ab   :  { %v7300_v42 = vadd.f32 %v7069_v20, %v2180_v9  ;;  %v2284_v34 = vpack.c.bf16 %v9250_v61, %v9251_v50 }
 0x6ad   :  { %9674 = vst [vmem:[#allocation30_spill] sm:$0xff] %v7300_v42  ;;  %v9244_v2 = vmax.f32 %v7300_v42, 0.0 }
 0x6af   :  { %v2283_v11 = vpack.c.bf16 %v9244_v2, %v9245_v44  ;;  %v1892_v2 = vsub.f32 %v6887_v13, %v7032_v8 }
 0x6b1   :  { %4958 = vmatprep.mubr.bf16.mxu0 %v2283_v11 }
 0x6b2   :  { %4959 = vmatmul.mubr.bf16.gmra.mrb[40].mxu0 %v2284_v34 }
 0x6b7   :  { %v2112_v39 = vpop.permute.xlu1 %2111 }
 0x6b8   :  { %v2149_v10 = vmul.f32 %v2112_v39, %v1893_v55 }
 0x6ba   :  { %v2185_v44 = vmul.f32 %v7061_v43, %v2149_v10 }
 0x6bb   :  { %v2102_v22 = vpop.permute.xlu1 %2101 }
 0x6bc   :  { %v2147_v46 = vmul.f32 %v2102_v22, %v1891_v58  ;;  %v7333_v39 = vadd.f32 %v7069_v20, %v2185_v44 }
 0x6be   :  { %v2183_v11 = vmul.f32 %v7061_v43, %v2147_v46  ;;  %9679 = vst [vmem:[#allocation37_spill] sm:$0xff] %v7333_v39  ;;  %v9247_v58 = vmax.f32 %v7333_v39, 0.0 }
 0x6c0   :  { %v7329_v3 = vadd.f32 %v7069_v20, %v2183_v11 }
 0x6c2   :  { %9678 = vst [vmem:[#allocation21_spill] sm:$0xff] %v7329_v3  ;;  %v9249_v22 = vmax.f32 %v7329_v3, 0.0 }
 0x6df   :  { %v2117_v26 = vpop.permute.xlu0 %2116 }
 0x6e0   :  { %v2150_v9 = vmul.f32 %v2117_v26, %v1894_v60 }
 0x6e2   :  { %v2186_v34 = vmul.f32 %v7061_v43, %v2150_v9 }
 0x6e3   :  { %v2107_v4 = vpop.permute.xlu0 %2106 }
 0x6e4   :  { %v2148_v36 = vmul.f32 %v2107_v4, %v1892_v2  ;;  %v7326_v24 = vadd.f32 %v7069_v20, %v2186_v34 }
 0x6e6   :  { %9677 = vst [vmem:[#allocation31_spill] sm:$0xff] %v7326_v24  ;;  %v2184_v32 = vmul.f32 %v7061_v43, %v2148_v36  ;;  %v9246_v8 = vmax.f32 %v7326_v24, 0.0 }
 0x6e8   :  { %v7336_v13 = vadd.f32 %v7069_v20, %v2184_v32  ;;  %v2286_v43 = vpack.c.bf16 %v9246_v8, %v9247_v58  ;;  %v2289_v20 = vsub.s32 6, %v9605_v51 }
 0x6ea   :  { %9680 = vst [vmem:[#allocation63_spill] sm:$0xff] %v7336_v13  ;;  %v9248_v2 = vmax.f32 %v7336_v13, 0.0  ;;  %v7352_v44 = vrot.slane %v7056_v1, %v2289_v20 }
 0x6ec   :  { %v2285_v21 = vpack.c.bf16 %v9248_v2, %v9249_v22 }
 0x6ee   :  { %4962 = vmatprep.mubr.bf16.mxu0 %v2285_v21 }
 0x6ef   :  { %4963 = vmatmul.mubr.bf16.gmra.mrb[44].mxu0 %v2286_v43 }
 0x737   :  { %v4936_v55 = vpop.f32.mrb[16].mxu0 }
 0x738   :  { %v7355_v60 = vadd.f32 %v4936_v55, %v7352_v44  ;;  %v2373_v46 = vpop.f32.mrb[17].mxu0 }
 0x739   :  { %v4937_v10 = vpop.f32.mrb[18].mxu0  ;;  %v7371_v55 = vadd.f32 %v2373_v46, %v7352_v44 }
 0x73a   :  { %9681 = vst [vmem:[#allocation42_spill] sm:$0xff] %v7355_v60  ;;  %v7358_v26 = vmul.f32 0.03125, %v7355_v60  ;;  %v2376_v9 = vpop.f32.mrb[19].mxu0  ;;  %v7362_v11 = vmul.f32 %v7355_v60, %v7355_v60  ;;  %v7379_v2 = vadd.f32 %v4937_v10, %v7352_v44 }
 0x73b   :  { %9682 = vst [vmem:[#allocation43_spill] sm:$0xff] %v7371_v55  ;;  %v7376_v58 = vmul.f32 0.03125, %v7371_v55  ;;  %v7402_v35 = vmul.f32 %v7371_v55, %v7371_v55  ;;  %v7419_v24 = vadd.f32 %v2376_v9, %v7352_v44 }
 0x73c   :  { %2768 = vperm.xlu1 %5070, %v7358_v26   ;;  %2536 = vadd.xlane.f32.xlu0 %v7362_v11  ;;  %9683 = vst [vmem:[#allocation32_spill] sm:$0xff] %v7379_v2  ;;  %v7389_v15 = vmul.f32 0.03125, %v7379_v2  ;;  %v7415_v28 = vmul.f32 %v7379_v2, %v7379_v2 }
 0x73d   :  { %9684 = vst [vmem:[#allocation62_spill] sm:$0xff] %v7419_v24  ;;  %v7422_v39 = vmul.f32 0.03125, %v7419_v24  ;;  %v7429_v3 = vmul.f32 %v7419_v24, %v7419_v24 }
 0x73f   :  { %v4940_v1 = vpop.f32.mrb[20].mxu0 }
 0x740   :  { %v2389_v34 = vpop.f32.mrb[21].mxu0  ;;  %v7425_v13 = vadd.f32 %v4940_v1, %v7352_v44 }
 0x741   :  { %v4941_v4 = vpop.f32.mrb[22].mxu0  ;;  %v7437_v9 = vadd.f32 %v2389_v34, %v7352_v44 }
 0x742   :  { %v2392_v36 = vpop.f32.mrb[23].mxu0  ;;  %9685 = vst [vmem:[#allocation46_spill] sm:$0xff] %v7425_v13  ;;  %v7434_v42 = vmul.f32 0.03125, %v7425_v13  ;;  %v7441_v40 = vmul.f32 %v7425_v13, %v7425_v13  ;;  %v7463_v6 = vadd.f32 %v4941_v4, %v7352_v44 }
 0x743   :  { %9686 = vst [vmem:[#allocation56_spill] sm:$0xff] %v7437_v9  ;;  %v7446_v1 = vmul.f32 0.03125, %v7437_v9  ;;  %v7450_v25 = vmul.f32 %v7437_v9, %v7437_v9  ;;  %v7469_v62 = vadd.f32 %v2392_v36, %v7352_v44 }
 0x744   :  { %9687 = vst [vmem:[#allocation41_spill] sm:$0xff] %v7463_v6  ;;  %v7466_v14 = vmul.f32 0.03125, %v7463_v6  ;;  %v7478_v48 = vmul.f32 %v7463_v6, %v7463_v6 }
 0x745   :  { %9688 = vst [vmem:[#allocation45_spill] sm:$0xff] %v7469_v62  ;;  %v7473_v7 = vmul.f32 0.03125, %v7469_v62  ;;  %v7483_v4 = vmul.f32 %v7469_v62, %v7469_v62 }
 0x747   :  { %v4944_v32 = vpop.f32.mrb[24].mxu0 }
 0x748   :  { %v2405_v21 = vpop.f32.mrb[25].mxu0  ;;  %v7487_v36 = vadd.f32 %v4944_v32, %v7352_v44 }
 0x749   :  { %v7366_v43 = vpop.f32.mrb[26].mxu0  ;;  %v7493_v41 = vadd.f32 %v2405_v21, %v7352_v44 }
 0x74a   :  { %v7368_v20 = vpop.f32.mrb[27].mxu0  ;;  %9689 = vst [vmem:[#allocation71_spill] sm:$0xff] %v7487_v36  ;;  %v7490_v31 = vmul.f32 0.03125, %v7487_v36  ;;  %v7497_v33 = vmul.f32 %v7487_v36, %v7487_v36  ;;  %v7520_v17 = vadd.f32 %v7366_v43, %v7352_v44 }
 0x74b   :  { %9690 = vst [vmem:[#allocation49_spill] sm:$0xff] %v7493_v41  ;;  %v7502_v52 = vmul.f32 0.03125, %v7493_v41  ;;  %v7506_v32 = vmul.f32 %v7493_v41, %v7493_v41  ;;  %v7527_v63 = vadd.f32 %v7368_v20, %v7352_v44 }
 0x74c   :  { %9691 = vst [vmem:[#allocation25_spill] sm:$0xff] %v7520_v17  ;;  %v7523_v19 = vmul.f32 0.03125, %v7520_v17  ;;  %v7536_v23 = vmul.f32 %v7520_v17, %v7520_v17 }
 0x74d   :  { %9692 = vst [vmem:[#allocation48_spill] sm:$0xff] %v7527_v63  ;;  %v7531_v54 = vmul.f32 0.03125, %v7527_v63  ;;  %v7541_v43 = vmul.f32 %v7527_v63, %v7527_v63 }
 0x74f   :  { %v7373_v8 = vpop.f32.mrb[28].mxu0 }
 0x750   :  { %v7381_v22 = vpop.f32.mrb[29].mxu0  ;;  %v7546_v20 = vadd.f32 %v7373_v8, %v7352_v44 }
 0x751   :  { %v7383_v61 = vpop.f32.mrb[30].mxu0  ;;  %v7553_v5 = vadd.f32 %v7381_v22, %v7352_v44 }
 0x752   :  { %2758 = vperm.xlu0 %5071, %v7376_v58   ;;  %v7386_v50 = vpop.f32.mrb[31].mxu0  ;;  %9693 = vst [vmem:[#allocation23_spill] sm:$0xff] %v7546_v20  ;;  %v7549_v57 = vmul.f32 0.03125, %v7546_v20  ;;  %v7557_v30 = vmul.f32 %v7546_v20, %v7546_v20  ;;  %v7572_v22 = vadd.f32 %v7383_v61, %v7352_v44 }
 0x753   :  { %9694 = vst [vmem:[#allocation44_spill] sm:$0xff] %v7553_v5  ;;  %v7562_v59 = vmul.f32 0.03125, %v7553_v5  ;;  %v7566_v8 = vmul.f32 %v7553_v5, %v7553_v5  ;;  %v7579_v20 = vadd.f32 %v7386_v50, %v7352_v44 }
 0x754   :  { %9696 = vst [vmem:[#allocation57_spill] sm:$0xff] %v7572_v22  ;;  %v7575_v18 = vmul.f32 0.03125, %v7572_v22  ;;  %v7588_v41 = vmul.f32 %v7572_v22, %v7572_v22 }
 0x755   :  { %9695 = vst [vmem:[#allocation60_spill] sm:$0xff] %v7562_v59  ;;  %9697 = vst [vmem:[#allocation68_spill] sm:$0xff] %v7579_v20  ;;  %v7583_v5 = vmul.f32 0.03125, %v7579_v20  ;;  %v7593_v61 = vmul.f32 %v7579_v20, %v7579_v20 }
 0x756   :  { %2773 = vperm.xlu0 %5071, %v7389_v15  }
 0x757   :  { %v7392_v46 = vpop.f32.mrb[32].mxu0 }
 0x758   :  { %v7394_v27 = vpop.f32.mrb[33].mxu0  ;;  %v7598_v50 = vadd.f32 %v7392_v46, %v7352_v44 }
 0x759   :  { %v7396_v49 = vpop.f32.mrb[34].mxu0  ;;  %v7605_v17 = vadd.f32 %v7394_v27, %v7352_v44 }
 0x75a   :  { %v7398_v10 = vpop.f32.mrb[35].mxu0  ;;  %9698 = vst [vmem:[#allocation51_spill] sm:$0xff] %v7598_v50  ;;  %v7601_v36 = vmul.f32 0.03125, %v7598_v50  ;;  %v7609_v22 = vmul.f32 %v7598_v50, %v7598_v50  ;;  %v7624_v27 = vadd.f32 %v7396_v49, %v7352_v44 }
 0x75b   :  { %9700 = vst [vmem:[#allocation53_spill] sm:$0xff] %v7605_v17  ;;  %v7614_v20 = vmul.f32 0.03125, %v7605_v17  ;;  %v7618_v46 = vmul.f32 %v7605_v17, %v7605_v17  ;;  %v7631_v63 = vadd.f32 %v7398_v10, %v7352_v44 }
 0x75c   :  { %9699 = vst [vmem:[#allocation70_spill] sm:$0xff] %v7601_v36  ;;  %9701 = vst [vmem:[#allocation12_spill] sm:$0xff] %v7609_v22  ;;  %v7627_v50 = vmul.f32 0.03125, %v7624_v27  ;;  %v7640_v9 = vmul.f32 %v7624_v27, %v7624_v27 }
 0x75d   :  { %9702 = vst [vmem:[#allocation50_spill] sm:$0xff] %v7614_v20  ;;  %9703 = vst [vmem:[#allocation54_spill] sm:$0xff] %v7618_v46  ;;  %v7635_v17 = vmul.f32 0.03125, %v7631_v63  ;;  %v7645_v49 = vmul.f32 %v7631_v63, %v7631_v63 }
 0x75e   :  { %9704 = vst [vmem:[#allocation33_spill] sm:$0xff] %v7624_v27  ;;  %9705 = vst [vmem:[#allocation24_spill] sm:$0xff] %v7631_v63 }
 0x75f   :  { %v7404_v56 = vpop.f32.mrb[36].mxu0 }
 0x760   :  { %2532 = vadd.xlane.f32.xlu1 %v7402_v35  ;;  %v7407_v38 = vpop.f32.mrb[37].mxu0  ;;  %v7650_v10 = vadd.f32 %v7404_v56, %v7352_v44 }
 0x761   :  { %v7409_v45 = vpop.f32.mrb[38].mxu0  ;;  %v7657_v6 = vadd.f32 %v7407_v38, %v7352_v44 }
 0x762   :  { %v7411_v16 = vpop.f32.mrb[39].mxu0  ;;  %9706 = vst [vmem:[#allocation26_spill] sm:$0xff] %v7650_v10  ;;  %v7653_v13 = vmul.f32 0.03125, %v7650_v10  ;;  %v7661_v27 = vmul.f32 %v7650_v10, %v7650_v10  ;;  %v7676_v38 = vadd.f32 %v7409_v45, %v7352_v44 }
 0x763   :  { %9708 = vst [vmem:[#allocation20_spill] sm:$0xff] %v7657_v6  ;;  %v7666_v63 = vmul.f32 0.03125, %v7657_v6  ;;  %v7670_v56 = vmul.f32 %v7657_v6, %v7657_v6  ;;  %v7683_v62 = vadd.f32 %v7411_v16, %v7352_v44 }
 0x764   :  { %2538 = vadd.xlane.f32.xlu1 %v7415_v28  ;;  %9707 = vst [vmem:[#allocation52_spill] sm:$0xff] %v7653_v13  ;;  %9709 = vst [vmem:[#allocation34_spill] sm:$0xff] %v7661_v27  ;;  %v7679_v10 = vmul.f32 0.03125, %v7676_v38  ;;  %v7692_v55 = vmul.f32 %v7676_v38, %v7676_v38 }
 0x765   :  { %9710 = vst [vmem:[#allocation39_spill] sm:$0xff] %v7666_v63  ;;  %9711 = vst [vmem:[#allocation17_spill] sm:$0xff] %v7670_v56  ;;  %v7687_v6 = vmul.f32 0.03125, %v7683_v62  ;;  %v7697_v45 = vmul.f32 %v7683_v62, %v7683_v62 }
 0x766   :  { %9712 = vst [vmem:[#allocation10_spill] sm:$0xff] %v7676_v38  ;;  %9713 = vst [vmem:[#allocation65_spill] sm:$0xff] %v7683_v62 }
 0x767   :  { %9714 = vst [vmem:[#allocation36_spill] sm:$0xff] %v7687_v6  ;;  %9715 = vst [vmem:[#allocation72_spill] sm:$0xff] %v7697_v45 }
 0x775   :  { %2534 = vadd.xlane.f32.xlu0 %v7429_v3  ;;  %2763 = vperm.xlu1 %5070, %v7422_v39  }
 0x779   :  { %2788 = vperm.xlu1 %5070, %v7434_v42   ;;  %2544 = vadd.xlane.f32.xlu0 %v7441_v40 }
 0x77d   :  { %2778 = vperm.xlu1 %5070, %v7446_v1   ;;  %2540 = vadd.xlane.f32.xlu0 %v7450_v25 }
 0x785   :  { %v7454_v34 = vpop.f32.mrb[40].mxu0 }
 0x786   :  { %v7456_v53 = vpop.f32.mrb[41].mxu0  ;;  %v7702_v16 = vadd.f32 %v7454_v34, %v7352_v44 }
 0x787   :  { %v7458_v47 = vpop.f32.mrb[42].mxu0  ;;  %v7711_v38 = vadd.f32 %v7456_v53, %v7352_v44 }
 0x788   :  { %v7460_v37 = vpop.f32.mrb[43].mxu0  ;;  %9716 = vst [vmem:[#allocation73_spill] sm:$0xff] %v7702_v16  ;;  %v7707_v60 = vmul.f32 0.03125, %v7702_v16  ;;  %v7715_v24 = vmul.f32 %v7702_v16, %v7702_v16 }
 0x789   :  { %9719 = vst [vmem:[#allocation76_spill] sm:$0xff] %v7711_v38  ;;  %v7722_v34 = vmul.f32 0.03125, %v7711_v38 }
 0x78a   :  { %9718 = vst [vmem:[#allocation75_spill] sm:$0xff] %v7707_v60  ;;  %9720 = vst [vmem:[#allocation77_spill] sm:$0xff] %v7715_v24 }
 0x78b   :  { %9721 = vst [vmem:[#allocation78_spill] sm:$0xff] %v7722_v34 }
 0x793   :  { %2793 = vperm.xlu0 %5071, %v7466_v14  }
 0x797   :  { %2783 = vperm.xlu0 %5071, %v7473_v7  }
 0x7a1   :  { %2546 = vadd.xlane.f32.xlu1 %v7478_v48 }
 0x7a5   :  { %2542 = vadd.xlane.f32.xlu1 %v7483_v4 }
 0x7b6   :  { %2808 = vperm.xlu1 %5070, %v7490_v31   ;;  %2552 = vadd.xlane.f32.xlu0 %v7497_v33 }
 0x7ba   :  { %2798 = vperm.xlu1 %5070, %v7502_v52   ;;  %2548 = vadd.xlane.f32.xlu0 %v7506_v32 }
 0x7bb   :  { %v7704_v2 = vpop.permute.xlu1 %2768 }
 0x7bc   :  { %9717 = vst [vmem:[#allocation74_spill] sm:$0xff] %v7704_v2  ;;  %v7726_v2 = vmul.f32 %v7711_v38, %v7711_v38  ;;  %v7745_v38 = vadd.f32 %v7460_v37, %v7352_v44 }
 0x7be   :  { %9722 = vst [vmem:[#allocation79_spill] sm:$0xff] %v7726_v2  ;;  %9727 = vst [vmem:[#allocation84_spill] sm:$0xff] %v7745_v38 }
 0x7c2   :  { %v7510_v21 = vpop.f32.mrb[44].mxu0 }
 0x7c3   :  { %v7512_v0 = vpop.f32.mrb[45].mxu0 }
 0x7c4   :  { %v7514_v29 = vpop.f32.mrb[46].mxu0 }
 0x7c5   :  { %v7516_v12 = vpop.f32.mrb[47].mxu0 }
 0x7d0   :  { %2813 = vperm.xlu0 %5071, %v7523_v19  }
 0x7d4   :  { %2803 = vperm.xlu0 %5071, %v7531_v54  }
 0x7de   :  { %2554 = vadd.xlane.f32.xlu1 %v7536_v23 }
 0x7e2   :  { %2550 = vadd.xlane.f32.xlu1 %v7541_v43 }
 0x7ed   :  { %v7719_v62 = vpop.xlane.xlu1 %2532 }
 0x7f1   :  { %v2539_v53 = vpop.xlane.xlu1 %2538 }
 0x7f3   :  { %2828 = vperm.xlu1 %5070, %v7549_v57   ;;  %2560 = vadd.xlane.f32.xlu0 %v7557_v30 }
 0x7f5   :  { %v7730_v16 = vpop.permute.xlu1 %2763 }
 0x7f6   :  { %9723 = vst [vmem:[#allocation80_spill] sm:$0xff] %v7730_v16 }
 0x7f7   :  { %2818 = vperm.xlu1 %5070, %v7562_v59   ;;  %2556 = vadd.xlane.f32.xlu0 %v7566_v8 }
 0x7f9   :  { %v7732_v51 = vpop.permute.xlu1 %2788 }
 0x7fa   :  { %9724 = vst [vmem:[#allocation81_spill] sm:$0xff] %v7732_v51  ;;  %v7753_v51 = vmul.f32 0.03125, %v7745_v38 }
 0x7fc   :  { %9730 = vst [vmem:[#allocation87_spill] sm:$0xff] %v7753_v51 }
 0x80d   :  { %2833 = vperm.xlu0 %5071, %v7575_v18  }
 0x811   :  { %2823 = vperm.xlu0 %5071, %v7583_v5  }
 0x81b   :  { %2562 = vadd.xlane.f32.xlu1 %v7588_v41 }
 0x81f   :  { %2558 = vadd.xlane.f32.xlu1 %v7593_v61 }
 0x830   :  { %2848 = vperm.xlu1 %5070, %v7601_v36   ;;  %2568 = vadd.xlane.f32.xlu0 %v7609_v22 }
 0x834   :  { %2838 = vperm.xlu1 %5070, %v7614_v20   ;;  %2564 = vadd.xlane.f32.xlu0 %v7618_v46 }
 0x84a   :  { %2853 = vperm.xlu0 %5071, %v7627_v50  }
 0x84e   :  { %2843 = vperm.xlu0 %5071, %v7635_v17  }
 0x858   :  { %2570 = vadd.xlane.f32.xlu1 %v7640_v9 }
 0x85c   :  { %2566 = vadd.xlane.f32.xlu1 %v7645_v49 }
 0x86d   :  { %2868 = vperm.xlu1 %5070, %v7653_v13   ;;  %2576 = vadd.xlane.f32.xlu0 %v7661_v27 }
 0x871   :  { %2858 = vperm.xlu1 %5070, %v7666_v63   ;;  %2572 = vadd.xlane.f32.xlu0 %v7670_v56  ;;  %v7738_v63 = vpop.xlane.xlu0 %2536 }
 0x887   :  { %2873 = vperm.xlu0 %5071, %v7679_v10  }
 0x88b   :  { %2863 = vperm.xlu0 %5071, %v7687_v6  }
 0x895   :  { %2578 = vadd.xlane.f32.xlu1 %v7692_v55 }
 0x899   :  { %2574 = vadd.xlane.f32.xlu1 %v7697_v45 }
 0x8aa   :  { %2888 = vperm.xlu1 %5070, %v7707_v60   ;;  %2584 = vadd.xlane.f32.xlu0 %v7715_v24  ;;  %v7736_v60 = vadd.f32 %v7458_v47, %v7352_v44 }
 0x8ac   :  { %9725 = vst [vmem:[#allocation82_spill] sm:$0xff] %v7736_v60  ;;  %v7741_v24 = vmul.f32 0.03125, %v7736_v60  ;;  %v7760_v37 = vmul.f32 %v7736_v60, %v7736_v60 }
 0x8ae   :  { %2878 = vperm.xlu1 %5070, %v7722_v34   ;;  %2580 = vadd.xlane.f32.xlu0 %v7726_v2  ;;  %9726 = vst [vmem:[#allocation83_spill] sm:$0xff] %v7741_v24  ;;  %v7747_v34 = vpop.permute.xlu0 %2758  ;;  %v7749_v2 = vpop.permute.xlu1 %2778  ;;  %9732 = vst [vmem:[#allocation89_spill] sm:$0xff] %v7760_v37 }
 0x8af   :  { %9728 = vst [vmem:[#allocation85_spill] sm:$0xff] %v7747_v34  ;;  %9729 = vst [vmem:[#allocation86_spill] sm:$0xff] %v7749_v2 }
 0x8b2   :  { %v2547_v47 = vpop.xlane.xlu1 %2546  ;;  %v7756_v16 = vpop.permute.xlu0 %2773 }
 0x8b3   :  { %9731 = vst [vmem:[#allocation88_spill] sm:$0xff] %v7756_v16  ;;  %v2635_v6 = vsub.f32 %v2547_v47, %v7478_v48  ;;  %v2699_v48 = vmul.f32 %v7466_v14, %v7466_v14 }
 0x8b5   :  { %v2667_v45 = vmul.f32 0.03125, %v2635_v6  ;;  %v7840_v6 = vadd.f32 %v7516_v12, %v7352_v44 }
 0x8b6   :  { %v2535_v13 = vpop.xlane.xlu0 %2534  ;;  %v2543_v56 = vpop.xlane.xlu1 %2542 }
 0x8b7   :  { %v7851_v12 = vmul.f32 0.03125, %v7840_v6 }
 0x8ba   :  { %v7763_v34 = vpop.xlane.xlu0 %2544  ;;  %v7765_v2 = vpop.permute.xlu1 %2808 }
 0x8bb   :  { %9733 = vst [vmem:[#allocation90_spill] sm:$0xff] %v7765_v2 }
 0x8be   :  { %v7774_v16 = vpop.permute.xlu1 %2798 }
 0x8bf   :  { %9735 = vst [vmem:[#allocation92_spill] sm:$0xff] %v7774_v16 }
 0x8c2   :  { %v2555_v60 = vpop.xlane.xlu1 %2554 }
 0x8c4   :  { %2893 = vperm.xlu0 %5071, %v7741_v24   ;;  %v7769_v24 = vmul.f32 %v7745_v38, %v7745_v38  ;;  %v7789_v38 = vadd.f32 %v7512_v0, %v7352_v44  ;;  %v5088_v0 = vld [vmem:[#allocation2 + $0xc0] sm:$0xff]  }
 0x8c5   :  { %4966 = vmatprep.subr.bf16.mxu1 %v5088_v0 }
 0x8c6   :  { %9734 = vst [vmem:[#allocation91_spill] sm:$0xff] %v7769_v24  ;;  %v2551_v2 = vpop.xlane.xlu1 %2550  ;;  %9740 = vst [vmem:[#allocation97_spill] sm:$0xff] %v7789_v38  ;;  %4967 = vmatpush3.bf16.msra.mxu1 %v5088_v0 }
 0x8c7   :  { %v2637_v14 = vsub.f32 %v2551_v2, %v7541_v43 }
 0x8c8   :  { %2883 = vperm.xlu0 %5071, %v7753_v51   ;;  %v7772_v51 = vpop.xlane.xlu0 %2540 }
 0x8cc   :  { %v7776_v20 = vpop.permute.xlu0 %2793 }
 0x8cd   :  { %9736 = vst [vmem:[#allocation93_spill] sm:$0xff] %v7776_v20 }
 0x8d0   :  { %v7782_v27 = vpop.permute.xlu0 %2783 }
 0x8d1   :  { %9738 = vst [vmem:[#allocation95_spill] sm:$0xff] %v7782_v27  ;;  %v7802_v27 = vpop.permute.xlu1 %2828 }
 0x8d2   :  { %2586 = vadd.xlane.f32.xlu1 %v7760_v37  ;;  %v7780_v37 = vadd.f32 %v7510_v21, %v7352_v44  ;;  %v7800_v21 = vmul.f32 0.03125, %v7789_v38  ;;  %9743 = vst [vmem:[#allocation100_spill] sm:$0xff] %v7802_v27  ;;  %v2629_v27 = vsub.f32 %v2535_v13, %v7429_v3  ;;  %v7828_v3 = vadd.f32 %v7514_v29, %v7352_v44 }
 0x8d3   :  { %v2703_v44 = vmul.f32 %v7523_v19, %v7523_v19  ;;  %v2630_v19 = vsub.f32 %v7738_v63, %v7362_v11 }
 0x8d4   :  { %9737 = vst [vmem:[#allocation94_spill] sm:$0xff] %v7780_v37  ;;  %v7785_v36 = vmul.f32 0.03125, %v7780_v37  ;;  %v7793_v16 = vmul.f32 %v7780_v37, %v7780_v37  ;;  %v7795_v20 = vpop.xlane.xlu0 %2552  ;;  %9742 = vst [vmem:[#allocation99_spill] sm:$0xff] %v7800_v21  ;;  %v2631_v37 = vsub.f32 %v2539_v53, %v7415_v28  ;;  %v2693_v53 = vmul.f32 %v7422_v39, %v7422_v39 }
 0x8d5   :  { %v2639_v39 = vsub.f32 %v2555_v60, %v7536_v23  ;;  %v5090_v23 = vld [vmem:[#allocation2 + $0xd0] sm:$0xff]   ;;  %v7874_v63 = vmul.f32 %v7828_v3, %v7828_v3 }
 0x8d6   :  { %2582 = vadd.xlane.f32.xlu1 %v7769_v24  ;;  %9739 = vst [vmem:[#allocation96_spill] sm:$0xff] %v7785_v36  ;;  %9741 = vst [vmem:[#allocation98_spill] sm:$0xff] %v7793_v16  ;;  %v7806_v24 = vmul.f32 %v7789_v38, %v7789_v38  ;;  %v2695_v38 = vmul.f32 %v7389_v15, %v7389_v15 }
 0x8d8   :  { %9744 = vst [vmem:[#allocation101_spill] sm:$0xff] %v7806_v24  ;;  %v7811_v46 = vpop.xlane.xlu0 %2548 }
 0x8dc   :  { %v7815_v59 = vpop.permute.xlu0 %2813 }
 0x8dd   :  { %9746 = vst [vmem:[#allocation103_spill] sm:$0xff] %v7815_v59  ;;  %v2633_v59 = vsub.f32 %v2543_v56, %v7483_v4  ;;  %v2697_v4 = vmul.f32 %v7473_v7, %v7473_v7  ;;  %v2671_v56 = vmul.f32 0.03125, %v2639_v39  ;;  %v2669_v7 = vmul.f32 0.03125, %v2637_v14 }
 0x8e0   :  { %v7821_v28 = vpop.permute.xlu0 %2803 }
 0x8e4   :  { %v7830_v15 = vpop.xlane.xlu0 %2560 }
 0x8e7   :  { %2908 = vperm.xlu1 %5070, %v7785_v36   ;;  %2592 = vadd.xlane.f32.xlu0 %v7793_v16  ;;  %v7813_v36 = vpop.permute.xlu1 %2818  ;;  %v2663_v16 = vmul.f32 0.03125, %v2631_v37 }
 0x8e8   :  { %9745 = vst [vmem:[#allocation102_spill] sm:$0xff] %v7813_v36 }
 0x8e9   :  { %v2727_v22 = vsub.f32 %v2663_v16, %v2695_v38  ;;  %v2665_v38 = vmul.f32 0.03125, %v2633_v59  ;;  %v5089_v59 = vld [vmem:[#allocation2 + $0xc8] sm:$0xff]   ;;  %v2735_v16 = vsub.f32 %v2671_v56, %v2703_v44  ;;  %v7886_v56 = vmul.f32 %v7840_v6, %v7840_v6 }
 0x8ea   :  { %4968 = vmatprep.subr.bf16.mxu1 %v5089_v59 }
 0x8eb   :  { %2898 = vperm.xlu1 %5070, %v7800_v21   ;;  %2588 = vadd.xlane.f32.xlu0 %v7806_v24  ;;  %v2563_v21 = vpop.xlane.xlu1 %2562  ;;  %v2661_v24 = vmul.f32 0.03125, %v2629_v27  ;;  %v2951_v36 = vadd.f32 1e-05, %v2727_v22  ;;  %v2731_v27 = vsub.f32 %v2667_v45, %v2699_v48  ;;  %v2729_v22 = vsub.f32 %v2665_v38, %v2697_v4 }
 0x8ec   :  { %4969 = vmatpush3.bf16.msra.mxu1 %v5089_v59  ;;  %v2643_v47 = vsub.f32 %v2563_v21, %v7588_v41  ;;  %v2707_v41 = vmul.f32 %v7575_v18, %v7575_v18  ;;  %v2662_v21 = vmul.f32 0.03125, %v2630_v19 }
 0x8ed   :  { %v2725_v37 = vsub.f32 %v2661_v24, %v2693_v53  ;;  %5296 = vrsqrt.f32 %v2951_v36  ;;  %v7836_v24 = vmul.f32 0.03125, %v7828_v3  ;;  %v7847_v36 = vpop.xlane.xlu0 %2556  ;;  %v2955_v60 = vadd.f32 1e-05, %v2731_v27  ;;  %4970 = vmatprep.subr.bf16.mxu1 %v5090_v23 }
 0x8ee   :  { %v2953_v45 = vadd.f32 1e-05, %v2729_v22  ;;  %v2959_v27 = vadd.f32 1e-05, %v2735_v16  ;;  %v2675_v38 = vmul.f32 0.03125, %v2643_v47  ;;  %v2705_v22 = vmul.f32 %v7583_v5, %v7583_v5 }
 0x8ef   :  { %v2559_v0 = vpop.xlane.xlu1 %2558  ;;  %v2949_v13 = vadd.f32 1e-05, %v2725_v37  ;;  %v2701_v37 = vmul.f32 %v7531_v54, %v7531_v54  ;;  %v2628_v54 = vsub.f32 %v7719_v62, %v7402_v35  ;;  %v5091_v35 = vld [vmem:[#allocation2 + $0xd8] sm:$0xff]   ;;  %v2692_v5 = vmul.f32 %v7376_v58, %v7376_v58 }
 0x8f0   :  { %4971 = vmatpush3.bf16.msra.mxu1 %v5090_v23  ;;  %v2641_v39 = vsub.f32 %v2559_v0, %v7593_v61  ;;  %v2739_v11 = vsub.f32 %v2675_v38, %v2707_v41  ;;  %v2694_v0 = vmul.f32 %v7358_v26, %v7358_v26  ;;  %v2709_v41 = vmul.f32 %v7635_v17, %v7635_v17 }
 0x8f1   :  { %5298 = vrsqrt.f32 %v2949_v13  ;;  %v7855_v2 = vpop.permute.xlu0 %2833  ;;  %v2733_v48 = vsub.f32 %v2669_v7, %v2701_v37  ;;  %v2660_v7 = vmul.f32 0.03125, %v2628_v54  ;;  %4972 = vmatprep.subr.bf16.mxu1 %v5091_v35  ;;  %v2711_v37 = vmul.f32 %v7627_v50, %v7627_v50 }
 0x8f2   :  { %5300 = vrsqrt.f32 %v2955_v60  ;;  %v2673_v23 = vmul.f32 0.03125, %v2641_v39  ;;  %v2726_v44 = vsub.f32 %v2662_v21, %v2694_v0  ;;  %v2963_v26 = vadd.f32 1e-05, %v2739_v11 }
 0x8f3   :  { %v7842_v29 = vpop.permute.xlu1 %2848  ;;  %5302 = vrsqrt.f32 %v2953_v45  ;;  %v2957_v59 = vadd.f32 1e-05, %v2733_v48  ;;  %v2632_v48 = vsub.f32 %v7772_v51, %v7450_v25  ;;  %v2698_v39 = vmul.f32 %v7434_v42, %v7434_v42 }
 0x8f4   :  { %5304 = vrsqrt.f32 %v2959_v27  ;;  %v2737_v45 = vsub.f32 %v2673_v23, %v2705_v22  ;;  %4973 = vmatpush3.bf16.msra.mxu1 %v5091_v35  ;;  %v2950_v19 = vadd.f32 1e-05, %v2726_v44  ;;  %v2638_v50 = vsub.f32 %v7795_v20, %v7497_v33 }
 0x8f5   :  { %v7866_v4 = vpop.permute.xlu0 %2823  ;;  %5306 = vrsqrt.f32 %v2957_v59  ;;  %v2664_v54 = vmul.f32 0.03125, %v2632_v48  ;;  %v2696_v33 = vmul.f32 %v7446_v1, %v7446_v1  ;;  %v2636_v17 = vsub.f32 %v7811_v46, %v7506_v32 }
 0x8f6   :  { %5308 = vrsqrt.f32 %v2963_v26  ;;  %v2961_v27 = vadd.f32 1e-05, %v2737_v45  ;;  %v2670_v20 = vmul.f32 0.03125, %v2638_v50  ;;  %v2702_v35 = vmul.f32 %v7490_v31, %v7490_v31 }
 0x8f7   :  { %v7857_v43 = vpop.permute.xlu1 %2838  ;;  %v5297_v53 = vpop.eup %5296  ;;  %5310 = vrsqrt.f32 %v2950_v19  ;;  %v2728_v0 = vsub.f32 %v2664_v54, %v2696_v33  ;;  %v2642_v32 = vsub.f32 %v7830_v15, %v7557_v30  ;;  %v2700_v31 = vmul.f32 %v7502_v52, %v7502_v52 }
 0x8f8   :  { %5312 = vrsqrt.f32 %v2961_v27  ;;  %v2640_v30 = vsub.f32 %v7847_v36, %v7566_v8  ;;  %v2715_v15 = vmul.f32 %v7679_v10, %v7679_v10  ;;  %v9749_v10 = vld [vmem:[#allocation12_spill] sm:$0xff] }
 0x8f9   :  { %v7879_v60 = vpop.xlane.xlu0 %2568  ;;  %v2952_v46 = vadd.f32 1e-05, %v2728_v0  ;;  %v2674_v19 = vmul.f32 0.03125, %v2642_v32 }
 0x8fa   :  { %v2672_v36 = vmul.f32 0.03125, %v2640_v30  ;;  %v2646_v50 = vsub.f32 %v7879_v60, %v9749_v10 }
 0x8fb   :  { %v2571_v13 = vpop.xlane.xlu1 %2570  ;;  %v5299_v14 = vpop.eup %5298 }
 0x8fc   :  { %v2647_v61 = vsub.f32 %v2571_v13, %v7640_v9  ;;  %v5301_v62 = vpop.eup %5300  ;;  %v2634_v9 = vsub.f32 %v7763_v34, %v7441_v40  ;;  %v2724_v40 = vsub.f32 %v2660_v7, %v2692_v5  ;;  %v2734_v7 = vsub.f32 %v2670_v20, %v2702_v35  ;;  %v9751_v20 = vld [vmem:[#allocation54_spill] sm:$0xff] }
 0x8fd   :  { %v7898_v13 = vpop.xlane.xlu0 %2564  ;;  %v2678_v0 = vmul.f32 0.03125, %v2646_v50 }
 0x8fe   :  { %v2679_v16 = vmul.f32 0.03125, %v2647_v61  ;;  %v2666_v34 = vmul.f32 0.03125, %v2634_v9  ;;  %v2948_v25 = vadd.f32 1e-05, %v2724_v40  ;;  %v2668_v9 = vmul.f32 0.03125, %v2636_v17 }
 0x8ff   :  { %v2567_v18 = vpop.xlane.xlu1 %2566  ;;  %v2706_v40 = vmul.f32 %v7549_v57, %v7549_v57  ;;  %v2644_v17 = vsub.f32 %v7898_v13, %v9751_v20 }
 0x900   :  { %v2645_v47 = vsub.f32 %v2567_v18, %v7645_v49  ;;  %v5092_v49 = vld [vmem:[#allocation2 + $0xe0] sm:$0xff]   ;;  %v2743_v38 = vsub.f32 %v2679_v16, %v2711_v37  ;;  %v2730_v21 = vsub.f32 %v2666_v34, %v2698_v39  ;;  %5314 = vrsqrt.f32 %v2948_v25  ;;  %v5093_v18 = vld [vmem:[#allocation2 + $0xe8] sm:$0xff]  }
 0x901   :  { %2913 = vperm.xlu0 %5071, %v7836_v24   ;;  %4974 = vmatprep.subr.bf16.mxu1 %v5092_v49  ;;  %v7908_v59 = vpop.permute.xlu0 %2853  ;;  %v2732_v37 = vsub.f32 %v2668_v9, %v2700_v31  ;;  %v2738_v39 = vsub.f32 %v2674_v19, %v2706_v40  ;;  %v2676_v32 = vmul.f32 0.03125, %v2644_v17  ;;  %v9753_v31 = vld [vmem:[#allocation34_spill] sm:$0xff] }
 0x902   :  { %v2677_v58 = vmul.f32 0.03125, %v2645_v47  ;;  %4975 = vmatpush3.bf16.msra.mxu1 %v5092_v49  ;;  %v2967_v42 = vadd.f32 1e-05, %v2743_v38  ;;  %v2954_v61 = vadd.f32 1e-05, %v2730_v21  ;;  %v9747_v49 = vld [vmem:[#allocation72_spill] sm:$0xff] }
 0x903   :  { %v7906_v51 = vpop.permute.xlu1 %2868  ;;  %4976 = vmatprep.subr.bf16.mxu1 %v5093_v18  ;;  %v5094_v21 = vld [vmem:[#allocation2 + $0xf0] sm:$0xff]   ;;  %v2962_v60 = vadd.f32 1e-05, %v2738_v39  ;;  %v9757_v39 = vld [vmem:[#allocation77_spill] sm:$0xff] }
 0x904   :  { %v2741_v11 = vsub.f32 %v2677_v58, %v2709_v41  ;;  %5316 = vrsqrt.f32 %v2967_v42  ;;  %v2956_v58 = vadd.f32 1e-05, %v2732_v37  ;;  %v9750_v42 = vld [vmem:[#allocation60_spill] sm:$0xff] }
 0x905   :  { %2903 = vperm.xlu0 %5071, %v7851_v12   ;;  %v7918_v44 = vpop.permute.xlu0 %2843  ;;  %5318 = vrsqrt.f32 %v2954_v61 }
 0x906   :  { %4977 = vmatpush3.bf16.msra.mxu1 %v5093_v18 }
 0x907   :  { %v7916_v22 = vpop.permute.xlu1 %2858  ;;  %4978 = vmatprep.subr.bf16.mxu1 %v5094_v21 }
 0x909   :  { %3029 = vperm.xlu0 %5071, %v5297_v53   ;;  %v5303_v53 = vpop.eup %5302  ;;  %v7924_v16 = vpop.xlane.xlu0 %2576 }
 0x90a   :  { %4979 = vmatpush3.bf16.msra.mxu1 %v5094_v21  ;;  %v9759_v21 = vld [vmem:[#allocation79_spill] sm:$0xff] }
 0x90d   :  { %3019 = vperm.xlu0 %5071, %v5299_v14   ;;  %v5305_v14 = vpop.eup %5304  ;;  %v2573_v41 = vpop.xlane.xlu0 %2572 }
 0x90e   :  { %v5307_v23 = vpop.eup %5306 }
 0x90f   :  { %2594 = vadd.xlane.f32.xlu1 %v7874_v63  ;;  %v5309_v1 = vpop.eup %5308 }
 0x910   :  { %v5311_v45 = vpop.eup %5310 }
 0x911   :  { %3049 = vperm.xlu0 %5071, %v5301_v62   ;;  %v2965_v62 = vadd.f32 1e-05, %v2741_v11  ;;  %v5313_v5 = vpop.eup %5312  ;;  %v2704_v11 = vmul.f32 %v9750_v42, %v9750_v42  ;;  %v7942_v18 = vpop.permute.xlu0 %2873 }
 0x912   :  { %v5315_v48 = vpop.eup %5314 }
 0x913   :  { %2590 = vadd.xlane.f32.xlu1 %v7886_v56  ;;  %5320 = vrsqrt.f32 %v2965_v62  ;;  %v5317_v38 = vpop.eup %5316  ;;  %v2736_v61 = vsub.f32 %v2672_v36, %v2704_v11  ;;  %v5095_v62 = vld [vmem:[#allocation2 + $0xf8] sm:$0xff]   ;;  %v9758_v36 = vld [vmem:[#allocation39_spill] sm:$0xff] }
 0x914   :  { %5322 = vrsqrt.f32 %v2952_v46  ;;  %v5319_v54 = vpop.eup %5318  ;;  %4980 = vmatprep.subr.bf16.mxu1 %v5095_v62  ;;  %v2712_v10 = vmul.f32 %v9758_v36, %v9758_v36  ;;  %v9760_v11 = vld [vmem:[#allocation75_spill] sm:$0xff]  ;;  %v9766_v36 = vld [vmem:[#allocation98_spill] sm:$0xff] }
 0x915   :  { %3039 = vperm.xlu0 %5071, %v5303_v53   ;;  %v2958_v53 = vadd.f32 1e-05, %v2734_v7  ;;  %v9752_v7 = vld [vmem:[#allocation70_spill] sm:$0xff]  ;;  %4981 = vmatpush3.bf16.msra.mxu1 %v5095_v62  ;;  %v2960_v13 = vadd.f32 1e-05, %v2736_v61 }
 0x916   :  { %v2710_v9 = vmul.f32 %v9752_v7, %v9752_v7  ;;  %v9761_v61 = vld [vmem:[#allocation78_spill] sm:$0xff] }
 0x917   :  { %5324 = vrsqrt.f32 %v2958_v53  ;;  %v7950_v53 = vpop.permute.xlu0 %2863 }
 0x918   :  { %v2742_v46 = vsub.f32 %v2678_v0, %v2710_v9  ;;  %v2716_v0 = vmul.f32 %v9761_v61, %v9761_v61 }
 0x919   :  { %3069 = vperm.xlu0 %5071, %v5305_v14   ;;  %v9748_v14 = vld [vmem:[#allocation36_spill] sm:$0xff] }
 0x91a   :  { %v2713_v8 = vmul.f32 %v9748_v14, %v9748_v14  ;;  %v2966_v30 = vadd.f32 1e-05, %v2742_v46 }
 0x91d   :  { %3059 = vperm.xlu0 %5071, %v5307_v23   ;;  %v5321_v33 = vpop.eup %5320 }
 0x921   :  { %3089 = vperm.xlu0 %5071, %v5309_v1   ;;  %v5323_v1 = vpop.eup %5322 }
 0x922   :  { %v2579_v26 = vpop.xlane.xlu1 %2578 }
 0x923   :  { %v2651_v47 = vsub.f32 %v2579_v26, %v7692_v55  ;;  %v2650_v26 = vsub.f32 %v7924_v16, %v9753_v31 }
 0x924   :  { %3024 = vperm.xlu1 %5070, %v5311_v45   ;;  %v5325_v45 = vpop.eup %5324 }
 0x925   :  { %v2683_v52 = vmul.f32 0.03125, %v2651_v47  ;;  %3079 = vperm.xlu0 %5071, %v5313_v5   ;;  %v9754_v47 = vld [vmem:[#allocation50_spill] sm:$0xff] }
 0x926   :  { %v2575_v34 = vpop.xlane.xlu1 %2574  ;;  %v2708_v5 = vmul.f32 %v9754_v47, %v9754_v47  ;;  %v9762_v47 = vld [vmem:[#allocation89_spill] sm:$0xff] }
 0x927   :  { %v2747_v55 = vsub.f32 %v2683_v52, %v2715_v15  ;;  %v2649_v27 = vsub.f32 %v2575_v34, %v9747_v49  ;;  %v2682_v15 = vmul.f32 0.03125, %v2650_v26  ;;  %v9755_v52 = vld [vmem:[#allocation17_spill] sm:$0xff] }
 0x928   :  { %3014 = vperm.xlu1 %5070, %v5315_v48   ;;  %v2740_v37 = vsub.f32 %v2676_v32, %v2708_v5  ;;  %v2648_v40 = vsub.f32 %v2573_v41, %v9755_v52  ;;  %v9756_v48 = vld [vmem:[#allocation52_spill] sm:$0xff] }
 0x929   :  { %v2971_v25 = vadd.f32 1e-05, %v2747_v55  ;;  %v2681_v57 = vmul.f32 0.03125, %v2649_v27  ;;  %3109 = vperm.xlu0 %5071, %v5317_v38   ;;  %v2714_v55 = vmul.f32 %v9756_v48, %v9756_v48 }
 0x92a   :  { %v2964_v49 = vadd.f32 1e-05, %v2740_v37  ;;  %v7963_v46 = vpop.permute.xlu1 %2888  ;;  %v9763_v37 = vld [vmem:[#allocation83_spill] sm:$0xff] }
 0x92b   :  { %5326 = vrsqrt.f32 %v2971_v25  ;;  %v2745_v23 = vsub.f32 %v2681_v57, %v2713_v8  ;;  %v2746_v38 = vsub.f32 %v2682_v15, %v2714_v55  ;;  %v9765_v55 = vld [vmem:[#allocation87_spill] sm:$0xff] }
 0x92c   :  { %5328 = vrsqrt.f32 %v2956_v58  ;;  %3044 = vperm.xlu1 %5070, %v5319_v54   ;;  %v2680_v58 = vmul.f32 0.03125, %v2648_v40  ;;  %v9764_v40 = vld [vmem:[#allocation91_spill] sm:$0xff] }
 0x92d   :  { %v2969_v35 = vadd.f32 1e-05, %v2745_v23  ;;  %3099 = vperm.xlu0 %5071, %v5321_v33   ;;  %v2970_v41 = vadd.f32 1e-05, %v2746_v38  ;;  %v2718_v23 = vmul.f32 %v9760_v11, %v9760_v11 }
 0x92e   :  { %v2744_v25 = vsub.f32 %v2680_v58, %v2712_v10  ;;  %v7965_v26 = vpop.permute.xlu1 %2878 }
 0x92f   :  { %5330 = vrsqrt.f32 %v2969_v35 }
 0x930   :  { %3034 = vperm.xlu1 %5070, %v5323_v1   ;;  %5332 = vrsqrt.f32 %v2962_v60  ;;  %v2968_v33 = vadd.f32 1e-05, %v2744_v25 }
 0x931   :  { %5334 = vrsqrt.f32 %v2960_v13 }
 0x932   :  { %5336 = vrsqrt.f32 %v2966_v30 }
 0x933   :  { %5338 = vrsqrt.f32 %v2964_v49 }
 0x934   :  { %3064 = vperm.xlu1 %5070, %v5325_v45   ;;  %5340 = vrsqrt.f32 %v2970_v41  ;;  %v9767_v41 = vld [vmem:[#allocation96_spill] sm:$0xff] }
 0x935   :  { %v5327_v19 = vpop.eup %5326  ;;  %5342 = vrsqrt.f32 %v2968_v33  ;;  %v2722_v25 = vmul.f32 %v9767_v41, %v9767_v41  ;;  %v9769_v33 = vld [vmem:[#allocation99_spill] sm:$0xff] }
 0x936   :  { %v5329_v34 = vpop.eup %5328  ;;  %3129 = vperm.xlu0 %5071, %v5327_v19   ;;  %v2719_v19 = vmul.f32 %v9763_v37, %v9763_v37  ;;  %v2723_v37 = vmul.f32 %v7836_v24, %v7836_v24 }
 0x937   :  { %v2585_v16 = vpop.xlane.xlu0 %2584 }
 0x938   :  { %3054 = vperm.xlu1 %5070, %v5329_v34   ;;  %v2654_v14 = vsub.f32 %v2585_v16, %v9757_v39  ;;  %v2717_v16 = vmul.f32 %v9765_v55, %v9765_v55 }
 0x939   :  { %v5331_v27 = vpop.eup %5330 }
 0x93a   :  { %3119 = vperm.xlu0 %5071, %v5331_v27   ;;  %v5333_v8 = vpop.eup %5332  ;;  %v2686_v57 = vmul.f32 0.03125, %v2654_v14 }
 0x93b   :  { %v2581_v50 = vpop.xlane.xlu0 %2580  ;;  %v5335_v42 = vpop.eup %5334 }
 0x93c   :  { %3084 = vperm.xlu1 %5070, %v5333_v8   ;;  %v2652_v54 = vsub.f32 %v2581_v50, %v9759_v21  ;;  %v2750_v20 = vsub.f32 %v2686_v57, %v2718_v23  ;;  %v5337_v60 = vpop.eup %5336 }
 0x93d   :  { %v5339_v1 = vpop.eup %5338 }
 0x93e   :  { %v2684_v17 = vmul.f32 0.03125, %v2652_v54  ;;  %v2974_v35 = vadd.f32 1e-05, %v2750_v20  ;;  %v5341_v9 = vpop.eup %5340  ;;  %v2720_v20 = vmul.f32 %v9769_v33, %v9769_v33  ;;  %v9777_v33 = vld [vmem:[#allocation85_spill] sm:$0xff] }
 0x93f   :  { %v5343_v32 = vpop.eup %5342 }
 0x940   :  { %3074 = vperm.xlu1 %5070, %v5335_v42   ;;  %v2748_v62 = vsub.f32 %v2684_v17, %v2716_v0  ;;  %5344 = vrsqrt.f32 %v2974_v35  ;;  %v9768_v42 = vld [vmem:[#allocation101_spill] sm:$0xff] }
 0x942   :  { %v2972_v7 = vadd.f32 1e-05, %v2748_v62 }
 0x943   :  { %v7973_v38 = vpop.permute.xlu0 %2893 }
 0x944   :  { %3104 = vperm.xlu1 %5070, %v5337_v60   ;;  %5346 = vrsqrt.f32 %v2972_v7 }
 0x947   :  { %v7975_v39 = vpop.permute.xlu0 %2883 }
 0x948   :  { %3094 = vperm.xlu1 %5070, %v5339_v1  }
 0x94a   :  { %v5345_v13 = vpop.eup %5344 }
 0x94c   :  { %3124 = vperm.xlu1 %5070, %v5341_v9  }
 0x94e   :  { %v5347_v31 = vpop.eup %5346 }
 0x950   :  { %3114 = vperm.xlu1 %5070, %v5343_v32  }
 0x954   :  { %3144 = vperm.xlu1 %5070, %v5345_v13  }
 0x958   :  { %3134 = vperm.xlu1 %5070, %v5347_v31  }
 0x95f   :  { %v2587_v45 = vpop.xlane.xlu1 %2586 }
 0x960   :  { %v2655_v5 = vsub.f32 %v2587_v45, %v9762_v47 }
 0x962   :  { %v2687_v30 = vmul.f32 0.03125, %v2655_v5 }
 0x963   :  { %v2583_v15 = vpop.xlane.xlu1 %2582 }
 0x964   :  { %v2751_v52 = vsub.f32 %v2687_v30, %v2719_v19  ;;  %v2653_v34 = vsub.f32 %v2583_v15, %v9764_v40  ;;  %v9770_v30 = vld [vmem:[#allocation5_spill] sm:$0xff] }
 0x965   :  { %v3206_v15 = vsub.s32 7, %v9770_v30 }
 0x966   :  { %v2975_v48 = vadd.f32 1e-05, %v2751_v52  ;;  %v2685_v49 = vmul.f32 0.03125, %v2653_v34  ;;  %v9771_v34 = vld [vmem:[#allocation80_spill] sm:$0xff] }
 0x967   :  { %v7987_v32 = vpop.permute.xlu1 %2908 }
 0x968   :  { %5348 = vrsqrt.f32 %v2975_v48  ;;  %v2749_v27 = vsub.f32 %v2685_v49, %v2717_v16  ;;  %v9772_v48 = vld [vmem:[#allocation62_spill] sm:$0xff] }
 0x969   :  { %v2917_v55 = vsub.f32 %v9772_v48, %v9771_v34 }
 0x96a   :  { %v2973_v58 = vadd.f32 1e-05, %v2749_v27  ;;  %v9773_v27 = vld [vmem:[#allocation74_spill] sm:$0xff] }
 0x96b   :  { %v7989_v31 = vpop.permute.xlu1 %2898 }
 0x96c   :  { %5350 = vrsqrt.f32 %v2973_v58  ;;  %v9774_v58 = vld [vmem:[#allocation42_spill] sm:$0xff] }
 0x972   :  { %v5349_v14 = vpop.eup %5348 }
 0x973   :  { %3149 = vperm.xlu0 %5071, %v5349_v14   ;;  %v2918_v14 = vsub.f32 %v9774_v58, %v9773_v27 }
 0x974   :  { %v2593_v8 = vpop.xlane.xlu0 %2592 }
 0x975   :  { %v2658_v10 = vsub.f32 %v2593_v8, %v9766_v36  ;;  %v9775_v8 = vld [vmem:[#allocation88_spill] sm:$0xff] }
 0x976   :  { %v5351_v50 = vpop.eup %5350 }
 0x977   :  { %v2690_v57 = vmul.f32 0.03125, %v2658_v10  ;;  %3139 = vperm.xlu0 %5071, %v5351_v50   ;;  %v2721_v50 = vmul.f32 %v7851_v12, %v7851_v12  ;;  %v9778_v12 = vld [vmem:[#allocation43_spill] sm:$0xff] }
 0x978   :  { %v2589_v21 = vpop.xlane.xlu0 %2588 }
 0x979   :  { %v2754_v54 = vsub.f32 %v2690_v57, %v2722_v25  ;;  %v2656_v11 = vsub.f32 %v2589_v21, %v9768_v42  ;;  %v5426_v25 = vld [vmem:[%s9121_s2] sm:$0xff] }
 0x97a   :  { %v8009_v57 = vrot.slane %v5426_v25, %v3206_v15  ;;  %v9782_v15 = vld [vmem:[#allocation93_spill] sm:$0xff]  ;;  %v9787_v25 = vld [vmem:[#allocation56_spill] sm:$0xff] }
 0x97b   :  { %v2978_v23 = vadd.f32 1e-05, %v2754_v54  ;;  %v2688_v17 = vmul.f32 0.03125, %v2656_v11  ;;  %v8014_v54 = vld [vmem:[%s9121_s2 + $0x8] sm:$0xff] }
 0x97d   :  { %5352 = vrsqrt.f32 %v2978_v23  ;;  %v2752_v60 = vsub.f32 %v2688_v17, %v2720_v20  ;;  %v2916_v20 = vsub.f32 %v9778_v12, %v9777_v33 }
 0x97f   :  { %v2976_v61 = vadd.f32 1e-05, %v2752_v60 }
 0x980   :  { %v7983_v0 = vpop.permute.xlu0 %2913 }
 0x981   :  { %5354 = vrsqrt.f32 %v2976_v61 }
 0x984   :  { %v7985_v35 = vpop.permute.xlu0 %2903 }
 0x987   :  { %v5353_v62 = vpop.eup %5352 }
 0x988   :  { %3164 = vperm.xlu1 %5070, %v5353_v62   ;;  %v3030_v1 = vpop.permute.xlu0 %3029  ;;  %v9779_v62 = vsub.s32 0, %v9770_v30 }
 0x98b   :  { %v5355_v7 = vpop.eup %5354 }
 0x98c   :  { %3154 = vperm.xlu1 %5070, %v5355_v7   ;;  %v3020_v9 = vpop.permute.xlu0 %3019 }
 0x98d   :  { %v3173_v10 = vmul.f32 %v3020_v9, %v2917_v55  ;;  %v9784_v55 = vld [vmem:[#allocation81_spill] sm:$0xff] }
 0x98f   :  { %v3209_v17 = vmul.f32 %v8009_v57, %v3173_v10 }
 0x990   :  { %v3050_v13 = vpop.permute.xlu0 %3049 }
 0x994   :  { %v3040_v45 = vpop.permute.xlu0 %3039 }
 0x998   :  { %v7995_v52 = vpop.permute.xlu0 %3069 }
 0x99c   :  { %v2595_v47 = vpop.xlane.xlu1 %2594  ;;  %v3060_v23 = vpop.permute.xlu0 %3059 }
 0x99d   :  { %v2659_v5 = vsub.f32 %v2595_v47, %v7874_v63  ;;  %v9776_v63 = vld [vmem:[#allocation32_spill] sm:$0xff]  ;;  %v9780_v47 = vld [vmem:[#allocation95_spill] sm:$0xff] }
 0x99e   :  { %v2919_v36 = vsub.f32 %v9776_v63, %v9775_v8 }
 0x99f   :  { %v2691_v19 = vmul.f32 0.03125, %v2659_v5  ;;  %v9781_v5 = vld [vmem:[#allocation45_spill] sm:$0xff] }
 0x9a0   :  { %v2591_v40 = vpop.xlane.xlu1 %2590  ;;  %v3175_v21 = vmul.f32 %v3030_v1, %v2919_v36  ;;  %v8023_v1 = vrot.slane %v8014_v54, %v9779_v62  ;;  %v3090_v36 = vpop.permute.xlu0 %3089 }
 0x9a1   :  { %v2755_v16 = vsub.f32 %v2691_v19, %v2723_v37  ;;  %v2657_v49 = vsub.f32 %v2591_v40, %v7886_v56  ;;  %v2921_v37 = vsub.f32 %v9781_v5, %v9780_v47  ;;  %v9783_v40 = vld [vmem:[#allocation41_spill] sm:$0xff] }
 0x9a2   :  { %v3211_v7 = vmul.f32 %v8009_v57, %v3175_v21  ;;  %v2923_v34 = vsub.f32 %v9783_v40, %v9782_v15  ;;  %v3245_v27 = vadd.f32 %v8023_v1, %v3209_v17  ;;  %v9790_v47 = vld [vmem:[#allocation25_spill] sm:$0xff] }
 0x9a3   :  { %v2979_v24 = vadd.f32 1e-05, %v2755_v16  ;;  %v2689_v41 = vmul.f32 0.03125, %v2657_v49  ;;  %v9785_v16 = vld [vmem:[#allocation46_spill] sm:$0xff]  ;;  %v3177_v58 = vmul.f32 %v3040_v45, %v2921_v37 }
 0x9a4   :  { %v3025_v56 = vpop.permute.xlu1 %3024  ;;  %v2922_v49 = vsub.f32 %v9785_v16, %v9784_v55  ;;  %v3247_v8 = vadd.f32 %v8023_v1, %v3211_v7  ;;  %v3179_v63 = vmul.f32 %v3050_v13, %v2923_v34  ;;  %v3277_v12 = vmax.f32 %v3245_v27, 0.0  ;;  %v9791_v34 = vld [vmem:[#allocation90_spill] sm:$0xff] }
 0x9a5   :  { %5356 = vrsqrt.f32 %v2979_v24  ;;  %v2753_v42 = vsub.f32 %v2689_v41, %v2721_v50  ;;  %v3174_v11 = vmul.f32 %v3025_v56, %v2918_v14  ;;  %v9786_v41 = vld [vmem:[#allocation86_spill] sm:$0xff] }
 0x9a6   :  { %v2920_v21 = vsub.f32 %v9787_v25, %v9786_v41  ;;  %v3215_v17 = vmul.f32 %v8009_v57, %v3179_v63 }
 0x9a7   :  { %v2977_v60 = vadd.f32 1e-05, %v2753_v42  ;;  %v3210_v61 = vmul.f32 %v8009_v57, %v3174_v11  ;;  %v3213_v11 = vmul.f32 %v8009_v57, %v3177_v58 }
 0x9a8   :  { %v3015_v9 = vpop.permute.xlu1 %3014 }
 0x9a9   :  { %5358 = vrsqrt.f32 %v2977_v60  ;;  %v3172_v19 = vmul.f32 %v3015_v9, %v2916_v20  ;;  %v3246_v48 = vadd.f32 %v8023_v1, %v3210_v61  ;;  %v3279_v20 = vmax.f32 %v3247_v8, 0.0  ;;  %v9788_v60 = vld [vmem:[#allocation48_spill] sm:$0xff]  ;;  %v9789_v9 = vld [vmem:[#allocation103_spill] sm:$0xff] }
 0x9aa   :  { %v2925_v61 = vsub.f32 %v9788_v60, %v7821_v28  ;;  %v2927_v5 = vsub.f32 %v9790_v47, %v9789_v9  ;;  %v3249_v16 = vadd.f32 %v8023_v1, %v3213_v11  ;;  %v3251_v28 = vadd.f32 %v8023_v1, %v3215_v17  ;;  %v9798_v9 = vld [vmem:[#allocation23_spill] sm:$0xff] }
 0x9ab   :  { %v3208_v14 = vmul.f32 %v8009_v57, %v3172_v19  ;;  %v3278_v56 = vmax.f32 %v3246_v48, 0.0  ;;  %v3080_v19 = vpop.permute.xlu0 %3079  ;;  %v9792_v48 = vld [vmem:[#allocation71_spill] sm:$0xff] }
 0x9ac   :  { %v3045_v10 = vpop.permute.xlu1 %3044  ;;  %v2926_v55 = vsub.f32 %v9792_v48, %v9791_v34  ;;  %v3183_v58 = vmul.f32 %v7995_v52, %v2927_v5 }
 0x9ad   :  { %v3244_v24 = vadd.f32 %v8023_v1, %v3208_v14  ;;  %v3178_v50 = vmul.f32 %v3045_v10, %v2922_v49  ;;  %v3325_v37 = vpack.c.bf16 %v3279_v20, %v3278_v56  ;;  %v3181_v49 = vmul.f32 %v3060_v23, %v2925_v61  ;;  %v9793_v10 = vld [vmem:[#allocation92_spill] sm:$0xff] }
 0x9ae   :  { %v3281_v56 = vmax.f32 %v3249_v16, 0.0  ;;  %v9800_v16 = vld [vmem:[#allocation44_spill] sm:$0xff] }
 0x9af   :  { %v5357_v42 = vpop.eup %5356  ;;  %v3214_v33 = vmul.f32 %v8009_v57, %v3178_v50  ;;  %v3276_v45 = vmax.f32 %v3244_v24, 0.0  ;;  %v9794_v24 = vld [vmem:[#allocation49_spill] sm:$0xff]  ;;  %v3217_v25 = vmul.f32 %v8009_v57, %v3181_v49  ;;  %v3110_v11 = vpop.permute.xlu0 %3109 }
 0x9b0   :  { %3169 = vperm.xlu0 %5071, %v5357_v42   ;;  %v3035_v13 = vpop.permute.xlu1 %3034  ;;  %v2924_v50 = vsub.f32 %v9794_v24, %v9793_v10  ;;  %v3219_v42 = vmul.f32 %v8009_v57, %v3183_v58  ;;  %v9801_v24 = vld [vmem:[#allocation24_spill] sm:$0xff] }
 0x9b1   :  { %v3176_v62 = vmul.f32 %v3035_v13, %v2920_v21  ;;  %v3324_v7 = vpack.c.bf16 %v3277_v12, %v3276_v45  ;;  %v3250_v15 = vadd.f32 %v8023_v1, %v3214_v33  ;;  %v3283_v33 = vmax.f32 %v3251_v28, 0.0  ;;  %v9795_v45 = vld [vmem:[#allocation68_spill] sm:$0xff]  ;;  %v9796_v13 = vld [vmem:[#allocation57_spill] sm:$0xff] }
 0x9b2   :  { %v2929_v12 = vsub.f32 %v9795_v45, %v7866_v4  ;;  %v2931_v60 = vsub.f32 %v9796_v13, %v7855_v2  ;;  %v3253_v5 = vadd.f32 %v8023_v1, %v3217_v25 }
 0x9b3   :  { %v5359_v40 = vpop.eup %5358  ;;  %v3212_v27 = vmul.f32 %v8009_v57, %v3176_v62  ;;  %4982 = vmatprep.mubr.bf16.mxu1 %v3324_v7  ;;  %v3282_v41 = vmax.f32 %v3250_v15, 0.0  ;;  %v9797_v7 = vld [vmem:[#allocation100_spill] sm:$0xff] }
 0x9b4   :  { %3159 = vperm.xlu0 %5071, %v5359_v40   ;;  %v3065_v14 = vpop.permute.xlu1 %3064  ;;  %4983 = vmatmul.mubr.bf16.vlgmr.msra.gmra.mrb[48].mxu1 %v3325_v37  ;;  %v2930_v47 = vsub.f32 %v9798_v9, %v9797_v7  ;;  %v3185_v37 = vmul.f32 %v3080_v19, %v2929_v12  ;;  %v3255_v40 = vadd.f32 %v8023_v1, %v3219_v42 }
 0x9b5   :  { %v3248_v8 = vadd.f32 %v8023_v1, %v3212_v27  ;;  %v3182_v63 = vmul.f32 %v3065_v14, %v2926_v55  ;;  %v3327_v62 = vpack.c.bf16 %v3283_v33, %v3282_v41  ;;  %v3187_v4 = vmul.f32 %v3090_v36, %v2931_v60  ;;  %v9799_v55 = vld [vmem:[#allocation102_spill] sm:$0xff]  ;;  %v3100_v27 = vpop.permute.xlu0 %3099  ;;  %v9803_v33 = vld [vmem:[#allocation51_spill] sm:$0xff] }
 0x9b6   :  { %v2928_v49 = vsub.f32 %v9800_v16, %v9799_v55  ;;  %v3221_v58 = vmul.f32 %v8009_v57, %v3185_v37  ;;  %v3287_v36 = vmax.f32 %v3255_v40, 0.0  ;;  %v2934_v45 = vsub.f32 %v9803_v33, %v7842_v29  ;;  %v9806_v16 = vld [vmem:[#allocation10_spill] sm:$0xff] }
 0x9b7   :  { %v3218_v23 = vmul.f32 %v8009_v57, %v3182_v63  ;;  %v3280_v21 = vmax.f32 %v3248_v8, 0.0  ;;  %v3285_v8 = vmax.f32 %v3253_v5, 0.0  ;;  %v3223_v63 = vmul.f32 %v8009_v57, %v3187_v4 }
 0x9b8   :  { %v3055_v52 = vpop.permute.xlu1 %3054  ;;  %v3257_v12 = vadd.f32 %v8023_v1, %v3221_v58 }
 0x9b9   :  { %v3180_v20 = vmul.f32 %v3055_v52, %v2924_v50  ;;  %v3326_v17 = vpack.c.bf16 %v3281_v56, %v3280_v21  ;;  %v3254_v61 = vadd.f32 %v8023_v1, %v3218_v23  ;;  %v2933_v50 = vsub.f32 %v9801_v24, %v7918_v44  ;;  %v9802_v23 = vld [vmem:[#allocation33_spill] sm:$0xff]  ;;  %v3130_v56 = vpop.permute.xlu0 %3129  ;;  %v9808_v24 = vld [vmem:[#allocation20_spill] sm:$0xff] }
 0x9ba   :  { %v2935_v21 = vsub.f32 %v9802_v23, %v7908_v59  ;;  %v3259_v44 = vadd.f32 %v8023_v1, %v3223_v63  ;;  %v3289_v37 = vmax.f32 %v3257_v12, 0.0 }
 0x9bb   :  { %v3216_v15 = vmul.f32 %v8009_v57, %v3180_v20  ;;  %4986 = vmatprep.mubr.bf16.mxu1 %v3326_v17  ;;  %v3286_v28 = vmax.f32 %v3254_v61, 0.0  ;;  %v3189_v20 = vmul.f32 %v3100_v27, %v2933_v50  ;;  %v2936_v50 = vsub.f32 %v9808_v24, %v7916_v22 }
 0x9bc   :  { %v3085_v34 = vpop.permute.xlu1 %3084  ;;  %4987 = vmatmul.mubr.bf16.gmra.mrb[52].mxu1 %v3327_v62  ;;  %v3191_v13 = vmul.f32 %v3110_v11, %v2935_v21  ;;  %v9804_v62 = vld [vmem:[#allocation53_spill] sm:$0xff]  ;;  %v3291_v11 = vmax.f32 %v3259_v44, 0.0 }
 0x9bd   :  { %v3252_v48 = vadd.f32 %v8023_v1, %v3216_v15  ;;  %v3186_v2 = vmul.f32 %v3085_v34, %v2930_v47  ;;  %v3329_v52 = vpack.c.bf16 %v3287_v36, %v3286_v28  ;;  %v2932_v7 = vsub.f32 %v9804_v62, %v7857_v43  ;;  %v3120_v40 = vpop.permute.xlu0 %3119  ;;  %v9805_v34 = vld [vmem:[#allocation65_spill] sm:$0xff]  ;;  %v9807_v28 = vld [vmem:[#allocation26_spill] sm:$0xff] }
 0x9be   :  { %v3225_v29 = vmul.f32 %v8009_v57, %v3189_v20  ;;  %v3227_v15 = vmul.f32 %v8009_v57, %v3191_v13  ;;  %v2939_v43 = vsub.f32 %v9806_v16, %v7942_v18  ;;  %v2938_v58 = vsub.f32 %v9807_v28, %v7906_v51  ;;  %v9812_v16 = vld [vmem:[#allocation84_spill] sm:$0xff] }
 0x9bf   :  { %v3222_v19 = vmul.f32 %v8009_v57, %v3186_v2  ;;  %v3284_v14 = vmax.f32 %v3252_v48, 0.0  ;;  %v2937_v48 = vsub.f32 %v9805_v34, %v7950_v53 }
 0x9c0   :  { %v3075_v10 = vpop.permute.xlu1 %3074  ;;  %v3263_v63 = vadd.f32 %v8023_v1, %v3227_v15  ;;  %v3195_v53 = vmul.f32 %v3130_v56, %v2939_v43  ;;  %v9810_v15 = vld [vmem:[#allocation73_spill] sm:$0xff]  ;;  %v2941_v43 = vsub.f32 %v9812_v16, %v7975_v39 }
 0x9c1   :  { %v3184_v41 = vmul.f32 %v3075_v10, %v2928_v49  ;;  %v3328_v25 = vpack.c.bf16 %v3285_v8, %v3284_v14  ;;  %v3258_v42 = vadd.f32 %v8023_v1, %v3222_v19  ;;  %v3261_v19 = vadd.f32 %v8023_v1, %v3225_v29 }
 0x9c2   :  { %v3193_v14 = vmul.f32 %v3120_v40, %v2937_v48  ;;  %v3295_v33 = vmax.f32 %v3263_v63, 0.0  ;;  %v2942_v40 = vsub.f32 %v9810_v15, %v7963_v46 }
 0x9c3   :  { %v3220_v17 = vmul.f32 %v8009_v57, %v3184_v41  ;;  %4990 = vmatprep.mubr.bf16.mxu1 %v3328_v25  ;;  %v3290_v9 = vmax.f32 %v3258_v42, 0.0  ;;  %v3293_v21 = vmax.f32 %v3261_v19, 0.0  ;;  %v3231_v42 = vmul.f32 %v8009_v57, %v3195_v53 }
 0x9c4   :  { %v3105_v60 = vpop.permute.xlu1 %3104  ;;  %4991 = vmatmul.mubr.bf16.gmra.mrb[56].mxu1 %v3329_v52  ;;  %v3229_v51 = vmul.f32 %v8009_v57, %v3193_v14 }
 0x9c5   :  { %v3256_v59 = vadd.f32 %v8023_v1, %v3220_v17  ;;  %v3190_v61 = vmul.f32 %v3105_v60, %v2934_v45  ;;  %v3331_v27 = vpack.c.bf16 %v3291_v11, %v3290_v9  ;;  %v3267_v44 = vadd.f32 %v8023_v1, %v3231_v42 }
 0x9c6   :  { %v3265_v17 = vadd.f32 %v8023_v1, %v3229_v51 }
 0x9c7   :  { %v3226_v47 = vmul.f32 %v8009_v57, %v3190_v61  ;;  %v3288_v5 = vmax.f32 %v3256_v59, 0.0  ;;  %v3299_v62 = vmax.f32 %v3267_v44, 0.0 }
 0x9c8   :  { %v3095_v4 = vpop.permute.xlu1 %3094  ;;  %v3297_v61 = vmax.f32 %v3265_v17, 0.0 }
 0x9c9   :  { %v3188_v2 = vmul.f32 %v3095_v4, %v2932_v7  ;;  %v3330_v55 = vpack.c.bf16 %v3289_v37, %v3288_v5  ;;  %v3262_v49 = vadd.f32 %v8023_v1, %v3226_v47  ;;  %v9809_v5 = vld [vmem:[#allocation76_spill] sm:$0xff]  ;;  %v9811_v4 = vld [vmem:[#allocation82_spill] sm:$0xff] }
 0x9ca   :  { %v2940_v37 = vsub.f32 %v9809_v5, %v7965_v26  ;;  %v2943_v11 = vsub.f32 %v9811_v4, %v7973_v38 }
 0x9cb   :  { %v3224_v8 = vmul.f32 %v8009_v57, %v3188_v2  ;;  %4994 = vmatprep.mubr.bf16.mxu1 %v3330_v55  ;;  %v3294_v41 = vmax.f32 %v3262_v49, 0.0 }
 0x9cc   :  { %v3125_v10 = vpop.permute.xlu1 %3124  ;;  %4995 = vmatmul.mubr.bf16.gmra.mrb[60].mxu1 %v3331_v27 }
 0x9cd   :  { %v3260_v36 = vadd.f32 %v8023_v1, %v3224_v8  ;;  %v3194_v18 = vmul.f32 %v3125_v10, %v2938_v58  ;;  %v3333_v20 = vpack.c.bf16 %v3295_v33, %v3294_v41  ;;  %v9813_v41 = vld [vmem:[#allocation97_spill] sm:$0xff] }
 0x9ce   :  { %v2944_v51 = vsub.f32 %v9813_v41, %v7989_v31 }
 0x9cf   :  { %v3230_v25 = vmul.f32 %v8009_v57, %v3194_v18  ;;  %v3292_v23 = vmax.f32 %v3260_v36, 0.0 }
 0x9d0   :  { %v3115_v52 = vpop.permute.xlu1 %3114 }
 0x9d1   :  { %v3192_v56 = vmul.f32 %v3115_v52, %v2936_v50  ;;  %v3332_v45 = vpack.c.bf16 %v3293_v21, %v3292_v23  ;;  %v3266_v12 = vadd.f32 %v8023_v1, %v3230_v25  ;;  %v9814_v25 = vld [vmem:[#allocation94_spill] sm:$0xff]  ;;  %v2947_v21 = vsub.f32 %v7828_v3, %v7983_v0 }
 0x9d2   :  { %v2946_v23 = vsub.f32 %v9814_v25, %v7987_v32 }
 0x9d3   :  { %v3228_v22 = vmul.f32 %v8009_v57, %v3192_v56  ;;  %4998 = vmatprep.mubr.bf16.mxu1 %v3332_v45  ;;  %v3298_v60 = vmax.f32 %v3266_v12, 0.0  ;;  %v2945_v45 = vsub.f32 %v7840_v6, %v7985_v35 }
 0x9d4   :  { %4999 = vmatmul.mubr.bf16.gmra.mrb[64].mxu1 %v3333_v20  ;;  %v3145_v29 = vpop.permute.xlu1 %3144 }
 0x9d5   :  { %v3264_v13 = vadd.f32 %v8023_v1, %v3228_v22  ;;  %v3335_v9 = vpack.c.bf16 %v3299_v62, %v3298_v60  ;;  %v3198_v48 = vmul.f32 %v3145_v29, %v2942_v40 }
 0x9d7   :  { %v3296_v59 = vmax.f32 %v3264_v13, 0.0  ;;  %v3234_v28 = vmul.f32 %v8009_v57, %v3198_v48 }
 0x9d8   :  { %v3135_v47 = vpop.permute.xlu1 %3134 }
 0x9d9   :  { %v3334_v7 = vpack.c.bf16 %v3297_v61, %v3296_v59  ;;  %v3196_v34 = vmul.f32 %v3135_v47, %v2940_v37  ;;  %v3270_v14 = vadd.f32 %v8023_v1, %v3234_v28 }
 0x9db   :  { %5002 = vmatprep.mubr.bf16.mxu1 %v3334_v7  ;;  %v3232_v49 = vmul.f32 %v8009_v57, %v3196_v34  ;;  %v3302_v10 = vmax.f32 %v3270_v14, 0.0  ;;  %v9815_v7 = vsub.s32 1, %v9770_v30 }
 0x9dc   :  { %5003 = vmatmul.mubr.bf16.gmra.mrb[68].mxu1 %v3335_v9 }
 0x9dd   :  { %v3268_v19 = vadd.f32 %v8023_v1, %v3232_v49  ;;  %v8147_v9 = vrot.slane %v8014_v54, %v9815_v7 }
 0x9df   :  { %v3300_v39 = vmax.f32 %v3268_v19, 0.0 }
 0x9f2   :  { %v3150_v2 = vpop.permute.xlu0 %3149 }
 0x9f3   :  { %v3199_v55 = vmul.f32 %v3150_v2, %v2943_v11 }
 0x9f5   :  { %v3235_v27 = vmul.f32 %v8009_v57, %v3199_v55 }
 0x9f6   :  { %v3140_v26 = vpop.permute.xlu0 %3139 }
 0x9f7   :  { %v3197_v58 = vmul.f32 %v3140_v26, %v2941_v43  ;;  %v3271_v46 = vadd.f32 %v8023_v1, %v3235_v27 }
 0x9f9   :  { %v3233_v38 = vmul.f32 %v8009_v57, %v3197_v58  ;;  %v3303_v63 = vmax.f32 %v3271_v46, 0.0 }
 0x9fb   :  { %v3269_v8 = vadd.f32 %v8023_v1, %v3233_v38  ;;  %v3337_v18 = vpack.c.bf16 %v3303_v63, %v3302_v10 }
 0x9fd   :  { %v3301_v53 = vmax.f32 %v3269_v8, 0.0 }
 0x9ff   :  { %v3336_v36 = vpack.c.bf16 %v3301_v53, %v3300_v39 }
 0xa01   :  { %5006 = vmatprep.mubr.bf16.mxu1 %v3336_v36 }
 0xa02   :  { %5007 = vmatmul.mubr.bf16.gmra.mrb[72].mxu1 %v3337_v18 }
 0xa07   :  { %v3165_v24 = vpop.permute.xlu1 %3164 }
 0xa08   :  { %v3202_v52 = vmul.f32 %v3165_v24, %v2946_v23 }
 0xa0a   :  { %v3238_v17 = vmul.f32 %v8009_v57, %v3202_v52 }
 0xa0b   :  { %v3155_v50 = vpop.permute.xlu1 %3154 }
 0xa0c   :  { %v3200_v42 = vmul.f32 %v3155_v50, %v2944_v51  ;;  %v3274_v0 = vadd.f32 %v8023_v1, %v3238_v17 }
 0xa0e   :  { %v3236_v12 = vmul.f32 %v8009_v57, %v3200_v42  ;;  %v3306_v59 = vmax.f32 %v3274_v0, 0.0 }
 0xa10   :  { %v3272_v44 = vadd.f32 %v8023_v1, %v3236_v12 }
 0xa12   :  { %v3304_v6 = vmax.f32 %v3272_v44, 0.0 }
 0xa2f   :  { %v3170_v33 = vpop.permute.xlu0 %3169 }
 0xa30   :  { %v3203_v56 = vmul.f32 %v3170_v33, %v2947_v21 }
 0xa32   :  { %v3239_v20 = vmul.f32 %v8009_v57, %v3203_v56 }
 0xa33   :  { %v3160_v31 = vpop.permute.xlu0 %3159 }
 0xa34   :  { %v3201_v22 = vmul.f32 %v3160_v31, %v2945_v45  ;;  %v3275_v32 = vadd.f32 %v8023_v1, %v3239_v20 }
 0xa36   :  { %v3237_v3 = vmul.f32 %v8009_v57, %v3201_v22  ;;  %v3307_v60 = vmax.f32 %v3275_v32, 0.0 }
 0xa38   :  { %v3273_v13 = vadd.f32 %v8023_v1, %v3237_v3  ;;  %v3339_v62 = vpack.c.bf16 %v3307_v60, %v3306_v59 }
 0xa3a   :  { %v3305_v35 = vmax.f32 %v3273_v13, 0.0 }
 0xa3c   :  { %v3338_v61 = vpack.c.bf16 %v3305_v35, %v3304_v6 }
 0xa3e   :  { %5010 = vmatprep.mubr.bf16.mxu1 %v3338_v61 }
 0xa3f   :  { %5011 = vmatmul.mubr.bf16.gmra.mrb[76].mxu1 %v3339_v62 }
 0xa87   :  { %v4984_v29 = vpop.f32.mrb[48].mxu1 }
 0xa88   :  { %v8150_v57 = vadd.f32 %v4984_v29, %v8147_v9  ;;  %v3426_v47 = vpop.f32.mrb[49].mxu1 }
 0xa89   :  { %v4985_v5 = vpop.f32.mrb[50].mxu1  ;;  %v8166_v16 = vadd.f32 %v3426_v47, %v8147_v9 }
 0xa8a   :  { %9816 = vst [vmem:[#allocation72_spill] sm:$0xff] %v8150_v57  ;;  %v8153_v1 = vmul.f32 0.03125, %v8150_v57  ;;  %v3429_v37 = vpop.f32.mrb[51].mxu1  ;;  %v8157_v15 = vmul.f32 %v8150_v57, %v8150_v57  ;;  %v8174_v27 = vadd.f32 %v4985_v5, %v8147_v9 }
 0xa8b   :  { %9817 = vst [vmem:[#allocation36_spill] sm:$0xff] %v8166_v16  ;;  %v8171_v49 = vmul.f32 0.03125, %v8166_v16  ;;  %v8197_v63 = vmul.f32 %v8166_v16, %v8166_v16  ;;  %v8214_v24 = vadd.f32 %v3429_v37, %v8147_v9 }
 0xa8c   :  { %3821 = vperm.xlu1 %5070, %v8153_v1   ;;  %3589 = vadd.xlane.f32.xlu0 %v8157_v15  ;;  %9818 = vst [vmem:[#allocation12_spill] sm:$0xff] %v8174_v27  ;;  %v8184_v46 = vmul.f32 0.03125, %v8174_v27  ;;  %v8210_v18 = vmul.f32 %v8174_v27, %v8174_v27 }
 0xa8d   :  { %9819 = vst [vmem:[#allocation60_spill] sm:$0xff] %v8214_v24  ;;  %v8217_v50 = vmul.f32 0.03125, %v8214_v24  ;;  %v8224_v51 = vmul.f32 %v8214_v24, %v8214_v24 }
 0xa8f   :  { %v4988_v54 = vpop.f32.mrb[52].mxu1 }
 0xa90   :  { %v3442_v40 = vpop.f32.mrb[53].mxu1  ;;  %v8220_v41 = vadd.f32 %v4988_v54, %v8147_v9 }
 0xa91   :  { %v4989_v4 = vpop.f32.mrb[54].mxu1  ;;  %v8232_v23 = vadd.f32 %v3442_v40, %v8147_v9 }
 0xa92   :  { %v3445_v11 = vpop.f32.mrb[55].mxu1  ;;  %9820 = vst [vmem:[#allocation54_spill] sm:$0xff] %v8220_v41  ;;  %v8229_v25 = vmul.f32 0.03125, %v8220_v41  ;;  %v8236_v21 = vmul.f32 %v8220_v41, %v8220_v41  ;;  %v8258_v20 = vadd.f32 %v4989_v4, %v8147_v9 }
 0xa93   :  { %9821 = vst [vmem:[#allocation70_spill] sm:$0xff] %v8232_v23  ;;  %v8241_v42 = vmul.f32 0.03125, %v8232_v23  ;;  %v8245_v52 = vmul.f32 %v8232_v23, %v8232_v23  ;;  %v8264_v31 = vadd.f32 %v3445_v11, %v8147_v9 }
 0xa94   :  { %9822 = vst [vmem:[#allocation34_spill] sm:$0xff] %v8258_v20  ;;  %v8261_v17 = vmul.f32 0.03125, %v8258_v20  ;;  %v8273_v32 = vmul.f32 %v8258_v20, %v8258_v20 }
 0xa95   :  { %9823 = vst [vmem:[#allocation50_spill] sm:$0xff] %v8264_v31  ;;  %v8268_v22 = vmul.f32 0.03125, %v8264_v31  ;;  %v8278_v44 = vmul.f32 %v8264_v31, %v8264_v31 }
 0xa97   :  { %v4992_v34 = vpop.f32.mrb[56].mxu1 }
 0xa98   :  { %v3458_v48 = vpop.f32.mrb[57].mxu1  ;;  %v8282_v3 = vadd.f32 %v4992_v34, %v8147_v9 }
 0xa99   :  { %v8161_v2 = vpop.f32.mrb[58].mxu1  ;;  %v8288_v13 = vadd.f32 %v3458_v48, %v8147_v9 }
 0xa9a   :  { %v8163_v55 = vpop.f32.mrb[59].mxu1  ;;  %9824 = vst [vmem:[#allocation17_spill] sm:$0xff] %v8282_v3  ;;  %v8285_v0 = vmul.f32 0.03125, %v8282_v3  ;;  %v8292_v60 = vmul.f32 %v8282_v3, %v8282_v3  ;;  %v8315_v29 = vadd.f32 %v8161_v2, %v8147_v9  ;;  %v8348_v2 = vmul.f32 %v8171_v49, %v8171_v49 }
 0xa9b   :  { %9825 = vst [vmem:[#allocation52_spill] sm:$0xff] %v8288_v13  ;;  %v8297_v6 = vmul.f32 0.03125, %v8288_v13  ;;  %v8301_v35 = vmul.f32 %v8288_v13, %v8288_v13  ;;  %v8322_v5 = vadd.f32 %v8163_v55, %v8147_v9 }
 0xa9c   :  { %9826 = vst [vmem:[#allocation77_spill] sm:$0xff] %v8315_v29  ;;  %v8318_v47 = vmul.f32 0.03125, %v8315_v29  ;;  %v8331_v54 = vmul.f32 %v8315_v29, %v8315_v29 }
 0xa9d   :  { %9827 = vst [vmem:[#allocation39_spill] sm:$0xff] %v8322_v5  ;;  %v8326_v37 = vmul.f32 0.03125, %v8322_v5  ;;  %v8336_v40 = vmul.f32 %v8322_v5, %v8322_v5 }
 0xa9f   :  { %v8168_v43 = vpop.f32.mrb[60].mxu1 }
 0xaa0   :  { %v8176_v28 = vpop.f32.mrb[61].mxu1  ;;  %v8343_v11 = vadd.f32 %v8168_v43, %v8147_v9 }
 0xaa1   :  { %v8178_v26 = vpop.f32.mrb[62].mxu1  ;;  %v8357_v3 = vadd.f32 %v8176_v28, %v8147_v9 }
 0xaa2   :  { %3811 = vperm.xlu0 %5071, %v8171_v49   ;;  %v8181_v58 = vpop.f32.mrb[63].mxu1  ;;  %9829 = vst [vmem:[#allocation75_spill] sm:$0xff] %v8343_v11  ;;  %v8353_v13 = vmul.f32 0.03125, %v8343_v11  ;;  %v8361_v43 = vmul.f32 %v8343_v11, %v8343_v11  ;;  %v8378_v28 = vadd.f32 %v8178_v26, %v8147_v9 }
 0xaa3   :  { %9830 = vst [vmem:[#allocation78_spill] sm:$0xff] %v8357_v3  ;;  %v8368_v49 = vmul.f32 0.03125, %v8357_v3 }
 0xaa4   :  { %9832 = vst [vmem:[#allocation83_spill] sm:$0xff] %v8378_v28  ;;  %v8394_v11 = vmul.f32 %v8378_v28, %v8378_v28 }
 0xaa5   :  { %9831 = vst [vmem:[#allocation89_spill] sm:$0xff] %v8368_v49 }
 0xaa6   :  { %3826 = vperm.xlu0 %5071, %v8184_v46  }
 0xaa7   :  { %v8187_v19 = vpop.f32.mrb[64].mxu1 }
 0xaa8   :  { %v8189_v38 = vpop.f32.mrb[65].mxu1 }
 0xaa9   :  { %v8191_v14 = vpop.f32.mrb[66].mxu1  ;;  %v8411_v5 = vadd.f32 %v8189_v38, %v8147_v9 }
 0xaaa   :  { %v8193_v8 = vpop.f32.mrb[67].mxu1  ;;  %v8430_v38 = vadd.f32 %v8191_v14, %v8147_v9 }
 0xaab   :  { %9836 = vst [vmem:[#allocation96_spill] sm:$0xff] %v8411_v5  ;;  %v8437_v41 = vadd.f32 %v8193_v8, %v8147_v9 }
 0xaac   :  { %9839 = vst [vmem:[#allocation80_spill] sm:$0xff] %v8430_v38  ;;  %v8446_v29 = vmul.f32 %v8430_v38, %v8430_v38 }
 0xaad   :  { %9840 = vst [vmem:[#allocation62_spill] sm:$0xff] %v8437_v41  ;;  %v8451_v14 = vmul.f32 %v8437_v41, %v8437_v41 }
 0xaaf   :  { %v8199_v39 = vpop.f32.mrb[68].mxu1 }
 0xab0   :  { %3585 = vadd.xlane.f32.xlu1 %v8197_v63  ;;  %v8202_v53 = vpop.f32.mrb[69].mxu1  ;;  %v8456_v8 = vadd.f32 %v8199_v39, %v8147_v9 }
 0xab1   :  { %v8204_v10 = vpop.f32.mrb[70].mxu1  ;;  %v8463_v31 = vadd.f32 %v8202_v53, %v8147_v9 }
 0xab2   :  { %v8206_v36 = vpop.f32.mrb[71].mxu1  ;;  %9841 = vst [vmem:[#allocation74_spill] sm:$0xff] %v8456_v8  ;;  %v8459_v16 = vmul.f32 0.03125, %v8456_v8  ;;  %v8482_v53 = vadd.f32 %v8204_v10, %v8147_v9 }
 0xab3   :  { %9843 = vst [vmem:[#allocation88_spill] sm:$0xff] %v8463_v31  ;;  %v8476_v39 = vmul.f32 %v8463_v31, %v8463_v31  ;;  %v8489_v20 = vadd.f32 %v8206_v36, %v8147_v9 }
 0xab4   :  { %3591 = vadd.xlane.f32.xlu1 %v8210_v18  ;;  %9842 = vst [vmem:[#allocation42_spill] sm:$0xff] %v8459_v16  ;;  %9847 = vst [vmem:[#allocation95_spill] sm:$0xff] %v8482_v53  ;;  %v8498_v57 = vmul.f32 %v8482_v53, %v8482_v53 }
 0xab5   :  { %9846 = vst [vmem:[#allocation43_spill] sm:$0xff] %v8476_v39  ;;  %9848 = vst [vmem:[#allocation45_spill] sm:$0xff] %v8489_v20  ;;  %v8503_v10 = vmul.f32 %v8489_v20, %v8489_v20 }
 0xab7   :  { %9850 = vst [vmem:[#allocation41_spill] sm:$0xff] %v8503_v10 }
 0xac5   :  { %3587 = vadd.xlane.f32.xlu0 %v8224_v51  ;;  %3816 = vperm.xlu1 %5070, %v8217_v50  }
 0xac9   :  { %3841 = vperm.xlu1 %5070, %v8229_v25   ;;  %3597 = vadd.xlane.f32.xlu0 %v8236_v21 }
 0xacd   :  { %3831 = vperm.xlu1 %5070, %v8241_v42   ;;  %3593 = vadd.xlane.f32.xlu0 %v8245_v52 }
 0xad5   :  { %v8249_v33 = vpop.f32.mrb[72].mxu1 }
 0xad6   :  { %v8251_v56 = vpop.f32.mrb[73].mxu1  ;;  %v8508_v36 = vadd.f32 %v8249_v33, %v8147_v9 }
 0xad7   :  { %v8253_v45 = vpop.f32.mrb[74].mxu1  ;;  %v8515_v24 = vadd.f32 %v8251_v56, %v8147_v9 }
 0xad8   :  { %v8255_v12 = vpop.f32.mrb[75].mxu1  ;;  %9851 = vst [vmem:[#allocation81_spill] sm:$0xff] %v8508_v36  ;;  %v8538_v27 = vadd.f32 %v8253_v45, %v8147_v9 }
 0xad9   :  { %9853 = vst [vmem:[#allocation86_spill] sm:$0xff] %v8515_v24  ;;  %v8528_v33 = vmul.f32 %v8515_v24, %v8515_v24 }
 0xada   :  { %9859 = vst [vmem:[#allocation71_spill] sm:$0xff] %v8538_v27 }
 0xadb   :  { %9856 = vst [vmem:[#allocation103_spill] sm:$0xff] %v8528_v33 }
 0xae3   :  { %3846 = vperm.xlu0 %5071, %v8261_v17  }
 0xae7   :  { %3836 = vperm.xlu0 %5071, %v8268_v22  }
 0xaf1   :  { %3599 = vadd.xlane.f32.xlu1 %v8273_v32 }
 0xaf5   :  { %3595 = vadd.xlane.f32.xlu1 %v8278_v44 }
 0xb06   :  { %3861 = vperm.xlu1 %5070, %v8285_v0   ;;  %3605 = vadd.xlane.f32.xlu0 %v8292_v60 }
 0xb0a   :  { %3851 = vperm.xlu1 %5070, %v8297_v6   ;;  %3601 = vadd.xlane.f32.xlu0 %v8301_v35 }
 0xb0b   :  { %v8339_v4 = vpop.permute.xlu1 %3821 }
 0xb0c   :  { %9828 = vst [vmem:[#allocation79_spill] sm:$0xff] %v8339_v4  ;;  %v8511_v4 = vmul.f32 0.03125, %v8508_v36 }
 0xb0e   :  { %9852 = vst [vmem:[#allocation46_spill] sm:$0xff] %v8511_v4 }
 0xb12   :  { %v8305_v59 = vpop.f32.mrb[76].mxu1 }
 0xb13   :  { %v8307_v61 = vpop.f32.mrb[77].mxu1 }
 0xb14   :  { %v8309_v62 = vpop.f32.mrb[78].mxu1 }
 0xb15   :  { %v8311_v7 = vpop.f32.mrb[79].mxu1 }
 0xb20   :  { %3866 = vperm.xlu0 %5071, %v8318_v47  }
 0xb24   :  { %3856 = vperm.xlu0 %5071, %v8326_v37  }
 0xb2e   :  { %3607 = vadd.xlane.f32.xlu1 %v8331_v54 }
 0xb32   :  { %3603 = vadd.xlane.f32.xlu1 %v8336_v40 }
 0xb3d   :  { %v3586_v34 = vpop.xlane.xlu1 %3585 }
 0xb3e   :  { %v3681_v48 = vsub.f32 %v3586_v34, %v8197_v63  ;;  %v8372_v34 = vmul.f32 %v8357_v3, %v8357_v3  ;;  %v8385_v63 = vadd.f32 %v8181_v58, %v8147_v9  ;;  %v8404_v58 = vadd.f32 %v8187_v19, %v8147_v9 }
 0xb3f   :  { %v8424_v19 = vmul.f32 %v8411_v5, %v8411_v5 }
 0xb40   :  { %v8350_v55 = vmul.f32 0.03125, %v3681_v48  ;;  %v8381_v48 = vmul.f32 0.03125, %v8378_v28  ;;  %9833 = vst [vmem:[#allocation91_spill] sm:$0xff] %v8385_v63  ;;  %v8389_v3 = vmul.f32 0.03125, %v8385_v63  ;;  %v8399_v26 = vmul.f32 %v8385_v63, %v8385_v63  ;;  %9834 = vst [vmem:[#allocation87_spill] sm:$0xff] %v8404_v58 }
 0xb41   :  { %v8407_v23 = vmul.f32 0.03125, %v8404_v58  ;;  %v8415_v28 = vmul.f32 %v8404_v58, %v8404_v58  ;;  %v8420_v63 = vmul.f32 0.03125, %v8411_v5  ;;  %9838 = vst [vmem:[#allocation99_spill] sm:$0xff] %v8424_v19  ;;  %v8433_v58 = vmul.f32 0.03125, %v8430_v38  ;;  %v3592_v30 = vpop.xlane.xlu1 %3591 }
 0xb42   :  { %v8441_v5 = vmul.f32 0.03125, %v8437_v41  ;;  %v8467_v38 = vmul.f32 %v8456_v8, %v8456_v8  ;;  %v8472_v41 = vmul.f32 0.03125, %v8463_v31  ;;  %v8485_v8 = vmul.f32 0.03125, %v8482_v53 }
 0xb43   :  { %3881 = vperm.xlu1 %5070, %v8353_v13   ;;  %3613 = vadd.xlane.f32.xlu0 %v8361_v43  ;;  %9835 = vst [vmem:[#allocation98_spill] sm:$0xff] %v8407_v23  ;;  %9837 = vst [vmem:[#allocation101_spill] sm:$0xff] %v8420_v63  ;;  %v8493_v31 = vmul.f32 0.03125, %v8489_v20  ;;  %v8519_v53 = vmul.f32 %v8508_v36, %v8508_v36  ;;  %v8524_v20 = vmul.f32 0.03125, %v8515_v24  ;;  %v8545_v24 = vmul.f32 0.03125, %v8538_v27 }
 0xb44   :  { %9844 = vst [vmem:[#allocation32_spill] sm:$0xff] %v8467_v38  ;;  %9845 = vst [vmem:[#allocation85_spill] sm:$0xff] %v8472_v41 }
 0xb45   :  { %9849 = vst [vmem:[#allocation93_spill] sm:$0xff] %v8493_v31  ;;  %9854 = vst [vmem:[#allocation56_spill] sm:$0xff] %v8519_v53  ;;  %v8532_v56 = vpop.permute.xlu1 %3816 }
 0xb46   :  { %9855 = vst [vmem:[#allocation48_spill] sm:$0xff] %v8524_v20  ;;  %9857 = vst [vmem:[#allocation25_spill] sm:$0xff] %v8532_v56 }
 0xb47   :  { %3871 = vperm.xlu1 %5070, %v8368_v49   ;;  %3609 = vadd.xlane.f32.xlu0 %v8372_v34  ;;  %9861 = vst [vmem:[#allocation49_spill] sm:$0xff] %v8545_v24 }
 0xb49   :  { %v8534_v36 = vpop.permute.xlu1 %3841 }
 0xb4a   :  { %9858 = vst [vmem:[#allocation90_spill] sm:$0xff] %v8534_v36 }
 0xb5d   :  { %3886 = vperm.xlu0 %5071, %v8381_v48  }
 0xb61   :  { %3876 = vperm.xlu0 %5071, %v8389_v3  }
 0xb6b   :  { %3615 = vadd.xlane.f32.xlu1 %v8394_v11 }
 0xb6f   :  { %3611 = vadd.xlane.f32.xlu1 %v8399_v26 }
 0xb80   :  { %3901 = vperm.xlu1 %5070, %v8407_v23   ;;  %3621 = vadd.xlane.f32.xlu0 %v8415_v28 }
 0xb84   :  { %3891 = vperm.xlu1 %5070, %v8420_v63   ;;  %3617 = vadd.xlane.f32.xlu0 %v8424_v19 }
 0xb9a   :  { %3906 = vperm.xlu0 %5071, %v8433_v58  }
 0xb9e   :  { %3896 = vperm.xlu0 %5071, %v8441_v5  }
 0xba8   :  { %3623 = vadd.xlane.f32.xlu1 %v8446_v29 }
 0xbac   :  { %3619 = vadd.xlane.f32.xlu1 %v8451_v14 }
 0xbbd   :  { %3921 = vperm.xlu1 %5070, %v8459_v16   ;;  %3629 = vadd.xlane.f32.xlu0 %v8467_v38 }
 0xbc1   :  { %3911 = vperm.xlu1 %5070, %v8472_v41   ;;  %3625 = vadd.xlane.f32.xlu0 %v8476_v39 }
 0xbd7   :  { %3926 = vperm.xlu0 %5071, %v8485_v8  }
 0xbdb   :  { %3916 = vperm.xlu0 %5071, %v8493_v31  }
 0xbe5   :  { %3631 = vadd.xlane.f32.xlu1 %v8498_v57 }
 0xbe9   :  { %3627 = vadd.xlane.f32.xlu1 %v8503_v10 }
 0xbfa   :  { %3941 = vperm.xlu1 %5070, %v8511_v4   ;;  %3637 = vadd.xlane.f32.xlu0 %v8519_v53  ;;  %v8540_v4 = vpop.xlane.xlu0 %3589  ;;  %v8542_v53 = vpop.permute.xlu1 %3831 }
 0xbfb   :  { %9860 = vst [vmem:[#allocation92_spill] sm:$0xff] %v8542_v53 }
 0xbfe   :  { %3931 = vperm.xlu1 %5070, %v8524_v20   ;;  %3633 = vadd.xlane.f32.xlu0 %v8528_v33  ;;  %v8549_v20 = vadd.f32 %v8255_v12, %v8147_v9  ;;  %v8551_v33 = vpop.permute.xlu0 %3811  ;;  %v3600_v56 = vpop.xlane.xlu1 %3599  ;;  %v8564_v12 = vmul.f32 %v8538_v27, %v8538_v27  ;;  %v8582_v27 = vadd.f32 %v8305_v59, %v8147_v9 }
 0xbff   :  { %9863 = vst [vmem:[#allocation57_spill] sm:$0xff] %v8551_v33  ;;  %v3684_v59 = vsub.f32 %v3592_v30, %v8210_v18  ;;  %v3688_v18 = vsub.f32 %v3600_v56, %v8273_v32 }
 0xc00   :  { %9862 = vst [vmem:[#allocation68_spill] sm:$0xff] %v8549_v20  ;;  %v8555_v36 = vmul.f32 0.03125, %v8549_v20  ;;  %9867 = vst [vmem:[#allocation44_spill] sm:$0xff] %v8564_v12  ;;  %v8597_v38 = vmul.f32 %v8582_v27, %v8582_v27 }
 0xc01   :  { %9871 = vst [vmem:[#allocation53_spill] sm:$0xff] %v8582_v27  ;;  %v3720_v10 = vmul.f32 0.03125, %v3688_v18  ;;  %v3683_v18 = vsub.f32 %v8540_v4, %v8157_v15  ;;  %v3747_v15 = vmul.f32 %v8153_v1, %v8153_v1  ;;  %v3758_v1 = vmul.f32 %v8389_v3, %v8389_v3 }
 0xc02   :  { %9864 = vst [vmem:[#allocation100_spill] sm:$0xff] %v8555_v36  ;;  %v8558_v45 = vpop.permute.xlu0 %3826  ;;  %v3596_v53 = vpop.xlane.xlu1 %3595  ;;  %9876 = vst [vmem:[#allocation76_spill] sm:$0xff] %v8597_v38 }
 0xc03   :  { %9865 = vst [vmem:[#allocation23_spill] sm:$0xff] %v8558_v45  ;;  %v3686_v49 = vsub.f32 %v3596_v53, %v8278_v44  ;;  %v3750_v44 = vmul.f32 %v8268_v22, %v8268_v22 }
 0xc06   :  { %v3588_v41 = vpop.xlane.xlu0 %3587  ;;  %v8560_v16 = vpop.permute.xlu1 %3861 }
 0xc07   :  { %9866 = vst [vmem:[#allocation102_spill] sm:$0xff] %v8560_v16  ;;  %v3682_v27 = vsub.f32 %v3588_v41, %v8224_v51 }
 0xc09   :  { %v3714_v30 = vmul.f32 0.03125, %v3682_v27  ;;  %v3718_v27 = vmul.f32 0.03125, %v3686_v49 }
 0xc0a   :  { %v8567_v33 = vpop.xlane.xlu0 %3597  ;;  %v8573_v39 = vpop.permute.xlu1 %3851 }
 0xc0b   :  { %9869 = vst [vmem:[#allocation33_spill] sm:$0xff] %v8573_v39 }
 0xc0e   :  { %v8576_v45 = vpop.xlane.xlu0 %3593 }
 0xc12   :  { %v8578_v16 = vpop.permute.xlu0 %3846 }
 0xc13   :  { %9870 = vst [vmem:[#allocation51_spill] sm:$0xff] %v8578_v16 }
 0xc14   :  { %3946 = vperm.xlu0 %5071, %v8545_v24   ;;  %v8571_v24 = vmul.f32 %v8549_v20, %v8549_v20 }
 0xc16   :  { %9868 = vst [vmem:[#allocation24_spill] sm:$0xff] %v8571_v24  ;;  %v8588_v20 = vpop.permute.xlu0 %3836 }
 0xc17   :  { %9873 = vst [vmem:[#allocation10_spill] sm:$0xff] %v8588_v20 }
 0xc18   :  { %3936 = vperm.xlu0 %5071, %v8555_v36   ;;  %v3608_v36 = vpop.xlane.xlu1 %3607 }
 0xc19   :  { %v3692_v32 = vsub.f32 %v3608_v36, %v8331_v54 }
 0xc1a   :  { %v8599_v16 = vpop.xlane.xlu0 %3605 }
 0xc1c   :  { %v3604_v63 = vpop.xlane.xlu1 %3603 }
 0xc1d   :  { %v3690_v53 = vsub.f32 %v3604_v63, %v8336_v40 }
 0xc1e   :  { %v8611_v23 = vpop.xlane.xlu0 %3601 }
 0xc1f   :  { %v3722_v54 = vmul.f32 0.03125, %v3690_v53 }
 0xc22   :  { %3639 = vadd.xlane.f32.xlu1 %v8564_v12  ;;  %v8586_v12 = vadd.f32 %v8307_v61, %v8147_v9  ;;  %v8616_v31 = vpop.permute.xlu0 %3866 }
 0xc24   :  { %9872 = vst [vmem:[#allocation65_spill] sm:$0xff] %v8586_v12  ;;  %v8591_v39 = vmul.f32 0.03125, %v8586_v12  ;;  %v8606_v61 = vmul.f32 %v8586_v12, %v8586_v12  ;;  %v3746_v12 = vmul.f32 %v8217_v50, %v8217_v50  ;;  %v8629_v50 = vadd.f32 %v8311_v7, %v8147_v9 }
 0xc25   :  { %v3756_v7 = vmul.f32 %v8318_v47, %v8318_v47  ;;  %v8655_v47 = vadd.f32 %v8309_v62, %v8147_v9 }
 0xc26   :  { %3635 = vadd.xlane.f32.xlu1 %v8571_v24  ;;  %9874 = vst [vmem:[#allocation26_spill] sm:$0xff] %v8591_v39  ;;  %v8593_v24 = vpop.permute.xlu1 %3881  ;;  %9877 = vst [vmem:[#allocation73_spill] sm:$0xff] %v8606_v61  ;;  %v8622_v41 = vpop.permute.xlu0 %3856  ;;  %v8639_v49 = vmul.f32 0.03125, %v8629_v50 }
 0xc27   :  { %9875 = vst [vmem:[#allocation20_spill] sm:$0xff] %v8593_v24  ;;  %v3716_v24 = vmul.f32 0.03125, %v3684_v59  ;;  %v3778_v59 = vsub.f32 %v3714_v30, %v3746_v12  ;;  %v3754_v30 = vmul.f32 %v8326_v37, %v8326_v37  ;;  %v3760_v37 = vmul.f32 %v8381_v48, %v8381_v48 }
 0xc28   :  { %v8666_v62 = vmul.f32 %v8655_v47, %v8655_v47 }
 0xc2a   :  { %v8608_v20 = vpop.permute.xlu1 %3871 }
 0xc2b   :  { %9878 = vst [vmem:[#allocation82_spill] sm:$0xff] %v8608_v20 }
 0xc2e   :  { %v3616_v19 = vpop.xlane.xlu1 %3615 }
 0xc2f   :  { %v3696_v63 = vsub.f32 %v3616_v19, %v8394_v11 }
 0xc37   :  { %3645 = vadd.xlane.f32.xlu0 %v8597_v38  ;;  %3951 = vperm.xlu1 %5070, %v8591_v39   ;;  %v3748_v38 = vmul.f32 %v8184_v46, %v8184_v46  ;;  %v3752_v46 = vmul.f32 %v8261_v17, %v8261_v17  ;;  %v3782_v17 = vsub.f32 %v3718_v27, %v3750_v44  ;;  %v3728_v27 = vmul.f32 0.03125, %v3696_v63 }
 0xc39   :  { %v3780_v39 = vsub.f32 %v3716_v24, %v3748_v38  ;;  %v4002_v24 = vadd.f32 1e-05, %v3778_v59  ;;  %v3784_v51 = vsub.f32 %v3720_v10, %v3752_v46  ;;  %v8631_v38 = vpop.xlane.xlu0 %3613  ;;  %v3724_v10 = vmul.f32 0.03125, %v3692_v32 }
 0xc3a   :  { %v4006_v22 = vadd.f32 1e-05, %v3782_v17  ;;  %v3786_v59 = vsub.f32 %v3722_v54, %v3754_v30  ;;  %v3715_v32 = vmul.f32 0.03125, %v3683_v18  ;;  %v3792_v4 = vsub.f32 %v3728_v27, %v3760_v37 }
 0xc3b   :  { %3641 = vadd.xlane.f32.xlu0 %v8606_v61  ;;  %v4004_v20 = vadd.f32 1e-05, %v3780_v39  ;;  %v3612_v61 = vpop.xlane.xlu1 %3611  ;;  %v3788_v40 = vsub.f32 %v3724_v10, %v3756_v7  ;;  %v3687_v17 = vsub.f32 %v8567_v33, %v8236_v21  ;;  %v8678_v10 = vmul.f32 %v8629_v50, %v8629_v50 }
 0xc3c   :  { %v3694_v11 = vsub.f32 %v3612_v61, %v8399_v26  ;;  %v4010_v9 = vadd.f32 1e-05, %v3786_v59  ;;  %v3764_v21 = vmul.f32 %v8433_v58, %v8433_v58  ;;  %v3762_v27 = vmul.f32 %v8441_v5, %v8441_v5 }
 0xc3d   :  { %5360 = vrsqrt.f32 %v4004_v20  ;;  %v4008_v20 = vadd.f32 1e-05, %v3784_v51  ;;  %v8643_v36 = vpop.xlane.xlu0 %3609  ;;  %v4012_v51 = vadd.f32 1e-05, %v3788_v40  ;;  %v3719_v33 = vmul.f32 0.03125, %v3687_v17 }
 0xc3e   :  { %5362 = vrsqrt.f32 %v4002_v24  ;;  %v3726_v44 = vmul.f32 0.03125, %v3694_v11  ;;  %v9879_v58 = vsub.f32 %v8350_v55, %v8348_v2  ;;  %v3749_v5 = vmul.f32 %v8241_v42, %v8241_v42 }
 0xc3f   :  { %v8633_v39 = vpop.permute.xlu1 %3901  ;;  %5364 = vrsqrt.f32 %v4008_v20  ;;  %v3779_v20 = vsub.f32 %v3715_v32, %v3747_v15  ;;  %v3689_v2 = vsub.f32 %v8611_v23, %v8301_v35  ;;  %v3755_v42 = vmul.f32 %v8285_v0, %v8285_v0 }
 0xc40   :  { %5366 = vrsqrt.f32 %v4006_v22  ;;  %v3790_v7 = vsub.f32 %v3726_v44, %v3758_v1  ;;  %v4001_v11 = vadd.f32 1e-05, %v9879_v58  ;;  %v3695_v23 = vsub.f32 %v8631_v38, %v8361_v43 }
 0xc41   :  { %v8657_v46 = vpop.permute.xlu0 %3886  ;;  %5368 = vrsqrt.f32 %v4012_v51  ;;  %v4003_v3 = vadd.f32 1e-05, %v3779_v20  ;;  %v3721_v20 = vmul.f32 0.03125, %v3689_v2  ;;  %v3693_v43 = vsub.f32 %v8643_v36, %v8372_v34 }
 0xc42   :  { %5370 = vrsqrt.f32 %v4010_v9  ;;  %v4014_v30 = vadd.f32 1e-05, %v3790_v7  ;;  %v5097_v9 = vld [vmem:[#allocation2 + $0x108] sm:$0xff]   ;;  %v3768_v36 = vmul.f32 %v8485_v8, %v8485_v8 }
 0xc43   :  { %v8645_v56 = vpop.permute.xlu1 %3891 }
 0xc45   :  { %v8669_v26 = vpop.permute.xlu0 %3876 }
 0xc47   :  { %v5361_v12 = vpop.eup %5360  ;;  %v3624_v24 = vpop.xlane.xlu1 %3623 }
 0xc48   :  { %v5363_v19 = vpop.eup %5362  ;;  %v3700_v53 = vsub.f32 %v3624_v24, %v8446_v29  ;;  %v4016_v29 = vadd.f32 1e-05, %v3792_v4  ;;  %v5096_v24 = vld [vmem:[#allocation2 + $0x100] sm:$0xff]  }
 0xc49   :  { %v5365_v48 = vpop.eup %5364  ;;  %v8681_v40 = vpop.xlane.xlu0 %3621  ;;  %5014 = vmatprep.subr.bf16.mxu0 %v5096_v24 }
 0xc4a   :  { %v3732_v54 = vmul.f32 0.03125, %v3700_v53  ;;  %v5367_v63 = vpop.eup %5366  ;;  %5372 = vrsqrt.f32 %v4016_v29  ;;  %5015 = vmatpush3.bf16.msra.mxu0 %v5096_v24  ;;  %v3753_v29 = vmul.f32 %v8297_v6, %v8297_v6  ;;  %v3759_v6 = vmul.f32 %v8353_v13, %v8353_v13 }
 0xc4b   :  { %v3620_v61 = vpop.xlane.xlu1 %3619  ;;  %v5369_v51 = vpop.eup %5368  ;;  %5374 = vrsqrt.f32 %v4003_v3  ;;  %5016 = vmatprep.subr.bf16.mxu0 %v5097_v9  ;;  %v3727_v3 = vmul.f32 0.03125, %v3695_v23  ;;  %v3699_v34 = vsub.f32 %v8681_v40, %v8415_v28  ;;  %v9882_v40 = vld [vmem:[#allocation93_spill] sm:$0xff] }
 0xc4c   :  { %v3698_v22 = vsub.f32 %v3620_v61, %v8451_v14  ;;  %v3796_v18 = vsub.f32 %v3732_v54, %v3764_v21  ;;  %v3751_v14 = vmul.f32 %v8229_v25, %v8229_v25  ;;  %5376 = vrsqrt.f32 %v4014_v30  ;;  %v5371_v15 = vpop.eup %5370  ;;  %v5098_v61 = vld [vmem:[#allocation2 + $0x110] sm:$0xff]   ;;  %v5099_v54 = vld [vmem:[#allocation2 + $0x118] sm:$0xff]  }
 0xc4d   :  { %v8697_v32 = vpop.xlane.xlu0 %3617  ;;  %5378 = vrsqrt.f32 %v4001_v11  ;;  %v3791_v24 = vsub.f32 %v3727_v3, %v3759_v6  ;;  %v3766_v8 = vmul.f32 %v9882_v40, %v9882_v40 }
 0xc4e   :  { %v3730_v59 = vmul.f32 0.03125, %v3698_v22  ;;  %v4020_v25 = vadd.f32 1e-05, %v3796_v18  ;;  %5017 = vmatpush3.bf16.msra.mxu0 %v5097_v9  ;;  %v5100_v18 = vld [vmem:[#allocation2 + $0x120] sm:$0xff]   ;;  %v9883_v9 = vld [vmem:[#allocation99_spill] sm:$0xff] }
 0xc4f   :  { %v8703_v55 = vpop.permute.xlu1 %3921  ;;  %5018 = vmatprep.subr.bf16.mxu0 %v5098_v61  ;;  %v3697_v2 = vsub.f32 %v8697_v32, %v9883_v9 }
 0xc50   :  { %v3794_v37 = vsub.f32 %v3730_v59, %v3762_v27  ;;  %5380 = vrsqrt.f32 %v4020_v25  ;;  %v9880_v27 = vld [vmem:[#allocation89_spill] sm:$0xff]  ;;  %v5101_v25 = vld [vmem:[#allocation2 + $0x128] sm:$0xff]  }
 0xc51   :  { %3956 = vperm.xlu0 %5071, %v8639_v49   ;;  %v8705_v44 = vpop.permute.xlu0 %3906  ;;  %v3757_v58 = vmul.f32 %v9880_v27, %v9880_v27  ;;  %v9889_v27 = vld [vmem:[#allocation85_spill] sm:$0xff] }
 0xc52   :  { %v4018_v53 = vadd.f32 1e-05, %v3794_v37  ;;  %5019 = vmatpush3.bf16.msra.mxu0 %v5098_v61 }
 0xc53   :  { %v8713_v7 = vpop.permute.xlu1 %3911  ;;  %5020 = vmatprep.subr.bf16.mxu0 %v5099_v54 }
 0xc55   :  { %4082 = vperm.xlu0 %5071, %v5361_v12   ;;  %v3685_v12 = vsub.f32 %v8576_v45, %v8245_v52  ;;  %v3691_v45 = vsub.f32 %v8599_v16, %v8292_v60  ;;  %v8715_v0 = vpop.permute.xlu0 %3896 }
 0xc56   :  { %5021 = vmatpush3.bf16.msra.mxu0 %v5099_v54 }
 0xc57   :  { %v3717_v52 = vmul.f32 0.03125, %v3685_v12  ;;  %v3723_v4 = vmul.f32 0.03125, %v3691_v45  ;;  %5022 = vmatprep.subr.bf16.mxu0 %v5100_v18 }
 0xc59   :  { %4072 = vperm.xlu0 %5071, %v5363_v19   ;;  %v3783_v19 = vsub.f32 %v3719_v33, %v3751_v14  ;;  %v3781_v60 = vsub.f32 %v3717_v52, %v3749_v5  ;;  %v3787_v1 = vsub.f32 %v3723_v4, %v3755_v42  ;;  %v3630_v12 = vpop.xlane.xlu0 %3629  ;;  %v9881_v52 = vld [vmem:[#allocation41_spill] sm:$0xff]  ;;  %v3731_v5 = vmul.f32 0.03125, %v3699_v34  ;;  %v9884_v42 = vld [vmem:[#allocation98_spill] sm:$0xff] }
 0xc5a   :  { %5023 = vmatpush3.bf16.msra.mxu0 %v5100_v18  ;;  %v3763_v61 = vmul.f32 %v9884_v42, %v9884_v42  ;;  %v9888_v18 = vld [vmem:[#allocation42_spill] sm:$0xff] }
 0xc5b   :  { %3647 = vadd.xlane.f32.xlu1 %v8666_v62  ;;  %v4007_v16 = vadd.f32 1e-05, %v3783_v19  ;;  %v4005_v35 = vadd.f32 1e-05, %v3781_v60  ;;  %v4011_v38 = vadd.f32 1e-05, %v3787_v1  ;;  %5024 = vmatprep.subr.bf16.mxu0 %v5101_v25 }
 0xc5c   :  { %v3729_v1 = vmul.f32 0.03125, %v3697_v2 }
 0xc5d   :  { %4102 = vperm.xlu0 %5071, %v5365_v48   ;;  %v5373_v48 = vpop.eup %5372  ;;  %5382 = vrsqrt.f32 %v4007_v16  ;;  %v3626_v16 = vpop.xlane.xlu0 %3625 }
 0xc5e   :  { %v5375_v17 = vpop.eup %5374  ;;  %5384 = vrsqrt.f32 %v4018_v53  ;;  %5025 = vmatpush3.bf16.msra.mxu0 %v5101_v25 }
 0xc5f   :  { %3643 = vadd.xlane.f32.xlu1 %v8678_v10  ;;  %v5377_v22 = vpop.eup %5376  ;;  %5386 = vrsqrt.f32 %v4005_v35  ;;  %v3795_v35 = vsub.f32 %v3731_v5, %v3763_v61  ;;  %v9892_v5 = vld [vmem:[#allocation103_spill] sm:$0xff] }
 0xc60   :  { %v5379_v33 = vpop.eup %5378  ;;  %5388 = vrsqrt.f32 %v4011_v38 }
 0xc61   :  { %4092 = vperm.xlu0 %5071, %v5367_v63   ;;  %v3785_v63 = vsub.f32 %v3721_v20, %v3753_v29  ;;  %v5381_v59 = vpop.eup %5380  ;;  %v5102_v20 = vld [vmem:[#allocation2 + $0x130] sm:$0xff]   ;;  %v8736_v29 = vpop.permute.xlu0 %3926  ;;  %v4019_v38 = vadd.f32 1e-05, %v3795_v35 }
 0xc62   :  { %5026 = vmatprep.subr.bf16.mxu0 %v5102_v20 }
 0xc63   :  { %v4009_v14 = vadd.f32 1e-05, %v3785_v63  ;;  %5027 = vmatpush3.bf16.msra.mxu0 %v5102_v20  ;;  %v9886_v63 = vld [vmem:[#allocation101_spill] sm:$0xff] }
 0xc64   :  { %v3761_v3 = vmul.f32 %v9886_v63, %v9886_v63 }
 0xc65   :  { %4122 = vperm.xlu0 %5071, %v5369_v51   ;;  %v3725_v51 = vmul.f32 0.03125, %v3693_v43  ;;  %5390 = vrsqrt.f32 %v4009_v14  ;;  %v5103_v43 = vld [vmem:[#allocation2 + $0x138] sm:$0xff]   ;;  %v8743_v14 = vpop.permute.xlu0 %3916 }
 0xc66   :  { %v3793_v6 = vsub.f32 %v3729_v1, %v3761_v3  ;;  %5028 = vmatprep.subr.bf16.mxu0 %v5103_v43 }
 0xc67   :  { %v5383_v11 = vpop.eup %5382  ;;  %v3789_v28 = vsub.f32 %v3725_v51, %v3757_v58  ;;  %5029 = vmatpush3.bf16.msra.mxu0 %v5103_v43  ;;  %v3765_v58 = vmul.f32 %v9889_v27, %v9889_v27 }
 0xc68   :  { %v5385_v37 = vpop.eup %5384  ;;  %v4017_v51 = vadd.f32 1e-05, %v3793_v6 }
 0xc69   :  { %4112 = vperm.xlu0 %5071, %v5371_v15   ;;  %v4015_v15 = vadd.f32 1e-05, %v3791_v24  ;;  %v5387_v53 = vpop.eup %5386  ;;  %v4013_v23 = vadd.f32 1e-05, %v3789_v28  ;;  %v9891_v28 = vld [vmem:[#allocation46_spill] sm:$0xff] }
 0xc6a   :  { %v3771_v40 = vmul.f32 %v9891_v28, %v9891_v28  ;;  %v3680_v28 = vmul.f32 0.03125, %v8655_v47 }
 0xc6d   :  { %4142 = vperm.xlu0 %5071, %v5373_v48  }
 0xc70   :  { %4077 = vperm.xlu1 %5070, %v5375_v17   ;;  %v9885_v17 = vld [vmem:[#allocation32_spill] sm:$0xff] }
 0xc71   :  { %4132 = vperm.xlu0 %5071, %v5377_v22   ;;  %v3703_v32 = vsub.f32 %v3630_v12, %v9885_v17  ;;  %v5389_v22 = vpop.eup %5388 }
 0xc72   :  { %v3632_v21 = vpop.xlane.xlu1 %3631  ;;  %v5391_v12 = vpop.eup %5390 }
 0xc73   :  { %v3704_v30 = vsub.f32 %v3632_v21, %v8498_v57  ;;  %v3735_v21 = vmul.f32 0.03125, %v3703_v32 }
 0xc74   :  { %4067 = vperm.xlu1 %5070, %v5379_v33   ;;  %v9887_v33 = vld [vmem:[#allocation43_spill] sm:$0xff] }
 0xc75   :  { %v3736_v13 = vmul.f32 0.03125, %v3704_v30  ;;  %4162 = vperm.xlu0 %5071, %v5381_v59   ;;  %v3701_v30 = vsub.f32 %v3626_v16, %v9887_v33  ;;  %v3767_v59 = vmul.f32 %v9888_v18, %v9888_v18 }
 0xc76   :  { %v3628_v57 = vpop.xlane.xlu1 %3627 }
 0xc77   :  { %v3800_v19 = vsub.f32 %v3736_v13, %v3768_v36  ;;  %v3702_v45 = vsub.f32 %v3628_v57, %v9881_v52  ;;  %v3799_v34 = vsub.f32 %v3735_v21, %v3767_v59  ;;  %v3733_v36 = vmul.f32 0.03125, %v3701_v30  ;;  %v9896_v21 = vld [vmem:[#allocation49_spill] sm:$0xff]  ;;  %v9897_v59 = vld [vmem:[#allocation24_spill] sm:$0xff] }
 0xc78   :  { %4097 = vperm.xlu1 %5070, %v5383_v11   ;;  %v9890_v11 = vld [vmem:[#allocation56_spill] sm:$0xff]  ;;  %v3772_v33 = vmul.f32 %v9896_v21, %v9896_v21  ;;  %v8782_v21 = vld [vmem:[%s9121_s2 + $0x8] sm:$0xff] }
 0xc79   :  { %v4024_v60 = vadd.f32 1e-05, %v3800_v19  ;;  %v3734_v4 = vmul.f32 0.03125, %v3702_v45  ;;  %4152 = vperm.xlu0 %5071, %v5385_v37   ;;  %v4023_v45 = vadd.f32 1e-05, %v3799_v34  ;;  %v3797_v25 = vsub.f32 %v3733_v36, %v3765_v58  ;;  %v9898_v34 = vld [vmem:[#allocation100_spill] sm:$0xff] }
 0xc7a   :  { %v3770_v36 = vmul.f32 %v9898_v34, %v9898_v34  ;;  %v9907_v34 = vld [vmem:[#allocation60_spill] sm:$0xff] }
 0xc7b   :  { %5392 = vrsqrt.f32 %v4024_v60  ;;  %v3798_v48 = vsub.f32 %v3734_v4, %v3766_v8  ;;  %v4021_v2 = vadd.f32 1e-05, %v3797_v25 }
 0xc7c   :  { %5394 = vrsqrt.f32 %v4015_v15  ;;  %4087 = vperm.xlu1 %5070, %v5387_v53   ;;  %v9893_v53 = vld [vmem:[#allocation48_spill] sm:$0xff] }
 0xc7d   :  { %v4022_v54 = vadd.f32 1e-05, %v3798_v48  ;;  %v3769_v42 = vmul.f32 %v9893_v53, %v9893_v53 }
 0xc7f   :  { %5396 = vrsqrt.f32 %v4022_v54  ;;  %v8753_v54 = vpop.permute.xlu1 %3941 }
 0xc80   :  { %5398 = vrsqrt.f32 %v4013_v23  ;;  %4117 = vperm.xlu1 %5070, %v5389_v22   ;;  %v9894_v22 = vld [vmem:[#allocation53_spill] sm:$0xff] }
 0xc81   :  { %5400 = vrsqrt.f32 %v4019_v38  ;;  %v3679_v63 = vmul.f32 0.03125, %v9894_v22  ;;  %v9895_v38 = vld [vmem:[#allocation44_spill] sm:$0xff] }
 0xc82   :  { %5402 = vrsqrt.f32 %v4017_v51 }
 0xc83   :  { %5404 = vrsqrt.f32 %v4023_v45  ;;  %v8756_v3 = vpop.permute.xlu1 %3931  ;;  %v9899_v45 = vld [vmem:[#allocation76_spill] sm:$0xff] }
 0xc84   :  { %4107 = vperm.xlu1 %5070, %v5391_v12   ;;  %5406 = vrsqrt.f32 %v4021_v2  ;;  %v9901_v2 = vld [vmem:[#allocation26_spill] sm:$0xff] }
 0xc85   :  { %v5393_v24 = vpop.eup %5392 }
 0xc86   :  { %v5395_v13 = vpop.eup %5394  ;;  %4182 = vperm.xlu0 %5071, %v5393_v24  }
 0xc87   :  { %v3638_v57 = vpop.xlane.xlu0 %3637 }
 0xc88   :  { %v3707_v19 = vsub.f32 %v3638_v57, %v9890_v11  ;;  %4137 = vperm.xlu1 %5070, %v5395_v13  }
 0xc89   :  { %v5397_v52 = vpop.eup %5396 }
 0xc8a   :  { %v5399_v37 = vpop.eup %5398  ;;  %v3739_v15 = vmul.f32 0.03125, %v3707_v19  ;;  %4172 = vperm.xlu0 %5071, %v5397_v52  }
 0xc8b   :  { %v3634_v8 = vpop.xlane.xlu0 %3633  ;;  %v5401_v4 = vpop.eup %5400 }
 0xc8c   :  { %v3705_v9 = vsub.f32 %v3634_v8, %v9892_v5  ;;  %4127 = vperm.xlu1 %5070, %v5399_v37   ;;  %v3803_v16 = vsub.f32 %v3739_v15, %v3771_v40  ;;  %v5403_v20 = vpop.eup %5402  ;;  %v9900_v8 = vld [vmem:[#allocation73_spill] sm:$0xff] }
 0xc8d   :  { %v5405_v35 = vpop.eup %5404 }
 0xc8e   :  { %v3737_v60 = vmul.f32 0.03125, %v3705_v9  ;;  %v4027_v61 = vadd.f32 1e-05, %v3803_v16  ;;  %v5407_v1 = vpop.eup %5406  ;;  %v3775_v9 = vmul.f32 %v3679_v63, %v3679_v63  ;;  %v3773_v16 = vmul.f32 %v9901_v2, %v9901_v2 }
 0xc90   :  { %4157 = vperm.xlu1 %5070, %v5401_v4   ;;  %v3801_v48 = vsub.f32 %v3737_v60, %v3769_v42  ;;  %5408 = vrsqrt.f32 %v4027_v61 }
 0xc92   :  { %v4025_v23 = vadd.f32 1e-05, %v3801_v48 }
 0xc93   :  { %v8764_v58 = vpop.permute.xlu0 %3946 }
 0xc94   :  { %4147 = vperm.xlu1 %5070, %v5403_v20   ;;  %5410 = vrsqrt.f32 %v4025_v23 }
 0xc97   :  { %v8766_v11 = vpop.permute.xlu0 %3936 }
 0xc98   :  { %4177 = vperm.xlu1 %5070, %v5405_v35  }
 0xc9a   :  { %v5409_v17 = vpop.eup %5408 }
 0xc9c   :  { %4167 = vperm.xlu1 %5070, %v5407_v1  }
 0xc9e   :  { %v5411_v32 = vpop.eup %5410 }
 0xca0   :  { %4197 = vperm.xlu1 %5070, %v5409_v17  }
 0xca4   :  { %4187 = vperm.xlu1 %5070, %v5411_v32  }
 0xca8   :  { %3961 = vperm.xlu1 %5070, %v3679_v63  }
 0xcaf   :  { %v3640_v43 = vpop.xlane.xlu1 %3639 }
 0xcb0   :  { %v3708_v6 = vsub.f32 %v3640_v43, %v9895_v38  ;;  %v9902_v43 = vld [vmem:[#allocation23_spill] sm:$0xff]  ;;  %v9903_v38 = vld [vmem:[#allocation12_spill] sm:$0xff] }
 0xcb2   :  { %v3740_v30 = vmul.f32 0.03125, %v3708_v6  ;;  %v3972_v6 = vsub.f32 %v9903_v38, %v9902_v43  ;;  %v9914_v43 = vld [vmem:[#allocation50_spill] sm:$0xff] }
 0xcb3   :  { %v3636_v12 = vpop.xlane.xlu1 %3635 }
 0xcb4   :  { %v3804_v18 = vsub.f32 %v3740_v30, %v3772_v33  ;;  %v3706_v24 = vsub.f32 %v3636_v12, %v9897_v59  ;;  %v9904_v33 = vld [vmem:[#allocation5_spill] sm:$0xff] }
 0xcb5   :  { %v9905_v30 = vsub.s32 2, %v9904_v33 }
 0xcb6   :  { %v4028_v51 = vadd.f32 1e-05, %v3804_v18  ;;  %v3738_v13 = vmul.f32 0.03125, %v3706_v24 }
 0xcb7   :  { %v8775_v32 = vpop.permute.xlu1 %3951  ;;  %v8787_v12 = vrot.slane %v8782_v21, %v9905_v30  ;;  %v9916_v30 = vld [vmem:[#allocation36_spill] sm:$0xff] }
 0xcb8   :  { %5412 = vrsqrt.f32 %v4028_v51  ;;  %v3802_v27 = vsub.f32 %v3738_v13, %v3770_v36  ;;  %v9906_v51 = vld [vmem:[#allocation25_spill] sm:$0xff] }
 0xcb9   :  { %v3970_v36 = vsub.f32 %v9907_v34, %v9906_v51 }
 0xcba   :  { %v4026_v57 = vadd.f32 1e-05, %v3802_v27  ;;  %v9908_v27 = vsub.s32 3, %v9904_v33 }
 0xcbc   :  { %5414 = vrsqrt.f32 %v4026_v57  ;;  %v8795_v57 = vrot.slane %v8782_v21, %v9908_v27 }
 0xcc2   :  { %v5413_v19 = vpop.eup %5412 }
 0xcc3   :  { %4202 = vperm.xlu0 %5071, %v5413_v19  }
 0xcc4   :  { %v3646_v52 = vpop.xlane.xlu0 %3645 }
 0xcc5   :  { %v3711_v25 = vsub.f32 %v3646_v52, %v9899_v45 }
 0xcc6   :  { %v5415_v37 = vpop.eup %5414 }
 0xcc7   :  { %4192 = vperm.xlu0 %5071, %v5415_v37   ;;  %v3743_v40 = vmul.f32 0.03125, %v3711_v25 }
 0xcc8   :  { %v3642_v15 = vpop.xlane.xlu0 %3641 }
 0xcc9   :  { %v3709_v5 = vsub.f32 %v3642_v15, %v9900_v8  ;;  %v3807_v4 = vsub.f32 %v3743_v40, %v3775_v9  ;;  %v9909_v15 = vld [vmem:[#allocation79_spill] sm:$0xff]  ;;  %v9910_v40 = vld [vmem:[#allocation72_spill] sm:$0xff] }
 0xcca   :  { %v3971_v8 = vsub.f32 %v9910_v40, %v9909_v15  ;;  %v9919_v15 = vld [vmem:[#allocation54_spill] sm:$0xff] }
 0xccb   :  { %v3741_v60 = vmul.f32 0.03125, %v3709_v5  ;;  %3966 = vperm.xlu0 %5071, %v3680_v28   ;;  %v4031_v48 = vadd.f32 1e-05, %v3807_v4  ;;  %v9912_v5 = vld [vmem:[#allocation34_spill] sm:$0xff] }
 0xccd   :  { %v3805_v53 = vsub.f32 %v3741_v60, %v3773_v16  ;;  %v3776_v16 = vmul.f32 %v3680_v28, %v3680_v28  ;;  %v3774_v60 = vmul.f32 %v8639_v49, %v8639_v49 }
 0xccf   :  { %v4029_v42 = vadd.f32 1e-05, %v3805_v53 }
 0xcd0   :  { %v8773_v61 = vpop.permute.xlu0 %3956 }
 0xcd1   :  { %5416 = vrsqrt.f32 %v4029_v42 }
 0xcd2   :  { %5418 = vrsqrt.f32 %v4031_v48 }
 0xcd4   :  { %v4083_v20 = vpop.permute.xlu0 %4082 }
 0xcd5   :  { %v4228_v18 = vmul.f32 %v4083_v20, %v3972_v6  ;;  %v9915_v6 = vld [vmem:[#allocation57_spill] sm:$0xff] }
 0xcd7   :  { %v4264_v19 = vmul.f32 %v8787_v12, %v4228_v18  ;;  %v3969_v18 = vsub.f32 %v9916_v30, %v9915_v6 }
 0xcd8   :  { %v4073_v23 = vpop.permute.xlu0 %4072 }
 0xcd9   :  { %v4226_v52 = vmul.f32 %v4073_v23, %v3970_v36  ;;  %v4300_v2 = vadd.f32 %v8795_v57, %v4264_v19 }
 0xcdb   :  { %v5417_v35 = vpop.eup %5416  ;;  %v4262_v53 = vmul.f32 %v8787_v12, %v4226_v52  ;;  %v9917_v52 = vld [vmem:[#allocation77_spill] sm:$0xff] }
 0xcdc   :  { %4207 = vperm.xlu1 %5070, %v5417_v35   ;;  %v4103_v1 = vpop.permute.xlu0 %4102  ;;  %v5419_v17 = vpop.eup %5418 }
 0xcdd   :  { %v4298_v49 = vadd.f32 %v8795_v57, %v4262_v53 }
 0xce0   :  { %4217 = vperm.xlu1 %5070, %v5419_v17   ;;  %v4093_v63 = vpop.permute.xlu0 %4092  ;;  %v9913_v17 = vld [vmem:[#allocation10_spill] sm:$0xff] }
 0xce1   :  { %v3974_v38 = vsub.f32 %v9914_v43, %v9913_v17  ;;  %v9925_v43 = vld [vmem:[#allocation92_spill] sm:$0xff] }
 0xce4   :  { %v4123_v13 = vpop.permute.xlu0 %4122 }
 0xce8   :  { %v3648_v59 = vpop.xlane.xlu1 %3647  ;;  %v4113_v48 = vpop.permute.xlu0 %4112 }
 0xce9   :  { %v3712_v24 = vsub.f32 %v3648_v59, %v8666_v62  ;;  %v9911_v62 = vld [vmem:[#allocation51_spill] sm:$0xff]  ;;  %v4332_v59 = vmax.f32 %v4300_v2, 0.0 }
 0xcea   :  { %v3976_v9 = vsub.f32 %v9912_v5, %v9911_v62 }
 0xceb   :  { %v3744_v25 = vmul.f32 0.03125, %v3712_v24 }
 0xcec   :  { %v3644_v45 = vpop.xlane.xlu1 %3643  ;;  %v4232_v42 = vmul.f32 %v4103_v1, %v3976_v9  ;;  %v4230_v1 = vmul.f32 %v4093_v63, %v3974_v38  ;;  %v4330_v63 = vmax.f32 %v4298_v49, 0.0  ;;  %v9926_v38 = vld [vmem:[#allocation70_spill] sm:$0xff] }
 0xced   :  { %v3710_v37 = vsub.f32 %v3644_v45, %v8678_v10  ;;  %v3808_v23 = vsub.f32 %v3744_v25, %v3776_v16  ;;  %v3980_v45 = vsub.f32 %v9917_v52, %v8616_v31  ;;  %v4143_v25 = vpop.permute.xlu0 %4142  ;;  %v3973_v6 = vsub.f32 %v9926_v38, %v9925_v43  ;;  %v9929_v52 = vld [vmem:[#allocation22_spill] sm:$0xff]  ;;  %v9938_v38 = vld [vmem:[#allocation91_spill] sm:$0xff] }
 0xcee   :  { %v4268_v51 = vmul.f32 %v8787_v12, %v4232_v42  ;;  %v9922_v42 = vld [vmem:[#allocation28_spill] sm:$0xff] }
 0xcef   :  { %v3742_v4 = vmul.f32 0.03125, %v3710_v37  ;;  %v4032_v36 = vadd.f32 1e-05, %v3808_v23  ;;  %v9918_v37 = vld [vmem:[#allocation90_spill] sm:$0xff]  ;;  %v9923_v31 = vmax.f32 %v9922_v42, 0.0 }
 0xcf0   :  { %v4078_v20 = vpop.permute.xlu1 %4077  ;;  %v3975_v40 = vsub.f32 %v9919_v15, %v9918_v37  ;;  %v4304_v16 = vadd.f32 %v8795_v57, %v4268_v51  ;;  %v9931_v15 = vld [vmem:[#allocation102_spill] sm:$0xff] }
 0xcf1   :  { %v3806_v10 = vsub.f32 %v3742_v4, %v3774_v60  ;;  %v4227_v35 = vmul.f32 %v4078_v20, %v3971_v8  ;;  %v9920_v8 = vld [vmem:[#allocation6_spill] sm:$0xff]  ;;  %v4266_v60 = vmul.f32 %v8787_v12, %v4230_v1  ;;  %v4236_v4 = vmul.f32 %v4123_v13, %v3980_v45  ;;  %v4133_v51 = vpop.permute.xlu0 %4132 }
 0xcf2   :  { %v9921_v62 = vmax.f32 %v9920_v8, 0.0  ;;  %v9930_v45 = vmax.f32 %v9929_v52, 0.0 }
 0xcf3   :  { %v4030_v28 = vadd.f32 1e-05, %v3806_v10  ;;  %v4263_v24 = vmul.f32 %v8787_v12, %v4227_v35  ;;  %v9924_v35 = vld [vmem:[#allocation39_spill] sm:$0xff]  ;;  %v4302_v13 = vadd.f32 %v8795_v57, %v4266_v60 }
 0xcf4   :  { %v4068_v34 = vpop.permute.xlu1 %4067  ;;  %v4364_v5 = vadd.f32 %v4332_v59, %v9921_v62  ;;  %v3978_v17 = vsub.f32 %v9924_v35, %v8622_v41  ;;  %v4362_v37 = vadd.f32 %v4330_v63, %v9930_v45 }
 0xcf5   :  { %5420 = vrsqrt.f32 %v4030_v28  ;;  %v4299_v27 = vadd.f32 %v8795_v57, %v4263_v24  ;;  %v4225_v19 = vmul.f32 %v4068_v34, %v3969_v18  ;;  %v4336_v28 = vmax.f32 %v4304_v16, 0.0 }
 0xcf6   :  { %5422 = vrsqrt.f32 %v4032_v36  ;;  %v4272_v24 = vmul.f32 %v8787_v12, %v4236_v4  ;;  %v4234_v49 = vmul.f32 %v4113_v48, %v3978_v17  ;;  %v4334_v60 = vmax.f32 %v4302_v13, 0.0  ;;  %v9939_v13 = vld [vmem:[#allocation33_spill] sm:$0xff] }
 0xcf7   :  { %v4331_v9 = vmax.f32 %v4299_v27, 0.0  ;;  %v4261_v2 = vmul.f32 %v8787_v12, %v4225_v19  ;;  %v9927_v27 = vld [vmem:[#allocation55_spill] sm:$0xff] }
 0xcf8   :  { %v4098_v53 = vpop.permute.xlu1 %4097  ;;  %v9928_v41 = vmax.f32 %v9927_v27, 0.0  ;;  %v4308_v4 = vadd.f32 %v8795_v57, %v4272_v24  ;;  %v9940_v24 = vld [vmem:[#allocation52_spill] sm:$0xff] }
 0xcf9   :  { %v4363_v20 = vadd.f32 %v4331_v9, %v9923_v31  ;;  %v4297_v23 = vadd.f32 %v8795_v57, %v4261_v2  ;;  %v4231_v10 = vmul.f32 %v4098_v53, %v3975_v40  ;;  %v9932_v40 = vld [vmem:[#allocation17_spill] sm:$0xff]  ;;  %v4270_v53 = vmul.f32 %v8787_v12, %v4234_v49  ;;  %v9934_v31 = vld [vmem:[#allocation18_spill] sm:$0xff] }
 0xcfa   :  { %v3979_v8 = vsub.f32 %v9932_v40, %v9931_v15  ;;  %v9935_v63 = vmax.f32 %v9934_v31, 0.0  ;;  %v3977_v49 = vsub.f32 %v9940_v24, %v9939_v13  ;;  %v9943_v15 = vld [vmem:[#allocation47_spill] sm:$0xff]  ;;  %v9953_v13 = vld [vmem:[#allocation82_spill] sm:$0xff] }
 0xcfb   :  { %v4410_v30 = vpack.c.bf16 %v4364_v5, %v4363_v20  ;;  %v4329_v18 = vmax.f32 %v4297_v23, 0.0  ;;  %v4267_v59 = vmul.f32 %v8787_v12, %v4231_v10  ;;  %v9933_v5 = vld [vmem:[#allocation83_spill] sm:$0xff]  ;;  %v9944_v40 = vmax.f32 %v9943_v15, 0.0 }
 0xcfc   :  { %v4088_v1 = vpop.permute.xlu1 %4087  ;;  %v3984_v9 = vsub.f32 %v9933_v5, %v8657_v46  ;;  %v4368_v20 = vadd.f32 %v4336_v28, %v9935_v63  ;;  %v9936_v46 = vld [vmem:[#allocation11_spill] sm:$0xff] }
 0xcfd   :  { %v4303_v34 = vadd.f32 %v8795_v57, %v4267_v59  ;;  %v4229_v36 = vmul.f32 %v4088_v1, %v3973_v6  ;;  %v4361_v19 = vadd.f32 %v4329_v18, %v9928_v41  ;;  %v9937_v17 = vmax.f32 %v9936_v46, 0.0  ;;  %v4163_v18 = vpop.permute.xlu0 %4162 }
 0xcfe   :  { %v4240_v23 = vmul.f32 %v4143_v25, %v3984_v9  ;;  %v3982_v6 = vsub.f32 %v9938_v38, %v8669_v26  ;;  %v9946_v9 = vld [vmem:[#allocation20_spill] sm:$0xff] }
 0xcff   :  { %v5421_v62 = vpop.eup %5420  ;;  %v4335_v2 = vmax.f32 %v4303_v34, 0.0  ;;  %v4265_v48 = vmul.f32 %v8787_v12, %v4229_v36  ;;  %v4409_v16 = vpack.c.bf16 %v4362_v37, %v4361_v19  ;;  %v4340_v34 = vmax.f32 %v4308_v4, 0.0  ;;  %v9941_v19 = vld [vmem:[#allocation8_spill] sm:$0xff] }
 0xd00   :  { %4212 = vperm.xlu0 %5071, %v5421_v62   ;;  %v4118_v42 = vpop.permute.xlu1 %4117  ;;  %v5423_v59 = vpop.eup %5422  ;;  %v4306_v36 = vadd.f32 %v8795_v57, %v4270_v53  ;;  %v4238_v27 = vmul.f32 %v4133_v51, %v3982_v6  ;;  %v9942_v52 = vmax.f32 %v9941_v19, 0.0  ;;  %v4276_v26 = vmul.f32 %v8787_v12, %v4240_v23  ;;  %v9945_v62 = vld [vmem:[#allocation80_spill] sm:$0xff]  ;;  %v9952_v6 = vld [vmem:[#allocation62_spill] sm:$0xff] }
 0xd01   :  { %v4301_v10 = vadd.f32 %v8795_v57, %v4265_v48  ;;  %v4235_v35 = vmul.f32 %v4118_v42, %v3979_v8  ;;  %5030 = vmatprep.mubr.bf16.mxu0 %v4409_v16  ;;  %v4367_v43 = vadd.f32 %v4335_v2, %v9937_v17  ;;  %v3988_v5 = vsub.f32 %v9945_v62, %v8705_v44  ;;  %v9947_v2 = vld [vmem:[#allocation75_spill] sm:$0xff]  ;;  %v4153_v31 = vpop.permute.xlu0 %4152  ;;  %v9950_v17 = vld [vmem:[#allocation16_spill] sm:$0xff] }
 0xd02   :  { %5031 = vmatmul.mubr.bf16.vlgmr.msra.gmra.mrb[48].mxu0 %v4410_v30  ;;  %v4366_v45 = vadd.f32 %v4334_v60, %v9942_v52  ;;  %v3983_v48 = vsub.f32 %v9947_v2, %v9946_v9  ;;  %v4338_v53 = vmax.f32 %v4306_v36, 0.0  ;;  %v4274_v60 = vmul.f32 %v8787_v12, %v4238_v27  ;;  %v9955_v52 = vld [vmem:[#allocation14_spill] sm:$0xff] }
 0xd03   :  { %v4333_v1 = vmax.f32 %v4301_v10, 0.0  ;;  %v4271_v28 = vmul.f32 %v8787_v12, %v4235_v35  ;;  %v4412_v25 = vpack.c.bf16 %v4368_v20, %v4367_v43  ;;  %v4244_v42 = vmul.f32 %v4163_v18, %v3988_v5  ;;  %v9948_v20 = vld [vmem:[#allocation61_spill] sm:$0xff]  ;;  %v9954_v18 = vld [vmem:[#allocation78_spill] sm:$0xff]  ;;  %v9960_v5 = vld [vmem:[#allocation87_spill] sm:$0xff] }
 0xd04   :  { %4222 = vperm.xlu0 %5071, %v5423_v59   ;;  %v4108_v41 = vpop.permute.xlu1 %4107  ;;  %v9949_v23 = vmax.f32 %v9948_v20, 0.0  ;;  %v4312_v35 = vadd.f32 %v8795_v57, %v4276_v26  ;;  %v9951_v43 = vmax.f32 %v9950_v17, 0.0  ;;  %v3986_v59 = vsub.f32 %v9952_v6, %v8715_v0  ;;  %v9961_v20 = vld [vmem:[#allocation35_spill] sm:$0xff] }
 0xd05   :  { %v4307_v30 = vadd.f32 %v8795_v57, %v4271_v28  ;;  %v4233_v37 = vmul.f32 %v4108_v41, %v3977_v49  ;;  %v4365_v8 = vadd.f32 %v4333_v1, %v9944_v40  ;;  %v3981_v24 = vsub.f32 %v9954_v18, %v9953_v13  ;;  %v4183_v41 = vpop.permute.xlu0 %4182 }
 0xd06   :  { %v4372_v10 = vadd.f32 %v4340_v34, %v9949_v23  ;;  %v4310_v34 = vadd.f32 %v8795_v57, %v4274_v60  ;;  %v4280_v36 = vmul.f32 %v8787_v12, %v4244_v42  ;;  %v4242_v27 = vmul.f32 %v4153_v31, %v3986_v59 }
 0xd07   :  { %v4339_v51 = vmax.f32 %v4307_v30, 0.0  ;;  %v4269_v16 = vmul.f32 %v8787_v12, %v4233_v37  ;;  %v4411_v4 = vpack.c.bf16 %v4366_v45, %v4365_v8  ;;  %v9956_v45 = vmax.f32 %v9955_v52, 0.0  ;;  %v9957_v37 = vld [vmem:[#allocation59_spill] sm:$0xff] }
 0xd08   :  { %v4138_v63 = vpop.permute.xlu1 %4137  ;;  %v4344_v30 = vmax.f32 %v4312_v35, 0.0  ;;  %v9958_v15 = vmax.f32 %v9957_v37, 0.0  ;;  %v9959_v8 = vld [vmem:[#allocation95_spill] sm:$0xff]  ;;  %v3987_v9 = vsub.f32 %v9960_v5, %v8633_v39 }
 0xd09   :  { %v4305_v44 = vadd.f32 %v8795_v57, %v4269_v16  ;;  %v4239_v46 = vmul.f32 %v4138_v63, %v3983_v48  ;;  %5034 = vmatprep.mubr.bf16.mxu0 %v4411_v4  ;;  %v4371_v38 = vadd.f32 %v4339_v51, %v9951_v43  ;;  %v4370_v26 = vadd.f32 %v4338_v53, %v9956_v45  ;;  %v4173_v17 = vpop.permute.xlu0 %4172  ;;  %v9966_v43 = vld [vmem:[#allocation45_spill] sm:$0xff]  ;;  %v9971_v45 = vld [vmem:[#allocation74_spill] sm:$0xff] }
 0xd0a   :  { %5035 = vmatmul.mubr.bf16.gmra.mrb[52].mxu0 %v4412_v25  ;;  %v3992_v62 = vsub.f32 %v9959_v8, %v8736_v29  ;;  %v4342_v16 = vmax.f32 %v4310_v34, 0.0  ;;  %v4316_v4 = vadd.f32 %v8795_v57, %v4280_v36  ;;  %v4278_v53 = vmul.f32 %v8787_v12, %v4242_v27  ;;  %v9967_v34 = vld [vmem:[#allocation40_spill] sm:$0xff]  ;;  %v9972_v8 = vld [vmem:[#allocation15_spill] sm:$0xff] }
 0xd0b   :  { %v4337_v49 = vmax.f32 %v4305_v44, 0.0  ;;  %v4275_v1 = vmul.f32 %v8787_v12, %v4239_v46  ;;  %v4414_v28 = vpack.c.bf16 %v4372_v10, %v4371_v38  ;;  %v9962_v29 = vmax.f32 %v9961_v20, 0.0  ;;  %v9963_v10 = vld [vmem:[#allocation13_spill] sm:$0xff]  ;;  %v9965_v44 = vld [vmem:[#allocation96_spill] sm:$0xff] }
 0xd0c   :  { %v4128_v19 = vpop.permute.xlu1 %4127  ;;  %v4248_v60 = vmul.f32 %v4183_v41, %v3992_v62  ;;  %v9964_v39 = vmax.f32 %v9963_v10, 0.0  ;;  %v3985_v46 = vsub.f32 %v9965_v44, %v8645_v56  ;;  %v3990_v38 = vsub.f32 %v9966_v43, %v8743_v14 }
 0xd0d   :  { %v4311_v0 = vadd.f32 %v8795_v57, %v4275_v1  ;;  %v4237_v25 = vmul.f32 %v4128_v19, %v3981_v24  ;;  %v4369_v40 = vadd.f32 %v4337_v49, %v9958_v15  ;;  %v4348_v18 = vmax.f32 %v4316_v4, 0.0  ;;  %v9969_v19 = vld [vmem:[#allocation19_spill] sm:$0xff]  ;;  %v9976_v4 = vld [vmem:[#allocation88_spill] sm:$0xff] }
 0xd0e   :  { %v4376_v35 = vadd.f32 %v4344_v30, %v9964_v39  ;;  %v4314_v24 = vadd.f32 %v8795_v57, %v4278_v53  ;;  %v4284_v49 = vmul.f32 %v8787_v12, %v4248_v60  ;;  %v9968_v36 = vmax.f32 %v9967_v34, 0.0 }
 0xd0f   :  { %v4343_v2 = vmax.f32 %v4311_v0, 0.0  ;;  %v4273_v48 = vmul.f32 %v8787_v12, %v4237_v25  ;;  %v4413_v51 = vpack.c.bf16 %v4370_v26, %v4369_v40  ;;  %v4246_v41 = vmul.f32 %v4173_v17, %v3990_v38 }
 0xd10   :  { %v4158_v42 = vpop.permute.xlu1 %4157  ;;  %v4374_v27 = vadd.f32 %v4342_v16, %v9968_v36  ;;  %v9970_v52 = vmax.f32 %v9969_v19, 0.0  ;;  %v3991_v26 = vsub.f32 %v9971_v45, %v8703_v55  ;;  %v4346_v37 = vmax.f32 %v4314_v24, 0.0 }
 0xd11   :  { %v4309_v31 = vadd.f32 %v8795_v57, %v4273_v48  ;;  %v4243_v63 = vmul.f32 %v4158_v42, %v3987_v9  ;;  %5038 = vmatprep.mubr.bf16.mxu0 %v4413_v51  ;;  %v4375_v23 = vadd.f32 %v4343_v2, %v9962_v29  ;;  %v4320_v15 = vadd.f32 %v8795_v57, %v4284_v49  ;;  %v9974_v51 = vld [vmem:[#allocation58_spill] sm:$0xff]  ;;  %v9977_v29 = vld [vmem:[#allocation27_spill] sm:$0xff] }
 0xd12   :  { %5039 = vmatmul.mubr.bf16.gmra.mrb[56].mxu0 %v4414_v28  ;;  %v9973_v62 = vmax.f32 %v9972_v8, 0.0  ;;  %v4282_v9 = vmul.f32 %v8787_v12, %v4246_v41  ;;  %v9975_v16 = vmax.f32 %v9974_v51, 0.0  ;;  %v3989_v53 = vsub.f32 %v9976_v4, %v8713_v7  ;;  %v9992_v4 = vld [vmem:[#allocation68_spill] sm:$0xff] }
 0xd13   :  { %v4341_v6 = vmax.f32 %v4309_v31, 0.0  ;;  %v4279_v59 = vmul.f32 %v8787_v12, %v4243_v63  ;;  %v4416_v13 = vpack.c.bf16 %v4376_v35, %v4375_v23  ;;  %v4352_v63 = vmax.f32 %v4320_v15, 0.0 }
 0xd14   :  { %v4148_v1 = vpop.permute.xlu1 %4147  ;;  %v4380_v5 = vadd.f32 %v4348_v18, %v9973_v62  ;;  %v9978_v23 = vmax.f32 %v9977_v29, 0.0  ;;  %v4318_v39 = vadd.f32 %v8795_v57, %v4282_v9  ;;  %v9981_v18 = vld [vmem:[#allocation64_spill] sm:$0xff]  ;;  %v9991_v9 = vld [vmem:[#allocation71_spill] sm:$0xff] }
 0xd15   :  { %v4315_v56 = vadd.f32 %v8795_v57, %v4279_v59  ;;  %v4241_v28 = vmul.f32 %v4148_v1, %v3985_v46  ;;  %v4373_v14 = vadd.f32 %v4341_v6, %v9970_v52  ;;  %v9979_v46 = vld [vmem:[#allocation66_spill] sm:$0xff]  ;;  %v9982_v24 = vmax.f32 %v9981_v18, 0.0  ;;  %v9983_v1 = vld [vmem:[#allocation67_spill] sm:$0xff]  ;;  %v9987_v52 = vld [vmem:[#allocation69_spill] sm:$0xff] }
 0xd16   :  { %v4378_v10 = vadd.f32 %v4346_v37, %v9978_v23  ;;  %v9980_v17 = vmax.f32 %v9979_v46, 0.0  ;;  %v4350_v59 = vmax.f32 %v4318_v39, 0.0  ;;  %v9984_v34 = vmax.f32 %v9983_v1, 0.0 }
 0xd17   :  { %v4347_v30 = vmax.f32 %v4315_v56, 0.0  ;;  %v4277_v0 = vmul.f32 %v8787_v12, %v4241_v28  ;;  %v4415_v25 = vpack.c.bf16 %v4374_v27, %v4373_v14  ;;  %v9985_v56 = vld [vmem:[#allocation7_spill] sm:$0xff]  ;;  %v9988_v14 = vmax.f32 %v9987_v52, 0.0 }
 0xd18   :  { %v4178_v40 = vpop.permute.xlu1 %4177  ;;  %v4384_v36 = vadd.f32 %v4352_v63, %v9984_v34  ;;  %v9986_v28 = vmax.f32 %v9985_v56, 0.0  ;;  %v10001_v34 = vld [vmem:[#allocation65_spill] sm:$0xff] }
 0xd19   :  { %v4313_v2 = vadd.f32 %v8795_v57, %v4277_v0  ;;  %v4247_v48 = vmul.f32 %v4178_v40, %v3991_v26  ;;  %5042 = vmatprep.mubr.bf16.mxu0 %v4415_v25  ;;  %v4379_v55 = vadd.f32 %v4347_v30, %v9975_v16  ;;  %v4382_v45 = vadd.f32 %v4350_v59, %v9988_v14  ;;  %v9989_v0 = vld [vmem:[#allocation81_spill] sm:$0xff]  ;;  %v9990_v40 = vld [vmem:[#allocation86_spill] sm:$0xff] }
 0xd1a   :  { %5043 = vmatmul.mubr.bf16.gmra.mrb[60].mxu0 %v4416_v13  ;;  %v3995_v25 = vsub.f32 %v9989_v0, %v8753_v54  ;;  %v3993_v8 = vsub.f32 %v9990_v40, %v8756_v3  ;;  %v3994_v54 = vsub.f32 %v9992_v4, %v8766_v11  ;;  %v9999_v59 = vld [vmem:[#allocation30_spill] sm:$0xff]  ;;  %v3998_v14 = vsub.f32 %v8629_v50, %v8773_v61 }
 0xd1b   :  { %v4345_v60 = vmax.f32 %v4313_v2, 0.0  ;;  %v4283_v42 = vmul.f32 %v8787_v12, %v4247_v48  ;;  %v4418_v31 = vpack.c.bf16 %v4380_v5, %v4379_v55  ;;  %v3996_v2 = vsub.f32 %v9991_v9, %v8764_v58  ;;  %v10002_v9 = vld [vmem:[#allocation21_spill] sm:$0xff] }
 0xd1c   :  { %v4168_v20 = vpop.permute.xlu1 %4167 }
 0xd1d   :  { %v4319_v35 = vadd.f32 %v8795_v57, %v4283_v42  ;;  %v4245_v44 = vmul.f32 %v4168_v20, %v3989_v53  ;;  %v4377_v43 = vadd.f32 %v4345_v60, %v9980_v17 }
 0xd1f   :  { %v4351_v38 = vmax.f32 %v4319_v35, 0.0  ;;  %v4281_v7 = vmul.f32 %v8787_v12, %v4245_v44  ;;  %v4417_v6 = vpack.c.bf16 %v4378_v10, %v4377_v43  ;;  %v9993_v10 = vld [vmem:[#allocation29_spill] sm:$0xff]  ;;  %v9995_v44 = vld [vmem:[#allocation38_spill] sm:$0xff] }
 0xd20   :  { %v4198_v30 = vpop.permute.xlu1 %4197  ;;  %v9994_v39 = vmax.f32 %v9993_v10, 0.0  ;;  %v9996_v11 = vmax.f32 %v9995_v44, 0.0 }
 0xd21   :  { %v4317_v13 = vadd.f32 %v8795_v57, %v4281_v7  ;;  %5046 = vmatprep.mubr.bf16.mxu0 %v4417_v6  ;;  %v4383_v49 = vadd.f32 %v4351_v38, %v9982_v24  ;;  %v4251_v37 = vmul.f32 %v4198_v30, %v3995_v25  ;;  %v9997_v38 = vld [vmem:[#allocation9_spill] sm:$0xff] }
 0xd22   :  { %5047 = vmatmul.mubr.bf16.gmra.mrb[64].mxu0 %v4418_v31  ;;  %v9998_v7 = vmax.f32 %v9997_v38, 0.0 }
 0xd23   :  { %v4349_v27 = vmax.f32 %v4317_v13, 0.0  ;;  %v4420_v41 = vpack.c.bf16 %v4384_v36, %v4383_v49  ;;  %v4287_v62 = vmul.f32 %v8787_v12, %v4251_v37  ;;  %v10000_v13 = vmax.f32 %v9999_v59, 0.0 }
 0xd24   :  { %v4188_v15 = vpop.permute.xlu1 %4187  ;;  %v3997_v36 = vsub.f32 %v10001_v34, %v8775_v32 }
 0xd25   :  { %v4381_v19 = vadd.f32 %v4349_v27, %v9986_v28  ;;  %v4249_v5 = vmul.f32 %v4188_v15, %v3993_v8  ;;  %v4323_v51 = vadd.f32 %v8795_v57, %v4287_v62 }
 0xd27   :  { %v4419_v26 = vpack.c.bf16 %v4382_v45, %v4381_v19  ;;  %v4285_v16 = vmul.f32 %v8787_v12, %v4249_v5  ;;  %v4355_v42 = vmax.f32 %v4323_v51, 0.0  ;;  %v10004_v51 = vld [vmem:[#allocation63_spill] sm:$0xff] }
 0xd28   :  { %v3962_v49 = vpop.permute.xlu1 %3961 }
 0xd29   :  { %5050 = vmatprep.mubr.bf16.mxu0 %v4419_v26  ;;  %v4321_v3 = vadd.f32 %v8795_v57, %v4285_v16  ;;  %v4387_v35 = vadd.f32 %v4355_v42, %v9994_v39  ;;  %v3999_v56 = vsub.f32 %v9894_v22, %v3962_v49  ;;  %v10008_v42 = vld [vmem:[#allocation31_spill] sm:$0xff] }
 0xd2a   :  { %5051 = vmatmul.mubr.bf16.gmra.mrb[68].mxu0 %v4420_v41 }
 0xd2b   :  { %v4353_v29 = vmax.f32 %v4321_v3, 0.0  ;;  %v10009_v3 = vmax.f32 %v10008_v42, 0.0 }
 0xd2d   :  { %v4385_v6 = vadd.f32 %v4353_v29, %v9998_v7 }
 0xd42   :  { %v4203_v48 = vpop.permute.xlu0 %4202 }
 0xd43   :  { %v4252_v55 = vmul.f32 %v4203_v48, %v3996_v2  ;;  %v10003_v2 = vmax.f32 %v10002_v9, 0.0 }
 0xd45   :  { %v4288_v53 = vmul.f32 %v8787_v12, %v4252_v55 }
 0xd46   :  { %v4193_v60 = vpop.permute.xlu0 %4192 }
 0xd47   :  { %v4324_v31 = vadd.f32 %v8795_v57, %v4288_v53  ;;  %v4250_v63 = vmul.f32 %v4193_v60, %v3994_v54  ;;  %v10006_v54 = vld [vmem:[#allocation37_spill] sm:$0xff] }
 0xd48   :  { %v10007_v53 = vmax.f32 %v10006_v54, 0.0 }
 0xd49   :  { %v4356_v20 = vmax.f32 %v4324_v31, 0.0  ;;  %v4286_v58 = vmul.f32 %v8787_v12, %v4250_v63 }
 0xd4a   :  { %v3967_v28 = vpop.permute.xlu0 %3966 }
 0xd4b   :  { %v4322_v23 = vadd.f32 %v8795_v57, %v4286_v58  ;;  %v4388_v46 = vadd.f32 %v4356_v20, %v9996_v11  ;;  %v4000_v25 = vsub.f32 %v8655_v47, %v3967_v28  ;;  %v10005_v47 = vmax.f32 %v10004_v51, 0.0 }
 0xd4d   :  { %v4354_v17 = vmax.f32 %v4322_v23, 0.0  ;;  %v4422_v43 = vpack.c.bf16 %v4388_v46, %v4387_v35 }
 0xd4f   :  { %v4386_v18 = vadd.f32 %v4354_v17, %v10000_v13 }
 0xd51   :  { %v4421_v24 = vpack.c.bf16 %v4386_v18, %v4385_v6 }
 0xd53   :  { %5054 = vmatprep.mubr.bf16.mxu0 %v4421_v24 }
 0xd54   :  { %5055 = vmatmul.mubr.bf16.gmra.mrb[72].mxu0 %v4422_v43 }
 0xd5b   :  { %v4208_v1 = vpop.permute.xlu1 %4207 }
 0xd5c   :  { %v4253_v27 = vmul.f32 %v4208_v1, %v3997_v36 }
 0xd5e   :  { %v4289_v19 = vmul.f32 %v8787_v12, %v4253_v27 }
 0xd5f   :  { %v4218_v41 = vpop.permute.xlu1 %4217 }
 0xd60   :  { %v4255_v52 = vmul.f32 %v4218_v41, %v3999_v56  ;;  %v4325_v26 = vadd.f32 %v8795_v57, %v4289_v19 }
 0xd62   :  { %v4291_v30 = vmul.f32 %v8787_v12, %v4255_v52  ;;  %v4357_v15 = vmax.f32 %v4325_v26, 0.0 }
 0xd64   :  { %v4327_v22 = vadd.f32 %v8795_v57, %v4291_v30  ;;  %v4389_v48 = vadd.f32 %v4357_v15, %v10003_v2 }
 0xd66   :  { %v4359_v61 = vmax.f32 %v4327_v22, 0.0 }
 0xd68   :  { %v4391_v60 = vadd.f32 %v4359_v61, %v10007_v53 }
 0xd7f   :  { %v4213_v45 = vpop.permute.xlu0 %4212 }
 0xd80   :  { %v4254_v0 = vmul.f32 %v4213_v45, %v3998_v14 }
 0xd82   :  { %v4290_v32 = vmul.f32 %v8787_v12, %v4254_v0 }
 0xd83   :  { %v4223_v37 = vpop.permute.xlu0 %4222 }
 0xd84   :  { %v4326_v40 = vadd.f32 %v8795_v57, %v4290_v32  ;;  %v4256_v8 = vmul.f32 %v4223_v37, %v4000_v25 }
 0xd86   :  { %v4358_v62 = vmax.f32 %v4326_v40, 0.0  ;;  %v4292_v50 = vmul.f32 %v8787_v12, %v4256_v8  ;;  %v10010_v12 = vsub.s32 4, %v9904_v33 }
 0xd88   :  { %v4328_v5 = vadd.f32 %v8795_v57, %v4292_v50  ;;  %v4390_v16 = vadd.f32 %v4358_v62, %v10005_v47  ;;  %v8989_v57 = vrot.slane %v8782_v21, %v10010_v12 }
 0xd8a   :  { %v4360_v55 = vmax.f32 %v4328_v5, 0.0  ;;  %v4423_v4 = vpack.c.bf16 %v4390_v16, %v4389_v48 }
 0xd8c   :  { %5058 = vmatprep.mubr.bf16.mxu0 %v4423_v4  ;;  %v4392_v31 = vadd.f32 %v4360_v55, %v10009_v3 }
 0xd8e   :  { %v4424_v63 = vpack.c.bf16 %v4392_v31, %v4391_v60 }
 0xd90   :  { %5059 = vmatmul.mubr.bf16.gmra.mrb[76].mxu0 %v4424_v63 }
 0xdd5   :  { %v5032_v20 = vpop.f32.mrb[48].mxu0 }
 0xdd6   :  { %v4520_v58 = vadd.f32 %v5032_v20, %v8989_v57  ;;  %v4511_v29 = vpop.f32.mrb[49].mxu0 }
 0xdd7   :  { %v4512_v23 = vadd.f32 %v4511_v29, %v8989_v57  ;;  %v5033_v10 = vpop.f32.mrb[50].mxu0 }
 0xdd8   :  { %4640 = vst [vmem:[%s9122_s3 + $0x10] sm:$0xff] %v4520_v58  ;;  %v4523_v39 = vadd.f32 %v5033_v10, %v8989_v57  ;;  %v4514_v35 = vpop.f32.mrb[51].mxu0 }
 0xdd9   :  { %4638 = vst [vmem:[%s9122_s3] sm:$0xff] %v4512_v23  ;;  %v4515_v21 = vadd.f32 %v4514_v35, %v8989_v57 }
 0xdda   :  { %4641 = vst [vmem:[%s9122_s3 + $0x18] sm:$0xff] %v4523_v39 }
 0xddb   :  { %4639 = vst [vmem:[%s9122_s3 + $0x8] sm:$0xff] %v4515_v21 }
 0xddd   :  { %v5036_v33 = vpop.f32.mrb[52].mxu0 }
 0xdde   :  { %v4536_v44 = vadd.f32 %v5036_v33, %v8989_v57  ;;  %v4527_v11 = vpop.f32.mrb[53].mxu0 }
 0xddf   :  { %v4528_v46 = vadd.f32 %v4527_v11, %v8989_v57  ;;  %v5037_v17 = vpop.f32.mrb[54].mxu0 }
 0xde0   :  { %4644 = vst [vmem:[%s9122_s3 + $0x30] sm:$0xff] %v4536_v44  ;;  %v4539_v43 = vadd.f32 %v5037_v17, %v8989_v57  ;;  %v4530_v38 = vpop.f32.mrb[55].mxu0 }
 0xde1   :  { %4642 = vst [vmem:[%s9122_s3 + $0x20] sm:$0xff] %v4528_v46  ;;  %v4531_v7 = vadd.f32 %v4530_v38, %v8989_v57 }
 0xde2   :  { %4645 = vst [vmem:[%s9122_s3 + $0x38] sm:$0xff] %v4539_v43 }
 0xde3   :  { %4643 = vst [vmem:[%s9122_s3 + $0x28] sm:$0xff] %v4531_v7 }
 0xde5   :  { %v5040_v6 = vpop.f32.mrb[56].mxu0 }
 0xde6   :  { %v4552_v59 = vadd.f32 %v5040_v6, %v8989_v57  ;;  %v4543_v13 = vpop.f32.mrb[57].mxu0 }
 0xde7   :  { %v4544_v18 = vadd.f32 %v4543_v13, %v8989_v57  ;;  %v5041_v24 = vpop.f32.mrb[58].mxu0 }
 0xde8   :  { %4648 = vst [vmem:[%s9122_s3 + $0x50] sm:$0xff] %v4552_v59  ;;  %v4555_v49 = vadd.f32 %v5041_v24, %v8989_v57  ;;  %v4546_v1 = vpop.f32.mrb[59].mxu0 }
 0xde9   :  { %4646 = vst [vmem:[%s9122_s3 + $0x40] sm:$0xff] %v4544_v18  ;;  %v4547_v34 = vadd.f32 %v4546_v1, %v8989_v57 }
 0xdea   :  { %4649 = vst [vmem:[%s9122_s3 + $0x58] sm:$0xff] %v4555_v49 }
 0xdeb   :  { %4647 = vst [vmem:[%s9122_s3 + $0x48] sm:$0xff] %v4547_v34 }
 0xded   :  { %v5044_v36 = vpop.f32.mrb[60].mxu0 }
 0xdee   :  { %v4568_v27 = vadd.f32 %v5044_v36, %v8989_v57  ;;  %v4559_v41 = vpop.f32.mrb[61].mxu0 }
 0xdef   :  { %v4560_v56 = vadd.f32 %v4559_v41, %v8989_v57  ;;  %v5045_v28 = vpop.f32.mrb[62].mxu0 }
 0xdf0   :  { %4652 = vst [vmem:[%s9122_s3 + $0x70] sm:$0xff] %v4568_v27  ;;  %v4571_v19 = vadd.f32 %v5045_v28, %v8989_v57  ;;  %v4562_v52 = vpop.f32.mrb[63].mxu0 }
 0xdf1   :  { %4650 = vst [vmem:[%s9122_s3 + $0x60] sm:$0xff] %v4560_v56  ;;  %v4563_v14 = vadd.f32 %v4562_v52, %v8989_v57 }
 0xdf2   :  { %4653 = vst [vmem:[%s9122_s3 + $0x78] sm:$0xff] %v4571_v19 }
 0xdf3   :  { %4651 = vst [vmem:[%s9122_s3 + $0x68] sm:$0xff] %v4563_v14 }
 0xdf5   :  { %v5048_v45 = vpop.f32.mrb[64].mxu0 }
 0xdf6   :  { %v4584_v26 = vadd.f32 %v5048_v45, %v8989_v57  ;;  %v4575_v30 = vpop.f32.mrb[65].mxu0 }
 0xdf7   :  { %v4576_v0 = vadd.f32 %v4575_v30, %v8989_v57  ;;  %v5049_v25 = vpop.f32.mrb[66].mxu0 }
 0xdf8   :  { %4656 = vst [vmem:[%s9122_s3 + $0x90] sm:$0xff] %v4584_v26  ;;  %v4587_v32 = vadd.f32 %v5049_v25, %v8989_v57  ;;  %v4578_v37 = vpop.f32.mrb[67].mxu0 }
 0xdf9   :  { %4654 = vst [vmem:[%s9122_s3 + $0x80] sm:$0xff] %v4576_v0  ;;  %v4579_v15 = vadd.f32 %v4578_v37, %v8989_v57 }
 0xdfa   :  { %4657 = vst [vmem:[%s9122_s3 + $0x98] sm:$0xff] %v4587_v32 }
 0xdfb   :  { %4655 = vst [vmem:[%s9122_s3 + $0x88] sm:$0xff] %v4579_v15 }
 0xdfd   :  { %v5052_v22 = vpop.f32.mrb[68].mxu0 }
 0xdfe   :  { %v4600_v40 = vadd.f32 %v5052_v22, %v8989_v57  ;;  %v4591_v8 = vpop.f32.mrb[69].mxu0 }
 0xdff   :  { %v4592_v62 = vadd.f32 %v4591_v8, %v8989_v57  ;;  %v5053_v50 = vpop.f32.mrb[70].mxu0 }
 0xe00   :  { %4660 = vst [vmem:[%s9122_s3 + $0xb0] sm:$0xff] %v4600_v40  ;;  %v4603_v61 = vadd.f32 %v5053_v50, %v8989_v57  ;;  %v4594_v5 = vpop.f32.mrb[71].mxu0 }
 0xe01   :  { %4658 = vst [vmem:[%s9122_s3 + $0xa0] sm:$0xff] %v4592_v62  ;;  %v4595_v9 = vadd.f32 %v4594_v5, %v8989_v57 }
 0xe02   :  { %4661 = vst [vmem:[%s9122_s3 + $0xb8] sm:$0xff] %v4603_v61 }
 0xe03   :  { %4659 = vst [vmem:[%s9122_s3 + $0xa8] sm:$0xff] %v4595_v9 }
 0xe27   :  { %v5056_v2 = vpop.f32.mrb[72].mxu0 }
 0xe28   :  { %v4616_v48 = vadd.f32 %v5056_v2, %v8989_v57  ;;  %v4607_v51 = vpop.f32.mrb[73].mxu0 }
 0xe29   :  { %v4608_v47 = vadd.f32 %v4607_v51, %v8989_v57  ;;  %v5057_v16 = vpop.f32.mrb[74].mxu0 }
 0xe2a   :  { %4664 = vst [vmem:[%s9122_s3 + $0xd0] sm:$0xff] %v4616_v48  ;;  %v4619_v55 = vadd.f32 %v5057_v16, %v8989_v57  ;;  %v4610_v4 = vpop.f32.mrb[75].mxu0 }
 0xe2b   :  { %4662 = vst [vmem:[%s9122_s3 + $0xc0] sm:$0xff] %v4608_v47  ;;  %v4611_v54 = vadd.f32 %v4610_v4, %v8989_v57 }
 0xe2c   :  { %4665 = vst [vmem:[%s9122_s3 + $0xd8] sm:$0xff] %v4619_v55 }
 0xe2d   :  { %4663 = vst [vmem:[%s9122_s3 + $0xc8] sm:$0xff] %v4611_v54 }
 0xe63   :  { %v5060_v53 = vpop.f32.mrb[76].mxu0 }
 0xe64   :  { %v4632_v60 = vadd.f32 %v5060_v53, %v8989_v57  ;;  %v4623_v42 = vpop.f32.mrb[77].mxu0 }
 0xe65   :  { %v4624_v3 = vadd.f32 %v4623_v42, %v8989_v57  ;;  %v5061_v31 = vpop.f32.mrb[78].mxu0 }
 0xe66   :  { %4668 = vst [vmem:[%s9122_s3 + $0xf0] sm:$0xff] %v4632_v60  ;;  %v4635_v63 = vadd.f32 %v5061_v31, %v8989_v57  ;;  %v4626_v12 = vpop.f32.mrb[79].mxu0 }
 0xe67   :  { %4666 = vst [vmem:[%s9122_s3 + $0xe0] sm:$0xff] %v4624_v3  ;;  %v4627_v20 = vadd.f32 %v4626_v12, %v8989_v57 }
 0xe68   :  { %4669 = vst [vmem:[%s9122_s3 + $0xf8] sm:$0xff] %v4635_v63 }
 0xe69   :  { %4667 = vst [vmem:[%s9122_s3 + $0xe8] sm:$0xff] %v4627_v20 }
 0xe6a   :  { %4674 = vsyncpa [#allocation3], 1 }

</bundles_post_ra>
